<compile_context>
chip_gen: v6e
topology: v6e:2x2x1
jax: 0.10.0
libtpu: 0.0.40
codegen_flags: <defaults>
</compile_context>

<pallas_src>
import jax
import jax.numpy as jnp
import numpy as np
from jax.experimental import pallas as pl
from jax.experimental.pallas import tpu as pltpu

LANE = 128


def _round_up(v, m):
    return (v + m - 1) // m * m


# --------------------------------------------------------------------------- #
# Kernel: one (row-tile i, k-tile k) grid step.
# --------------------------------------------------------------------------- #
def gated_graph_conv_kernel(adj_ref, xw_ref, x_ref, wi_ref, wh_ref,
                            bm_ref, bi_ref, bh_ref, out_ref, acc_ref):
    """
    adj_ref : (tile_n, k_tile) bf16  adjacency slab, column index = t*Np + n_in
    xw_ref  : (k_tile, Hp)     bf16  precomputed x @ Wm_t, stacked over edge types
    x_ref   : (tile_n, Dp)     f32   node features of this row tile (GRU hidden h)
    wi_ref  : (Hp, 3*Dp)       bf16  fused GRUCell weight_ih  [r | z | n]
    wh_ref  : (Dp, 3*Dp)       bf16  fused GRUCell weight_hh  [r | z | n]
    bm_ref  : (1, Hp)          f32   mlp bias
    bi_ref  : (1, 3*Dp)        f32   GRU bias_ih
    bh_ref  : (1, 3*Dp)        f32   GRU bias_hh
    out_ref : (tile_n, Dp)     f32   new node features
    acc_ref : (tile_n, Hp)     f32   hidden pre-activation accumulator (scratch)
    """
    k = pl.program_id(1)
    nk = pl.num_programs(1)
    Dp = out_ref.shape[1]

    # ---- init: fold b_mlp into the accumulator (no zeros + separate add) ----
    @pl.when(k == 0)
    def _():
        acc_ref[...] = jnp.broadcast_to(bm_ref[...], acc_ref.shape)

    # ---- fused message_and_aggregate + mlp: one big-K MXU call per step ----
    acc_ref[...] += jnp.dot(adj_ref[...], xw_ref[...],
                            preferred_element_type=jnp.float32)

    # ---- epilogue on the last k step: relu + GRUCell ----
    @pl.when(k == nk - 1)
    def _():
        hidden = jnp.maximum(acc_ref[...], 0.0).astype(jnp.bfloat16)   # relu
        x_tile = x_ref[...]                                            # f32 h

        gi = jnp.dot(hidden, wi_ref[...],
                     preferred_element_type=jnp.float32) + bi_ref[...]
        gh = jnp.dot(x_tile.astype(jnp.bfloat16), wh_ref[...],
                     preferred_element_type=jnp.float32) + bh_ref[...]

        r = jax.nn.sigmoid(gi[:, :Dp] + gh[:, :Dp])
        z = jax.nn.sigmoid(gi[:, Dp:2 * Dp] + gh[:, Dp:2 * Dp])
        n = jnp.tanh(gi[:, 2 * Dp:] + r * gh[:, 2 * Dp:])

        out_ref[...] = (1.0 - z) * n + z * x_tile


# --------------------------------------------------------------------------- #
# Wrapper
# --------------------------------------------------------------------------- #
def _vmem_footprint(tile_n, k_tile, Dp, Hp):
    """Worst-case per-step VMEM bytes (assumes double buffering everywhere)."""
    adj = 2 * tile_n * k_tile * 2            # bf16, streamed over (i, k)
    xw = 2 * k_tile * Hp * 2                 # bf16, streamed over k
    x = 2 * tile_n * Dp * 4                  # f32 row tile
    out = 2 * tile_n * Dp * 4                # f32 row tile
    w = 2 * (Hp + Dp) * 3 * Dp * 2           # GRU weights (worst case 2 buffers)
    b = 2 * (Hp + 6 * Dp) * 4                # biases
    acc = tile_n * Hp * 4                    # accumulator scratch
    interm = 8 * tile_n * 3 * Dp * 4         # gi/gh/r/z/n f32 intermediates
    return adj + xw + x + out + w + b + acc + interm


def gated_graph_conv(node_feature, edge_index, edge_type, edge_weight, params,
                     num_node, num_edge_type, *, tile_n=256, max_k_tile=None):
    """Forward pass of GatedGraphConv (batch_norm=False, activation=relu)."""
    node_in, node_out = edge_index
    N, T = int(num_node), int(num_edge_type)
    D = node_feature.shape[1]
    H = params["b_mlp"].shape[0]
    f32, bf16 = jnp.float32, jnp.bfloat16

    Dp = _round_up(D, LANE)
    Hp = _round_up(H, LANE)

    # ---- VMEM budget (v7x has 64 MiB/TC; v5e/v6e have 128 MiB). ----
    try:
        vmem_cap = int(pltpu.get_tpu_info().vmem_capacity_bytes)
    except Exception:
        vmem_cap = 64 * 2**20                      # safe lower bound (v7x)
    budget = int(vmem_cap * 0.6)

    # ---- Row tile: default 256 fills the 256-row MXU on v6e/v7x (2x128 on v5e);
    #      shrink for small graphs so padding stays bounded. ----
    tile_n = max(LANE, _round_up(min(int(tile_n), _round_up(N, LANE)), LANE))
    Np = _round_up(N, tile_n)
    n_tiles = Np // tile_n
    # Note: on v7x keep n_tiles >= 2 and even when possible so the "parallel"
    # axis shards evenly across its 2 TensorCores (single-TC v5e/v6e unaffected).

    # ---- K tile over the T*Np contraction: largest lane-aligned divisor of
    #      T*Np that keeps the per-step footprint inside the VMEM budget. ----
    K = T * Np
    max_k = max(LANE, int(max_k_tile)) if max_k_tile is not None else K
    candidates = [c for c in range(LANE, Np + 1, LANE) if Np % c == 0] + [K]
    k_tile = LANE
    for c in sorted(set(candidates)):
        if c <= max_k and _vmem_footprint(tile_n, c, Dp, Hp) <= budget:
            k_tile = c
    n_k = K // k_tile

    # ---- Adjacency: scatter straight into the kernel layout
    #      (rows = node_out, cols = edge_type*Np + node_in).  No extra pass. ----
    node_in = node_in.astype(jnp.int32)
    node_out = node_out.astype(jnp.int32)
    cols = edge_type.astype(jnp.int32) * Np + node_in
    adj = (jnp.zeros((Np, K), f32)
              .at[node_out, cols].add(edge_weight.astype(f32))
              .astype(bf16))

    # ---- xw precompute (wrapper): xw[t*Np + m, :] = x[m, :] @ Wm_t. ----
    x_rows = jnp.zeros((Np, D), f32).at[:N, :].set(node_feature.astype(f32))
    wm = params["w_mlp"].astype(f32).reshape(H, T, D).transpose(1, 2, 0)  # (T,D,H)
    xw = jnp.einsum("md,tdh->tmh", x_rows, wm)                            # (T,Np,H)
    xw = (jnp.zeros((T, Np, Hp), f32).at[:, :, :H].set(xw)
             .reshape(K, Hp).astype(bf16))

    # ---- Node features for the GRU h input (f32, row-tiled). ----
    x_p = jnp.zeros((Np, Dp), f32).at[:N, :D].set(node_feature.astype(f32))

    # ---- GRU weights: fuse the three gates (r, z, n) along the lane dim. ----
    def pack_gru(w, b, in_dim, in_pad):
        w = jnp.asarray(w, f32)
        b = jnp.asarray(b, f32)
        wp = jnp.zeros((in_pad, 3 * Dp), f32)
        bp = jnp.zeros((1, 3 * Dp), f32)
        for g in range(3):                       # torch gate order [r; z; n]
            wp = wp.at[:in_dim, g * Dp:g * Dp + D].set(w[g * D:(g + 1) * D, :].T)
            bp = bp.at[0, g * Dp:g * Dp + D].set(b[g * D:(g + 1) * D])
        return wp, bp

    wi_p, bi_p = pack_gru(params["w_ih"], params["b_ih"], H, Hp)
    wh_p, bh_p = pack_gru(params["w_hh"], params["b_hh"], D, Dp)
    wi_p, wh_p = wi_p.astype(bf16), wh_p.astype(bf16)
    bm_p = jnp.zeros((1, Hp), f32).at[0, :H].set(params["b_mlp"].astype(f32))

    # ---- Grid & specs. ----
    grid = (n_tiles, n_k)

    def build_specs(single_buffer_residents):
        def const_spec(shape, imap):
            # Constant block index -> the second pipeline buffer is pure waste.
            if single_buffer_residents:
                try:
                    return pl.BlockSpec(shape, imap, pipeline_mode=pl.Buffered(1))
                except (TypeError, AttributeError):
                    pass
            return pl.BlockSpec(shape, imap)

        return [
            pl.BlockSpec((tile_n, k_tile), lambda i, k: (i, k)),   # adj (streams)
            pl.BlockSpec((k_tile, Hp),     lambda i, k: (k, 0)),   # xw (streams on k)
            pl.BlockSpec((tile_n, Dp),     lambda i, k: (i, 0)),   # x row tile
            const_spec((Hp, 3 * Dp),       lambda i, k: (0, 0)),   # GRU W_ih
            const_spec((Dp, 3 * Dp),       lambda i, k: (0, 0)),   # GRU W_hh
            const_spec((1, Hp),            lambda i, k: (0, 0)),   # b_mlp
            const_spec((1, 3 * Dp),        lambda i, k: (0, 0)),   # b_ih
            const_spec((1, 3 * Dp),        lambda i, k: (0, 0)),   # b_hh
        ]

    out_spec = pl.BlockSpec((tile_n, Dp), lambda i, k: (i, 0))

    # ---- Exact per-step footprint + headroom, capped below physical VMEM. ----
    footprint = _vmem_footprint(tile_n, k_tile, Dp, Hp)
    vmem_limit = max(int(footprint * 1.3), 16 * 2**20)
    vmem_limit = int(min(vmem_limit, int(vmem_cap * 0.85)))

    flops = 2 * Np * K * Hp + 2 * Np * (Hp + Dp) * 3 * Dp
    bytes_accessed = (adj.size * 2 + xw.size * 2 + x_p.size * 4
                      + (wi_p.size + wh_p.size) * 2
                      + (bm_p.size + bi_p.size + bh_p.size) * 4
                      + Np * Dp * 4)

    def run(single_buffer_residents):
        call = pl.pallas_call(
            gated_graph_conv_kernel,
            out_shape=jax.ShapeDtypeStruct((Np, Dp), f32),
            grid=grid,
            in_specs=build_specs(single_buffer_residents),
            out_specs=out_spec,
            scratch_shapes=[pltpu.VMEM((tile_n, Hp), f32)],
            compiler_params=pltpu.CompilerParams(
                dimension_semantics=("parallel", "arbitrary"),
                vmem_limit_bytes=vmem_limit),
            cost_estimate=pl.CostEstimate(
                flops=int(flops),
                transcendentals=int(3 * Np * Dp),
                bytes_accessed=int(bytes_accessed)),
        )
        return jax.block_until_ready(
            call(adj, xw, x_p, wi_p, wh_p, bm_p, bi_p, bh_p))

    try:
        out_padded = run(True)
    except Exception:
        # pl.Buffered(1) not supported by this jax/Mosaic path: fall back to the
        # default double buffering (correctness unaffected, small VMEM cost).
        out_padded = run(False)

    return out_padded[:N, :D]


# --------------------------------------------------------------------------- #
# Pure-JAX f32 reference mirroring the PyTorch module exactly.
# --------------------------------------------------------------------------- #
def reference(node_feature, edge_index, edge_type, edge_weight, params,
              num_node, num_edge_type):
    node_in, node_out = edge_index
    N, T = num_node, num_edge_type
    D = node_feature.shape[1]
    rows = node_out * T + edge_type
    A = jnp.zeros((N * T, N), jnp.float32).at[rows, node_in].add(edge_weight)
    update = (A @ node_feature).reshape(N, T * D)
    hidden = jax.nn.relu(update @ params["w_mlp"].T + params["b_mlp"])
    gi = hidden @ params["w_ih"].T + params["b_ih"]
    gh = node_feature @ params["w_hh"].T + params["b_hh"]
    r = jax.nn.sigmoid(gi[:, :D] + gh[:, :D])
    z = jax.nn.sigmoid(gi[:, D:2 * D] + gh[:, D:2 * D])
    n = jnp.tanh(gi[:, 2 * D:] + r * gh[:, 2 * D:])
    return (1.0 - z) * n + z * node_feature


if __name__ == "__main__":
    # Small, module-consistent shapes.  N deliberately not a tile multiple so
    # the padding path is exercised; tile_n=128 / max_k_tile=256 force a
    # (2 row-tile x 3 k-tile) grid so both the "parallel" axis and the
    # K-accumulation path run.
    N = 200         # num_node
    D = 32          # input_dim (GRU hidden_size)
    H = 64          # hidden_dim (mlp out / GRU input_size)
    T = 3           # num_edge_type
    E = 400         # num edges

    key = jax.random.PRNGKey(0)
    ks = jax.random.split(key, 11)

    node_in = jax.random.randint(ks[0], (E,), 0, N)
    node_out = jax.random.randint(ks[1], (E,), 0, N)
    edge_type = jax.random.randint(ks[2], (E,), 0, T)
    edge_weight = jax.random.uniform(ks[3], (E,), jnp.float32)
    node_feature = jax.random.normal(ks[4], (N, D), jnp.float32)

    def uinit(k, shape, fan_in):
        b = 1.0 / np.sqrt(fan_in)
        return jax.random.uniform(k, shape, jnp.float32, -b, b)

    params = {
        "w_mlp": uinit(ks[5], (H, T * D), T * D),    # nn.Linear(T*D, H).weight
        "b_mlp": uinit(ks[6], (H,), T * D),          # nn.Linear bias
        "w_ih":  uinit(ks[7], (3 * D, H), D),        # GRUCell.weight_ih
        "w_hh":  uinit(ks[8], (3 * D, D), D),        # GRUCell.weight_hh
        "b_ih":  uinit(ks[9], (3 * D,), D),          # GRUCell.bias_ih
        "b_hh":  uinit(ks[10], (3 * D,), D),         # GRUCell.bias_hh
    }

    out = gated_graph_conv(node_feature, (node_in, node_out), edge_type,
                           edge_weight, params, N, T,
                           tile_n=128, max_k_tile=256)
    out = jax.block_until_ready(out)

    ref = reference(node_feature, (node_in, node_out), edge_type,
                    edge_weight, params, N, T)
    assert out.shape == (N, D) and out.dtype == jnp.float32
    err = np.max(np.abs(np.asarray(out) - np.asarray(ref)))
    # bf16 MXU inputs (f32 accumulation) -> loosened tolerance vs f32 reference.
    assert np.allclose(np.asarray(out), np.asarray(ref), atol=3e-2, rtol=3e-2), \
        f"max abs err {err}"

    print("KERNEL_OK")
</pallas_src>

<mosaic_0001>
module attributes {stable_mosaic.version = 11 : i64} {
  func.func @gated_graph_conv_kernel(%arg0: i32, %arg1: i32, %arg2: memref<128x256xbf16, #tpu.memory_space<vmem>>, %arg3: memref<256x128xbf16, #tpu.memory_space<vmem>>, %arg4: memref<128x128xf32, #tpu.memory_space<vmem>>, %arg5: memref<128x384xbf16, #tpu.memory_space<vmem>>, %arg6: memref<128x384xbf16, #tpu.memory_space<vmem>>, %arg7: memref<1x128xf32, #tpu.memory_space<vmem>>, %arg8: memref<1x384xf32, #tpu.memory_space<vmem>>, %arg9: memref<1x384xf32, #tpu.memory_space<vmem>>, %arg10: memref<128x128xf32, #tpu.memory_space<vmem>>, %arg11: memref<128x128xf32, #tpu.memory_space<vmem>>) attributes {dimension_semantics = [#tpu.dimension_semantics<parallel>, #tpu.dimension_semantics<arbitrary>], iteration_bounds = array<i64: 2, 3>, scalar_prefetch = 0 : i64, scratch_operands = 1 : i64, tpu.core_type = #tpu.core_type<tc>, window_params = [{transform_indices = @transform_0, window_bounds = array<i64: 128, 256>}, {transform_indices = @transform_1, window_bounds = array<i64: 256, 128>}, {transform_indices = @transform_2, window_bounds = array<i64: 128, 128>}, {pipeline_mode = #tpu.pipeline_mode<synchronous>, transform_indices = @transform_3, window_bounds = array<i64: 128, 384>}, {pipeline_mode = #tpu.pipeline_mode<synchronous>, transform_indices = @transform_4, window_bounds = array<i64: 128, 384>}, {pipeline_mode = #tpu.pipeline_mode<synchronous>, transform_indices = @transform_5, window_bounds = array<i64: 1, 128>}, {pipeline_mode = #tpu.pipeline_mode<synchronous>, transform_indices = @transform_6, window_bounds = array<i64: 1, 384>}, {pipeline_mode = #tpu.pipeline_mode<synchronous>, transform_indices = @transform_7, window_bounds = array<i64: 1, 384>}, {transform_indices = @transform_8, window_bounds = array<i64: 128, 128>}]} {
    %c0_i32 = arith.constant 0 : i32
    %0 = arith.cmpi eq, %arg1, %c0_i32 : i32
    %1 = arith.extui %0 : i1 to i32
    %c0_i32_0 = arith.constant 0 : i32
    %2 = arith.cmpi ne, %1, %c0_i32_0 : i32
    scf.if %2 {
      %c0_9 = arith.constant 0 : index
      %c0_10 = arith.constant 0 : index
      %12 = vector.load %arg7[%c0_9, %c0_10] : memref<1x128xf32, #tpu.memory_space<vmem>>, vector<1x128xf32>
      %13 = vector.shape_cast %12 : vector<1x128xf32> to vector<1x128xf32>
      %14 = vector.broadcast %13 : vector<1x128xf32> to vector<128x128xf32>
      %c0_11 = arith.constant 0 : index
      %c0_12 = arith.constant 0 : index
      %15 = vector.load %arg11[%c0_11, %c0_12] : memref<128x128xf32, #tpu.memory_space<vmem>>, vector<128x128xf32>
      tpu.vector_store %arg11[%c0_11, %c0_12], %14 {strides = array<i32>} : memref<128x128xf32, #tpu.memory_space<vmem>>, vector<128x128xf32>,
    } else {
    }
    %c0 = arith.constant 0 : index
    %c0_1 = arith.constant 0 : index
    %3 = vector.load %arg11[%c0, %c0_1] : memref<128x128xf32, #tpu.memory_space<vmem>>, vector<128x128xf32>
    %c0_2 = arith.constant 0 : index
    %c0_3 = arith.constant 0 : index
    %4 = vector.load %arg2[%c0_2, %c0_3] : memref<128x256xbf16, #tpu.memory_space<vmem>>, vector<128x256xbf16>
    %c0_4 = arith.constant 0 : index
    %c0_5 = arith.constant 0 : index
    %5 = vector.load %arg3[%c0_4, %c0_5] : memref<256x128xbf16, #tpu.memory_space<vmem>>, vector<256x128xbf16>
    %cst = arith.constant dense<0.000000e+00> : vector<128x128xf32>
    %6 = tpu.matmul %4, %5, %cst {dimension_numbers = #tpu.dot_dimension_numbers<[1], [0], [0], [1], [0, 0, 1, 1], [], []>} : vector<128x256xbf16>, vector<256x128xbf16>, vector<128x128xf32> -> vector<128x128xf32>
    %7 = arith.addf %3, %6 : vector<128x128xf32>
    %c0_6 = arith.constant 0 : index
    %c0_7 = arith.constant 0 : index
    %8 = vector.load %arg11[%c0_6, %c0_7] : memref<128x128xf32, #tpu.memory_space<vmem>>, vector<128x128xf32>
    tpu.vector_store %arg11[%c0_6, %c0_7], %7 {strides = array<i32>} : memref<128x128xf32, #tpu.memory_space<vmem>>, vector<128x128xf32>,
    %c2_i32 = arith.constant 2 : i32
    %9 = arith.cmpi eq, %arg1, %c2_i32 : i32
    %10 = arith.extui %9 : i1 to i32
    %c0_i32_8 = arith.constant 0 : i32
    %11 = arith.cmpi ne, %10, %c0_i32_8 : i32
    scf.if %11 {
      %c0_9 = arith.constant 0 : index
      %c0_10 = arith.constant 0 : index
      %12 = vector.load %arg11[%c0_9, %c0_10] : memref<128x128xf32, #tpu.memory_space<vmem>>, vector<128x128xf32>
      %cst_11 = arith.constant 0.000000e+00 : f32
      %13 = vector.broadcast %cst_11 : f32 to vector<128x128xf32>
      %14 = arith.maximumf %12, %13 : vector<128x128xf32>
      %15 = arith.truncf %14 : vector<128x128xf32> to vector<128x128xbf16>
      %c0_12 = arith.constant 0 : index
      %c0_13 = arith.constant 0 : index
      %16 = vector.load %arg4[%c0_12, %c0_13] : memref<128x128xf32, #tpu.memory_space<vmem>>, vector<128x128xf32>
      %c0_14 = arith.constant 0 : index
      %c0_15 = arith.constant 0 : index
      %17 = vector.load %arg5[%c0_14, %c0_15] : memref<128x384xbf16, #tpu.memory_space<vmem>>, vector<128x384xbf16>
      %cst_16 = arith.constant dense<0.000000e+00> : vector<128x384xf32>
      %18 = tpu.matmul %15, %17, %cst_16 {dimension_numbers = #tpu.dot_dimension_numbers<[1], [0], [0], [1], [0, 0, 1, 1], [], []>} : vector<128x128xbf16>, vector<128x384xbf16>, vector<128x384xf32> -> vector<128x384xf32>
      %c0_17 = arith.constant 0 : index
      %c0_18 = arith.constant 0 : index
      %19 = vector.load %arg8[%c0_17, %c0_18] : memref<1x384xf32, #tpu.memory_space<vmem>>, vector<1x384xf32>
      %20 = vector.broadcast %19 : vector<1x384xf32> to vector<128x384xf32>
      %21 = arith.addf %18, %20 : vector<128x384xf32>
      %22 = arith.truncf %16 : vector<128x128xf32> to vector<128x128xbf16>
      %c0_19 = arith.constant 0 : index
      %c0_20 = arith.constant 0 : index
      %23 = vector.load %arg6[%c0_19, %c0_20] : memref<128x384xbf16, #tpu.memory_space<vmem>>, vector<128x384xbf16>
      %cst_21 = arith.constant dense<0.000000e+00> : vector<128x384xf32>
      %24 = tpu.matmul %22, %23, %cst_21 {dimension_numbers = #tpu.dot_dimension_numbers<[1], [0], [0], [1], [0, 0, 1, 1], [], []>} : vector<128x128xbf16>, vector<128x384xbf16>, vector<128x384xf32> -> vector<128x384xf32>
      %c0_22 = arith.constant 0 : index
      %c0_23 = arith.constant 0 : index
      %25 = vector.load %arg9[%c0_22, %c0_23] : memref<1x384xf32, #tpu.memory_space<vmem>>, vector<1x384xf32>
      %26 = vector.broadcast %25 : vector<1x384xf32> to vector<128x384xf32>
      %27 = arith.addf %24, %26 : vector<128x384xf32>
      %28 = vector.extract_strided_slice %21 {offsets = [0, 0], sizes = [128, 128], strides = [1, 1]} : vector<128x384xf32> to vector<128x128xf32>
      %29 = vector.extract_strided_slice %27 {offsets = [0, 0], sizes = [128, 128], strides = [1, 1]} : vector<128x384xf32> to vector<128x128xf32>
      %30 = arith.addf %28, %29 : vector<128x128xf32>
      %31 = arith.negf %30 : vector<128x128xf32>
      %32 = math.exp %31 : vector<128x128xf32>
      %cst_24 = arith.constant 1.000000e+00 : f32
      %33 = vector.broadcast %cst_24 : f32 to vector<128x128xf32>
      %34 = arith.addf %33, %32 : vector<128x128xf32>
      %35 = arith.divf %33, %34 : vector<128x128xf32>
      %36 = vector.extract_strided_slice %21 {offsets = [0, 128], sizes = [128, 128], strides = [1, 1]} : vector<128x384xf32> to vector<128x128xf32>
      %37 = vector.extract_strided_slice %27 {offsets = [0, 128], sizes = [128, 128], strides = [1, 1]} : vector<128x384xf32> to vector<128x128xf32>
      %38 = arith.addf %36, %37 : vector<128x128xf32>
      %39 = arith.negf %38 : vector<128x128xf32>
      %40 = math.exp %39 : vector<128x128xf32>
      %cst_25 = arith.constant 1.000000e+00 : f32
      %41 = vector.broadcast %cst_25 : f32 to vector<128x128xf32>
      %42 = arith.addf %41, %40 : vector<128x128xf32>
      %43 = arith.divf %41, %42 : vector<128x128xf32>
      %44 = vector.extract_strided_slice %21 {offsets = [0, 256], sizes = [128, 128], strides = [1, 1]} : vector<128x384xf32> to vector<128x128xf32>
      %45 = vector.extract_strided_slice %27 {offsets = [0, 256], sizes = [128, 128], strides = [1, 1]} : vector<128x384xf32> to vector<128x128xf32>
      %46 = arith.mulf %35, %45 : vector<128x128xf32>
      %47 = arith.addf %44, %46 : vector<128x128xf32>
      %48 = math.tanh %47 : vector<128x128xf32>
      %cst_26 = arith.constant 1.000000e+00 : f32
      %49 = vector.broadcast %cst_26 : f32 to vector<128x128xf32>
      %50 = arith.subf %49, %43 : vector<128x128xf32>
      %51 = arith.mulf %50, %48 : vector<128x128xf32>
      %52 = arith.mulf %43, %16 : vector<128x128xf32>
      %53 = arith.addf %51, %52 : vector<128x128xf32>
      %c0_27 = arith.constant 0 : index
      %c0_28 = arith.constant 0 : index
      %54 = vector.load %arg10[%c0_27, %c0_28] : memref<128x128xf32, #tpu.memory_space<vmem>>, vector<128x128xf32>
      tpu.vector_store %arg10[%c0_27, %c0_28], %53 {strides = array<i32>} : memref<128x128xf32, #tpu.memory_space<vmem>>, vector<128x128xf32>,
    } else {
    }
    return
  }
  func.func @transform_0(%arg0: i32, %arg1: i32) -> (i32, i32) {
    %c0_i32 = arith.constant 0 : i32
    return %arg0, %arg1 : i32, i32
  }
  func.func @transform_1(%arg0: i32, %arg1: i32) -> (i32, i32) {
    %c0_i32 = arith.constant 0 : i32
    %c0_i32_0 = arith.constant 0 : i32
    return %arg1, %c0_i32 : i32, i32
  }
  func.func @transform_2(%arg0: i32, %arg1: i32) -> (i32, i32) {
    %c0_i32 = arith.constant 0 : i32
    %c0_i32_0 = arith.constant 0 : i32
    return %arg0, %c0_i32 : i32, i32
  }
  func.func @transform_3(%arg0: i32, %arg1: i32) -> (i32, i32) {
    %c0_i32 = arith.constant 0 : i32
    %c0_i32_0 = arith.constant 0 : i32
    %c0_i32_1 = arith.constant 0 : i32
    return %c0_i32, %c0_i32_0 : i32, i32
  }
  func.func @transform_4(%arg0: i32, %arg1: i32) -> (i32, i32) {
    %c0_i32 = arith.constant 0 : i32
    %c0_i32_0 = arith.constant 0 : i32
    %c0_i32_1 = arith.constant 0 : i32
    return %c0_i32, %c0_i32_0 : i32, i32
  }
  func.func @transform_5(%arg0: i32, %arg1: i32) -> (i32, i32) {
    %c0_i32 = arith.constant 0 : i32
    %c0_i32_0 = arith.constant 0 : i32
    %c0_i32_1 = arith.constant 0 : i32
    return %c0_i32, %c0_i32_0 : i32, i32
  }
  func.func @transform_6(%arg0: i32, %arg1: i32) -> (i32, i32) {
    %c0_i32 = arith.constant 0 : i32
    %c0_i32_0 = arith.constant 0 : i32
    %c0_i32_1 = arith.constant 0 : i32
    return %c0_i32, %c0_i32_0 : i32, i32
  }
  func.func @transform_7(%arg0: i32, %arg1: i32) -> (i32, i32) {
    %c0_i32 = arith.constant 0 : i32
    %c0_i32_0 = arith.constant 0 : i32
    %c0_i32_1 = arith.constant 0 : i32
    return %c0_i32, %c0_i32_0 : i32, i32
  }
  func.func @transform_8(%arg0: i32, %arg1: i32) -> (i32, i32) {
    %c0_i32 = arith.constant 0 : i32
    %c0_i32_0 = arith.constant 0 : i32
    return %arg0, %c0_i32 : i32, i32
  }
}

module attributes {stable_mosaic.version = 11 : i64} {
  func.func @gated_graph_conv_kernel(%arg0: i32, %arg1: i32, %arg2: memref<128x256xbf16, #tpu.memory_space<vmem>>, %arg3: memref<256x128xbf16, #tpu.memory_space<vmem>>, %arg4: memref<128x128xf32, #tpu.memory_space<vmem>>, %arg5: memref<128x384xbf16, #tpu.memory_space<vmem>>, %arg6: memref<128x384xbf16, #tpu.memory_space<vmem>>, %arg7: memref<1x128xf32, #tpu.memory_space<vmem>>, %arg8: memref<1x384xf32, #tpu.memory_space<vmem>>, %arg9: memref<1x384xf32, #tpu.memory_space<vmem>>, %arg10: memref<128x128xf32, #tpu.memory_space<vmem>>, %arg11: memref<128x128xf32, #tpu.memory_space<vmem>>) attributes {dimension_semantics = [#tpu.dimension_semantics<parallel>, #tpu.dimension_semantics<arbitrary>], iteration_bounds = array<i64: 2, 3>, scalar_prefetch = 0 : i64, scratch_operands = 1 : i64, tpu.core_type = #tpu.core_type<tc>, window_params = [{transform_indices = @transform_0, window_bounds = array<i64: 128, 256>}, {transform_indices = @transform_1, window_bounds = array<i64: 256, 128>}, {transform_indices = @transform_2, window_bounds = array<i64: 128, 128>}, {pipeline_mode = #tpu.pipeline_mode<synchronous>, transform_indices = @transform_3, window_bounds = array<i64: 128, 384>}, {pipeline_mode = #tpu.pipeline_mode<synchronous>, transform_indices = @transform_4, window_bounds = array<i64: 128, 384>}, {pipeline_mode = #tpu.pipeline_mode<synchronous>, transform_indices = @transform_5, window_bounds = array<i64: 1, 128>}, {pipeline_mode = #tpu.pipeline_mode<synchronous>, transform_indices = @transform_6, window_bounds = array<i64: 1, 384>}, {pipeline_mode = #tpu.pipeline_mode<synchronous>, transform_indices = @transform_7, window_bounds = array<i64: 1, 384>}, {transform_indices = @transform_8, window_bounds = array<i64: 128, 128>}]} {
    %c0_i32 = arith.constant 0 : i32
    %0 = arith.cmpi eq, %arg1, %c0_i32 : i32
    %1 = arith.extui %0 : i1 to i32
    %c0_i32_0 = arith.constant 0 : i32
    %2 = arith.cmpi ne, %1, %c0_i32_0 : i32
    scf.if %2 {
      %c0_9 = arith.constant 0 : index
      %c0_10 = arith.constant 0 : index
      %12 = vector.load %arg7[%c0_9, %c0_10] : memref<1x128xf32, #tpu.memory_space<vmem>>, vector<1x128xf32>
      %13 = vector.shape_cast %12 : vector<1x128xf32> to vector<1x128xf32>
      %14 = vector.broadcast %13 : vector<1x128xf32> to vector<128x128xf32>
      %c0_11 = arith.constant 0 : index
      %c0_12 = arith.constant 0 : index
      %15 = vector.load %arg11[%c0_11, %c0_12] : memref<128x128xf32, #tpu.memory_space<vmem>>, vector<128x128xf32>
      tpu.vector_store %arg11[%c0_11, %c0_12], %14 {strides = array<i32>} : memref<128x128xf32, #tpu.memory_space<vmem>>, vector<128x128xf32>,
    } else {
    }
    %c0 = arith.constant 0 : index
    %c0_1 = arith.constant 0 : index
    %3 = vector.load %arg11[%c0, %c0_1] : memref<128x128xf32, #tpu.memory_space<vmem>>, vector<128x128xf32>
    %c0_2 = arith.constant 0 : index
    %c0_3 = arith.constant 0 : index
    %4 = vector.load %arg2[%c0_2, %c0_3] : memref<128x256xbf16, #tpu.memory_space<vmem>>, vector<128x256xbf16>
    %c0_4 = arith.constant 0 : index
    %c0_5 = arith.constant 0 : index
    %5 = vector.load %arg3[%c0_4, %c0_5] : memref<256x128xbf16, #tpu.memory_space<vmem>>, vector<256x128xbf16>
    %cst = arith.constant dense<0.000000e+00> : vector<128x128xf32>
    %6 = tpu.matmul %4, %5, %cst {dimension_numbers = #tpu.dot_dimension_numbers<[1], [0], [0], [1], [0, 0, 1, 1], [], []>} : vector<128x256xbf16>, vector<256x128xbf16>, vector<128x128xf32> -> vector<128x128xf32>
    %7 = arith.addf %3, %6 : vector<128x128xf32>
    %c0_6 = arith.constant 0 : index
    %c0_7 = arith.constant 0 : index
    %8 = vector.load %arg11[%c0_6, %c0_7] : memref<128x128xf32, #tpu.memory_space<vmem>>, vector<128x128xf32>
    tpu.vector_store %arg11[%c0_6, %c0_7], %7 {strides = array<i32>} : memref<128x128xf32, #tpu.memory_space<vmem>>, vector<128x128xf32>,
    %c2_i32 = arith.constant 2 : i32
    %9 = arith.cmpi eq, %arg1, %c2_i32 : i32
    %10 = arith.extui %9 : i1 to i32
    %c0_i32_8 = arith.constant 0 : i32
    %11 = arith.cmpi ne, %10, %c0_i32_8 : i32
    scf.if %11 {
      %c0_9 = arith.constant 0 : index
      %c0_10 = arith.constant 0 : index
      %12 = vector.load %arg11[%c0_9, %c0_10] : memref<128x128xf32, #tpu.memory_space<vmem>>, vector<128x128xf32>
      %cst_11 = arith.constant 0.000000e+00 : f32
      %13 = vector.broadcast %cst_11 : f32 to vector<128x128xf32>
      %14 = arith.maximumf %12, %13 : vector<128x128xf32>
      %15 = arith.truncf %14 : vector<128x128xf32> to vector<128x128xbf16>
      %c0_12 = arith.constant 0 : index
      %c0_13 = arith.constant 0 : index
      %16 = vector.load %arg4[%c0_12, %c0_13] : memref<128x128xf32, #tpu.memory_space<vmem>>, vector<128x128xf32>
      %c0_14 = arith.constant 0 : index
      %c0_15 = arith.constant 0 : index
      %17 = vector.load %arg5[%c0_14, %c0_15] : memref<128x384xbf16, #tpu.memory_space<vmem>>, vector<128x384xbf16>
      %cst_16 = arith.constant dense<0.000000e+00> : vector<128x384xf32>
      %18 = tpu.matmul %15, %17, %cst_16 {dimension_numbers = #tpu.dot_dimension_numbers<[1], [0], [0], [1], [0, 0, 1, 1], [], []>} : vector<128x128xbf16>, vector<128x384xbf16>, vector<128x384xf32> -> vector<128x384xf32>
      %c0_17 = arith.constant 0 : index
      %c0_18 = arith.constant 0 : index
      %19 = vector.load %arg8[%c0_17, %c0_18] : memref<1x384xf32, #tpu.memory_space<vmem>>, vector<1x384xf32>
      %20 = vector.broadcast %19 : vector<1x384xf32> to vector<128x384xf32>
      %21 = arith.addf %18, %20 : vector<128x384xf32>
      %22 = arith.truncf %16 : vector<128x128xf32> to vector<128x128xbf16>
      %c0_19 = arith.constant 0 : index
      %c0_20 = arith.constant 0 : index
      %23 = vector.load %arg6[%c0_19, %c0_20] : memref<128x384xbf16, #tpu.memory_space<vmem>>, vector<128x384xbf16>
      %cst_21 = arith.constant dense<0.000000e+00> : vector<128x384xf32>
      %24 = tpu.matmul %22, %23, %cst_21 {dimension_numbers = #tpu.dot_dimension_numbers<[1], [0], [0], [1], [0, 0, 1, 1], [], []>} : vector<128x128xbf16>, vector<128x384xbf16>, vector<128x384xf32> -> vector<128x384xf32>
      %c0_22 = arith.constant 0 : index
      %c0_23 = arith.constant 0 : index
      %25 = vector.load %arg9[%c0_22, %c0_23] : memref<1x384xf32, #tpu.memory_space<vmem>>, vector<1x384xf32>
      %26 = vector.broadcast %25 : vector<1x384xf32> to vector<128x384xf32>
      %27 = arith.addf %24, %26 : vector<128x384xf32>
      %28 = vector.extract_strided_slice %21 {offsets = [0, 0], sizes = [128, 128], strides = [1, 1]} : vector<128x384xf32> to vector<128x128xf32>
      %29 = vector.extract_strided_slice %27 {offsets = [0, 0], sizes = [128, 128], strides = [1, 1]} : vector<128x384xf32> to vector<128x128xf32>
      %30 = arith.addf %28, %29 : vector<128x128xf32>
      %31 = arith.negf %30 : vector<128x128xf32>
      %32 = math.exp %31 : vector<128x128xf32>
      %cst_24 = arith.constant 1.000000e+00 : f32
      %33 = vector.broadcast %cst_24 : f32 to vector<128x128xf32>
      %34 = arith.addf %33, %32 : vector<128x128xf32>
      %35 = arith.divf %33, %34 : vector<128x128xf32>
      %36 = vector.extract_strided_slice %21 {offsets = [0, 128], sizes = [128, 128], strides = [1, 1]} : vector<128x384xf32> to vector<128x128xf32>
      %37 = vector.extract_strided_slice %27 {offsets = [0, 128], sizes = [128, 128], strides = [1, 1]} : vector<128x384xf32> to vector<128x128xf32>
      %38 = arith.addf %36, %37 : vector<128x128xf32>
      %39 = arith.negf %38 : vector<128x128xf32>
      %40 = math.exp %39 : vector<128x128xf32>
      %cst_25 = arith.constant 1.000000e+00 : f32
      %41 = vector.broadcast %cst_25 : f32 to vector<128x128xf32>
      %42 = arith.addf %41, %40 : vector<128x128xf32>
      %43 = arith.divf %41, %42 : vector<128x128xf32>
      %44 = vector.extract_strided_slice %21 {offsets = [0, 256], sizes = [128, 128], strides = [1, 1]} : vector<128x384xf32> to vector<128x128xf32>
      %45 = vector.extract_strided_slice %27 {offsets = [0, 256], sizes = [128, 128], strides = [1, 1]} : vector<128x384xf32> to vector<128x128xf32>
      %46 = arith.mulf %35, %45 : vector<128x128xf32>
      %47 = arith.addf %44, %46 : vector<128x128xf32>
      %48 = math.tanh %47 : vector<128x128xf32>
      %cst_26 = arith.constant 1.000000e+00 : f32
      %49 = vector.broadcast %cst_26 : f32 to vector<128x128xf32>
      %50 = arith.subf %49, %43 : vector<128x128xf32>
      %51 = arith.mulf %50, %48 : vector<128x128xf32>
      %52 = arith.mulf %43, %16 : vector<128x128xf32>
      %53 = arith.addf %51, %52 : vector<128x128xf32>
      %c0_27 = arith.constant 0 : index
      %c0_28 = arith.constant 0 : index
      %54 = vector.load %arg10[%c0_27, %c0_28] : memref<128x128xf32, #tpu.memory_space<vmem>>, vector<128x128xf32>
      tpu.vector_store %arg10[%c0_27, %c0_28], %53 {strides = array<i32>} : memref<128x128xf32, #tpu.memory_space<vmem>>, vector<128x128xf32>,
    } else {
    }
    return
  }
  func.func @transform_0(%arg0: i32, %arg1: i32) -> (i32, i32) {
    %c0_i32 = arith.constant 0 : i32
    return %arg0, %arg1 : i32, i32
  }
  func.func @transform_1(%arg0: i32, %arg1: i32) -> (i32, i32) {
    %c0_i32 = arith.constant 0 : i32
    %c0_i32_0 = arith.constant 0 : i32
    return %arg1, %c0_i32 : i32, i32
  }
  func.func @transform_2(%arg0: i32, %arg1: i32) -> (i32, i32) {
    %c0_i32 = arith.constant 0 : i32
    %c0_i32_0 = arith.constant 0 : i32
    return %arg0, %c0_i32 : i32, i32
  }
  func.func @transform_3(%arg0: i32, %arg1: i32) -> (i32, i32) {
    %c0_i32 = arith.constant 0 : i32
    %c0_i32_0 = arith.constant 0 : i32
    %c0_i32_1 = arith.constant 0 : i32
    return %c0_i32, %c0_i32_0 : i32, i32
  }
  func.func @transform_4(%arg0: i32, %arg1: i32) -> (i32, i32) {
    %c0_i32 = arith.constant 0 : i32
    %c0_i32_0 = arith.constant 0 : i32
    %c0_i32_1 = arith.constant 0 : i32
    return %c0_i32, %c0_i32_0 : i32, i32
  }
  func.func @transform_5(%arg0: i32, %arg1: i32) -> (i32, i32) {
    %c0_i32 = arith.constant 0 : i32
    %c0_i32_0 = arith.constant 0 : i32
    %c0_i32_1 = arith.constant 0 : i32
    return %c0_i32, %c0_i32_0 : i32, i32
  }
  func.func @transform_6(%arg0: i32, %arg1: i32) -> (i32, i32) {
    %c0_i32 = arith.constant 0 : i32
    %c0_i32_0 = arith.constant 0 : i32
    %c0_i32_1 = arith.constant 0 : i32
    return %c0_i32, %c0_i32_0 : i32, i32
  }
  func.func @transform_7(%arg0: i32, %arg1: i32) -> (i32, i32) {
    %c0_i32 = arith.constant 0 : i32
    %c0_i32_0 = arith.constant 0 : i32
    %c0_i32_1 = arith.constant 0 : i32
    return %c0_i32, %c0_i32_0 : i32, i32
  }
  func.func @transform_8(%arg0: i32, %arg1: i32) -> (i32, i32) {
    %c0_i32 = arith.constant 0 : i32
    %c0_i32_0 = arith.constant 0 : i32
    return %arg0, %c0_i32 : i32, i32
  }
}

</mosaic_0001>

<bundles_post_ra>
// kernel: tpu_custom_call.1
= control target key start
LH: loop header
LB: loop body
LE: loop exit
PB: predicated region body
PF: predicated region fallthrough
CT: control target
= control target key end

     0   :  { %s4189_s0 = inlined_call_operand.hbm [shape: bf16[256,768], index: 0, kind: input, shape index: {}]   ;;  %s4190_s1 = inlined_call_operand.hbm [shape: bf16[768,128], index: 1, kind: input, shape index: {}]   ;;  %s4191_s2 = inlined_call_operand.hbm [shape: f32[256,128], index: 2, kind: input, shape index: {}]   ;;  %s4192_s3 = inlined_call_operand.hbm [shape: bf16[128,384], index: 3, kind: input, shape index: {}]   ;;  %s4193_s4 = inlined_call_operand.hbm [shape: bf16[128,384], index: 4, kind: input, shape index: {}]   ;;  %s4194_s5 = inlined_call_operand.vmem [shape: f32[1,128], index: 5, kind: input, shape index: {}]   ;;  %s4195_s6 = inlined_call_operand.vmem [shape: f32[1,384], index: 6, kind: input, shape index: {}]   ;;  %s4196_s7 = inlined_call_operand.vmem [shape: f32[1,384], index: 7, kind: input, shape index: {}]   ;;  %s4197_s8 = inlined_call_operand.hbm [shape: f32[256,128], index: 8, kind: output, shape index: {}]  }
   0x1   :  { %4214 = sst [smem:[#allocation31_spill]] %s4190_s1 }
   0x2   :  { %4215 = sst [smem:[#allocation32_spill]] %s4192_s3 }
   0x3   :  { %4216 = sst [smem:[#allocation33_spill]] %s4193_s4 }
   0x4   :  { %4217 = sst [smem:[#allocation34_spill]] %s4194_s5 }
   0x5   :  { %4218 = sst [smem:[#allocation35_spill]] %s4195_s6 }
   0x6   :  { %4219 = sst [smem:[#allocation36_spill]] %s4196_s7 }
   0x7   :  { %4220 = sst [smem:[#allocation37_spill]] %s4197_s8 }
   0x8   :  { %13 = vsyncpa [#allocation4], 0 }
   0x9   :  { %15 = vsyncpa [#allocation4 + $0x1], 0 }
   0xa   :  { %16 = vsyncpa [#allocation7], 0 }
   0xb   :  { %18 = vsyncpa [#allocation7 + $0x1], 0 }
   0xc   :  { %19 = vsyncpa [#allocation10], 0 }
   0xd   :  { %20 = vsyncpa [#allocation5], 0 }
   0xe   :  { %22 = vsyncpa [#allocation5 + $0x1], 0  ;;  %s3324_s27 = smov 0   ;;  %s3326_s28 = smov 0  }
   0xf   :  { %s3328_s29 = smov 0   ;;  %s3330_s30 = smov 0  }
  0x10   :  { %s3332_s9 = smov 0   ;;  %s3334_s10 = smov 0  }
  0x11   :  { %s3336_s11 = smov 0   ;;  %s3338_s12 = smov 0  }
  0x12   :  { %s3340_s13 = smov 0   ;;  %s3342_s14 = smov 0  }
  0x13   :  { %s3344_s15 = smov 0   ;;  %s3346_s16 = smov 0  }
  0x14   :  { %s3348_s17 = smov 0   ;;  %s3350_s18 = smov 0  }
  0x15 LB: > { %4221 = sst [smem:[#allocation18_spill]] %s3225_s9  ;;  %s3395_s19 = sadd.s32 4294967295, %s3261_s18   ;;  %s3261_s18 = sphi %s3350_s18, %s28_s18   ;;  %s3257_s17 = sphi %s3348_s17, %s4297_s17   ;;  %s3253_s16 = sphi %s3346_s16, %s4296_s16   ;;  %s3249_s15 = sphi %s3344_s15, %s4295_s15   ;;  %s3245_s14 = sphi %s3342_s14, %s4294_s14   ;;  %s3241_s13 = sphi %s3340_s13, %s4293_s13   ;;  %s3237_s12 = sphi %s3338_s12, %s4292_s12   ;;  %s3233_s11 = sphi %s3336_s11, %s4291_s11   ;;  %s3229_s10 = sphi %s3334_s10, %s4290_s10   ;;  %s3225_s9 = sphi %s3332_s9, %s4289_s9   ;;  %s3221_s30 = sphi %s3330_s30, %s4282_s30   ;;  %s3217_s29 = sphi %s3328_s29, %s4288_s29   ;;  %s3213_s28 = sphi %s3326_s28, %s4287_s28   ;;  %s3209_s27 = sphi %s3324_s27, %s4286_s27  }
  0x16   : > { %4222 = sst [smem:[#allocation19_spill]] %s3245_s14  ;;  %p2208_p0 = scmp.ge.s32.totalorder %s3261_s18, 1 }
  0x17   : > { %4223 = sst [smem:[#allocation20_spill]] %s3249_s15  ;;  %p4207_p1 = scmp.eq.s32.totalorder %s3395_s19, 0 }
  0x18   : > { %p256_p3 = scmp.lt.s32.totalorder %s3261_s18, 7  ;;  %s3263_s21 = smov [#allocation9]  }
  0x19   : > { %s268_s22 = sshll.u32 %s3263_s21, 4  ;;  %s269_s22 = int_to_ptr.vmem [resolvable:$true] %s268_s22 }
  0x1a   : > { %p3401_p4 = pnand %p2208_p0, %p256_p3  ;;  %s2980_s24 = scalar_lea.vmem %s269_s22, 3072 }
  0x1b   : > { %p2981_p8 = scmp.ne.s32.totalorder %s269_s22, %s2980_s24  ;;  %p2988_p11 = scmp.lt.s32.totalorder %s269_s22, %s269_s22 }
  0x1c   : > { %s4224_s20 = scalar_select %p3401_p4, 1, 0 }
  0x1d   : > { %p2546_p5 = pneg %p3401_p4  ;;  %p2989_p12 = scmp.lt.s32.totalorder %s2980_s24, %s2980_s24 }
  0x1e   : > { %4225 = sst [smem:[#allocation21_spill]] %s4224_s20 }
  0x1f   : > { %p3409_p6 = pnand %p2546_p5, %p4207_p1  ;;  %p2990_p13 = por %p2989_p12, %p2988_p11 }
  0x21   : > { %p2971_p7 = pneg %p3409_p6 }
  0x23   : > { %p2983_p9 = pnand %p2981_p8, %p2971_p7 }
  0x25   : > { %p2984_p10 = pneg %p2983_p9 }
  0x27   : > { %p2991_p0 = pnand %p2990_p13, %p2984_p10 }
  0x29   : > { %2994 = shalt.err (!%p2991_p0)
}
  0x2a   : > { %s4199_s25 = smov 192   ;;  %s4200_s26 = smov 12  }
  0x2b   : > { %s4227_s3 = sld [smem:[#allocation32_spill]]  ;;  %s37_s8 = sadd.s32 1, %s3253_s16 }
  0x2c   : > { %s40_s15 = sadd.s32 1, %s3257_s17  ;;  %p38_p3 = scmp.ge.s32.totalorder %s37_s8, 3 }
  0x2d   : > { %p4208_p5 = scmp.eq.s32.totalorder %s3261_s18, 0  ;;  %s75_s7 = sadd.s32 1, %s3229_s10 }
  0x2e   : > { %p82_p8 = scmp.ne.s32.totalorder %s3229_s10, %s3225_s9  ;;  %s4299_s8 = smov (%p38_p3, %s37_s8), 0 }
  0x2f   : > { %4228 = sst [smem:[#allocation22_spill]] %s4299_s8  ;;  %s4301_s15 = smov (!%p38_p3, %s40_s15), %s3257_s17 }
  0x30   : > { %s45_s6 = ssub.s32 %s3253_s16, %s4299_s8  ;;  %p3439_p9 = por %p82_p8, %p4208_p5 }
  0x31   : > { %2549 = dma.hbm_to_vmem [thread:$0]  (!%p3409_p6), %s4227_s3, 3072, %s269_s22, [#allocation10], %s4199_s25, %s4199_s25, %s4200_s26  }
  0x32   : > { %p42_p10 = scmp.ge.s32.totalorder %s4301_s15, 2  ;;  %p73_p11 = scmp.eq.s32.totalorder %s45_s6, 0 }
  0x33   : > { %p88_p12 = scmp.ne.s32.totalorder %s3225_s9, %s3221_s30  ;;  %p4209_p13 = scmp.lt.s32.totalorder %s3261_s18, 6 }
  0x34   : > { %s4303_s15 = smov (%p42_p10, %s4301_s15), 0  ;;  %s328_s3 = sand.u32 1, %s3261_s18  }
  0x35   : > { %4230 = sst [smem:[#allocation23_spill]] %s4303_s15  ;;  %s3453_s24 = ssub.s32 %s3257_s17, %s4303_s15 }
  0x36   : > { %s3449_s21 = scalar_select %p73_p11, %s3229_s10, %s75_s7  }
  0x37   : > { %p3457_p0 = por %p88_p12, %p4207_p1  ;;  %s46_s26 = sor.u32 %s45_s6, %s3453_s24 }
  0x38   : > { %4231 = sst [smem:[#allocation24_spill]] %s3449_s21  ;;  %p3463_p8 = scmp.eq.s32.totalorder %s46_s26, 0 }
  0x39   : > { %s4232_s25 = scalar_select %p3457_p0, 1, 0 }
  0x3a   : > { %s330_s8 = sand.u32 1, %s3229_s10   ;;  %s2350_s7 = sshll.u32 %s3253_s16, 11 }
  0x3b   : > { %4233 = sst [smem:[#allocation25_spill]] %s4232_s25  ;;  %s2217_s5 = sshll.u32 %s330_s8, 7 }
  0x3c   : > { %s4235_s1 = sld [smem:[#allocation31_spill]]  ;;  %s332_s9 = scalar_lea.vmem [#allocation6], %s2217_s5 }
  0x3d   : > { %s339_s20 = sshll.u32 %s332_s9, 4  ;;  %p3477_p10 = pnand %p4209_p13, %p3439_p9  ;;  %s340_s20 = int_to_ptr.vmem [resolvable:$true] %s339_s20 }
  0x3e   : > { %s3481_s6 = scalar_lea.sflag [#allocation7], %s328_s3  ;;  %s3008_s8 = scalar_lea.vmem %s340_s20, 2048 }
  0x3f   : > { %p2997_p11 = pneg %p3477_p10  ;;  %p3009_p12 = scmp.ne.s32.totalorder %s340_s20, %s3008_s8 }
  0x40   : > { %s3266_s15 = smov [#allocation6]  }
  0x41   : > { %p3011_p2 = pnand %p3009_p12, %p2997_p11  ;;  %s3013_s26 = sshll.u32 %s3266_s15, 4  ;;  %s3014_s26 = int_to_ptr.vmem [resolvable:$false] %s3013_s26 }
  0x42   : > { %s338_s14 = scalar_lea.hbm %s4235_s1, %s2350_s7  ;;  %s3015_s5 = scalar_lea.vmem %s3014_s26, 4096 }
  0x43   : > { %p3012_p3 = pneg %p3011_p2  ;;  %p3016_p1 = scmp.lt.s32.totalorder %s340_s20, %s3014_s26 }
  0x44   : > { %p3017_p5 = scmp.lt.s32.totalorder %s3015_s5, %s3008_s8 }
  0x46   : > { %p3018_p9 = por %p3017_p5, %p3016_p1 }
  0x48   : > { %p3019_p13 = pnand %p3018_p9, %p3012_p3 }
  0x4a   : > { %3022 = shalt.err (!%p3019_p13)
}
  0x4b   : > { %s3267_s9 = smov 64   ;;  %s3268_s3 = smov 4  }
  0x4c   : > { %2559 = dma.hbm_to_vmem [thread:$0]  (!%p3477_p10), %s338_s14, 2048, %s340_s20, %s3481_s6, %s3267_s9, %s3267_s9, %s3268_s3  }
  0x4d   : > { %s3269_s22 = smov [#allocation11]  }
  0x4e   : > { %s281_s21 = sshll.u32 %s3269_s22, 4  ;;  %s282_s21 = int_to_ptr.vmem [resolvable:$true] %s281_s21 }
  0x4f   : > { %s3034_s7 = scalar_lea.vmem %s282_s21, 3072  ;;  %p3042_p0 = scmp.lt.s32.totalorder %s282_s21, %s282_s21 }
  0x50   : > { %p3035_p2 = scmp.ne.s32.totalorder %s282_s21, %s3034_s7  ;;  %p3043_p1 = scmp.lt.s32.totalorder %s3034_s7, %s3034_s7 }
  0x52   : > { %p3037_p11 = pnand %p3035_p2, %p2971_p7  ;;  %p3044_p5 = por %p3043_p1, %p3042_p0 }
  0x54   : > { %p3038_p12 = pneg %p3037_p11 }
  0x56   : > { %p3045_p13 = pnand %p3044_p5, %p3038_p12 }
  0x58   : > { %3048 = shalt.err (!%p3045_p13)
}
  0x59   : > { %s4237_s8 = smov 12   ;;  %s4238_s15 = smov 192  }
  0x5a   : > { %s4239_s4 = sld [smem:[#allocation33_spill]]  ;;  %s49_s23 = sadd.s32 1, %s3241_s13 }
  0x5b   : > { %s3503_s25 = scalar_select %p3463_p8, %s3241_s13, %s49_s23  }
  0x5c   : > { %p56_p7 = scmp.ne.s32.totalorder %s3241_s13, %s3237_s12  ;;  %p62_p0 = scmp.ne.s32.totalorder %s3237_s12, %s3233_s11 }
  0x5d   : > { %s304_s26 = sand.u32 1, %s3241_s13   ;;  %s2214_s5 = sshll.u32 %s3253_s16, 1 }
  0x5e   : > { %p4240_p3 = scmp.eq.s32.totalorder %s3261_s18, 0  ;;  %p4241_p9 = scmp.eq.s32.totalorder %s3395_s19, 0 }
  0x5f   : > { %s2212_s3 = sshll.u32 %s304_s26, 7  ;;  %s2529_s22 = smul.u32 96, %s3257_s17 }
  0x60   : > { %2552 = dma.hbm_to_vmem [thread:$0]  (!%p3409_p6), %s4239_s4, 3072, %s282_s21, [#allocation10], %s4238_s15, %s4238_s15, %s4237_s8  }
  0x61   : > { %p58_p10 = por %p4240_p3, %p56_p7  ;;  %p3515_p2 = por %p4241_p9, %p62_p0 }
  0x62   : > { %s308_s7 = scalar_lea.vmem [#allocation3], %s2212_s3  ;;  %p4243_p6 = scmp.lt.s32.totalorder %s3261_s18, 6 }
  0x63   : > { %s318_s14 = sshll.u32 %s308_s7, 4  ;;  %s315_s11 = sadd.s32 %s2529_s22, %s2214_s5  ;;  %s319_s14 = int_to_ptr.vmem [resolvable:$true] %s318_s14 }
  0x64   : > { %p3522_p11 = pnand %p4243_p6, %p58_p10  ;;  %s2216_s21 = sshll.u32 %s315_s11, 6 }
  0x65   : > { %s317_s20 = scalar_lea.hbm %s4189_s0, %s2216_s21  ;;  %s305_s23 = scalar_lea.sflag [#allocation4], %s304_s26 }
  0x66   : > { %p3051_p8 = pneg %p3522_p11  ;;  %s3062_s1 = scalar_lea.vmem %s319_s14, 2048 }
  0x67   : > { %p3063_p12 = scmp.ne.s32.totalorder %s319_s14, %s3062_s1  ;;  %s3270_s3 = smov [#allocation3]  }
  0x68   : > { %s3067_s7 = sshll.u32 %s3270_s3, 4  ;;  %s3068_s7 = int_to_ptr.vmem [resolvable:$false] %s3067_s7 }
  0x69   : > { %p3065_p1 = pnand %p3063_p12, %p3051_p8  ;;  %s3069_s4 = scalar_lea.vmem %s3068_s7, 4096 }
  0x6a   : > { %p3070_p13 = scmp.lt.s32.totalorder %s319_s14, %s3068_s7  ;;  %p3071_p7 = scmp.lt.s32.totalorder %s3069_s4, %s3062_s1 }
  0x6b   : > { %p3066_p5 = pneg %p3065_p1 }
  0x6c   : > { %p3072_p0 = por %p3071_p7, %p3070_p13 }
  0x6e   : > { %p3073_p3 = pnand %p3072_p0, %p3066_p5 }
  0x70   : > { %3076 = shalt.err (!%p3073_p3)
}
  0x71   : > { %s3271_s5 = smov 384   ;;  %s4211_s26 = smov 128  }
  0x72   : > { %s3273_s1 = smov 8   ;;  %s2207_s4 = sadd.s32 4294967294, %s3261_s18  }
  0x73   : > { %2556 = dma.hbm_to_vmem [thread:$0]  (!%p3522_p11), %s317_s20, 2048, %s319_s14, %s305_s23, %s3271_s5, %s4211_s26, %s3273_s1  }
  0x74   : > { %s101_s22 = sadd.s32 1, %s3217_s29  ;;  %p4245_p10 = scmp.eq.s32.totalorder %s3453_s24, 0 }
  0x75   : > { %p108_p9 = scmp.ne.s32.totalorder %s3217_s29, %s3213_s28  ;;  %p114_p6 = scmp.ne.s32.totalorder %s3213_s28, %s3209_s27 }
  0x76   : > { %s3540_s11 = scalar_select %p4245_p10, %s3217_s29, %s101_s22  }
  0x77   : > { %p249_p8 = scmp.eq.s32.totalorder %s2207_s4, 5  ;;  %s351_s21 = sand.u32 1, %s3217_s29  }
  0x78   : > { %p4246_p12 = scmp.eq.s32.totalorder %s3261_s18, 0  ;;  %p4247_p5 = scmp.eq.s32.totalorder %s3395_s19, 0 }
  0x79   : > { %p4249_p7 = scmp.eq.s32.totalorder %s3395_s19, 5  ;;  %p3561_p11 = por %p249_p8, %p114_p6 }
  0x7a   : > { %p110_p1 = por %p108_p9, %p4246_p12  ;;  %p3551_p13 = por %p114_p6, %p4247_p5 }
  0x7b   : > { %p3557_p0 = por %p4249_p7, %p108_p9  ;;  %s2220_s30 = sshll.u32 %s351_s21, 7 }
  0x7c   : > { %s4251_s24 = scalar_select %p3561_p11, 1, 0 }
  0x7d   : > { %s4250_s14 = scalar_select %p3557_p0, 1, 0 }
  0x7e   : > { %s2351_s15 = sshll.u32 %s3257_s17, 11  ;;  %s353_s7 = scalar_lea.vmem [#allocation8], %s2220_s30 }
  0x7f   : > { %s359_s3 = scalar_lea.hbm %s4191_s2, %s2351_s15  ;;  %s360_s5 = sshll.u32 %s353_s7, 4  ;;  %s361_s5 = int_to_ptr.vmem [resolvable:$true] %s360_s5 }
  0x80   : > { %p4252_p3 = scmp.lt.s32.totalorder %s3261_s18, 6  ;;  %s3090_s22 = scalar_lea.vmem %s361_s5, 2048 }
  0x81   : > { %p3091_p6 = scmp.ne.s32.totalorder %s361_s5, %s3090_s22  ;;  %s3274_s21 = smov [#allocation8]  }
  0x82   : > { %p3571_p10 = pnand %p4252_p3, %p110_p1  ;;  %s3095_s26 = sshll.u32 %s3274_s21, 4  ;;  %s3096_s26 = int_to_ptr.vmem [resolvable:$false] %s3095_s26 }
  0x83   : > { %s3097_s20 = scalar_lea.vmem %s3096_s26, 4096  ;;  %p3098_p5 = scmp.lt.s32.totalorder %s361_s5, %s3096_s26 }
  0x84   : > { %p3079_p9 = pneg %p3571_p10  ;;  %p3099_p7 = scmp.lt.s32.totalorder %s3097_s20, %s3090_s22 }
  0x86   : > { %p3093_p8 = pnand %p3091_p6, %p3079_p9  ;;  %p3100_p11 = por %p3099_p7, %p3098_p5 }
  0x88   : > { %p3094_p12 = pneg %p3093_p8 }
  0x8a   : > { %p3101_p0 = pnand %p3100_p11, %p3094_p12 }
  0x8c   : > { %3104 = shalt.err (!%p3101_p0)
}
  0x8d   : > { %s4254_s30 = smov 128   ;;  %372 = sbr.rel (%p3401_p4) target bundleno = 862 (0x35e), region = 52 }
  0x8e   : > { %2562 = dma.hbm_to_vmem [thread:$0]  (!%p3571_p10), %s359_s3, 2048, %s361_s5, %s3481_s6, %s4254_s30, %s4254_s30, %s3273_s1  }
  0x8f   : > { %s374_s23 = sand.u32 (!%p3401_p4), 1, %s3237_s12  }
  0x90   : > { %s2224_s7 = sshll.u32 (!%p3401_p4), %s374_s23, 7  ;;  %s375_s21 = scalar_lea.sflag (!%p3401_p4), [#allocation4], %s374_s23 }
  0x91   : > { %s3586_s26 = scalar_lea.vmem (!%p3401_p4), [#allocation3], %s2224_s7 }
  0x92   : > { %3188 = dma.done.wait (%p3515_p2), %s375_s21, 2048  }
  0x93   : > { %3190 = vsyncadd (%p3515_p2), %s375_s21, 4294965248  ;;  %s4256_s4 = sld [smem:[#allocation18_spill]]  ;;  %s383_s20 = sand.u32 1, %s3395_s19  }
  0x94   : > { %s4257_s22 = sld [smem:[#allocation25_spill]]  ;;  %s384_s3 = scalar_lea.sflag [#allocation7], %s383_s20 }
  0x99   : > { %s385_s6 = sand.u32 1, %s4256_s4  }
  0x9a   : > { %s2225_s1 = sshll.u32 %s385_s6, 7  ;;  %p4258_p4 = scmp.ne.s32.totalorder %s4257_s22, 0 }
  0x9b   : > { %s3594_s5 = scalar_lea.vmem [#allocation6], %s2225_s1 }
  0x9c   : > { %3192 = dma.done.wait (%p4258_p4), %s384_s3, 2048  }
  0x9d   : > { %3194 = vsyncadd (%p4258_p4), %s384_s3, 4294965248  ;;  %s394_s30 = sand.u32 1, %s3213_s28  }
  0x9e   : > { %s2226_s9 = sshll.u32 %s394_s30, 7 }
  0x9f   : > { %s3603_s15 = scalar_lea.vmem [#allocation8], %s2226_s9 }
  0xa0   : > { %3196 = dma.done.wait (%p3551_p13), %s384_s3, 2048  }
  0xa1   : > { %3198 = vsyncadd (%p3551_p13), %s384_s3, 4294965248  ;;  %p4259_p2 = scmp.eq.s32.totalorder %s3395_s19, 0 }
  0xa3   : > { %3200 = dma.done.wait (%p4259_p2), [#allocation10], 6144   ;;  %p4260_p1 = pmov %p4259_p2 }
  0xa4   : > { %s3613_s23 = scalar_lea.vmem [#allocation12], %s2226_s9  ;;  %s4261_s7 = sld [smem:[#allocation19_spill]] }
  0xa5   : > { %3202 = vsyncadd (%p4260_p1), [#allocation10], 4294961152 }
  0xaa   : > { %p2230_p0 = scmp.ne.s32.totalorder %s4261_s7, 0 }
  0xab   : > { %s4262_s22 = sld [smem:[#allocation34_spill]] (!%p2230_p0) }
  0xac   : > { %456 = sbr.rel (%p2230_p0) target bundleno = 186 (0xba), region = 76 }
  0xb1   : > { %v2231_v0 = vld [vmem:[%s4262_s22] ss:$0 sm:$0xff] }
  0xb2   : > { %464 = vst [vmem:[#allocation2 + $0x30] sm:$0xff] %v2231_v0  ;;  %465 = vst [vmem:[#allocation2] sm:$0xff] %v2231_v0 }
  0xb3   : > { %466 = vst [vmem:[#allocation2 + $0x58] sm:$0xff] %v2231_v0  ;;  %467 = vst [vmem:[#allocation2 + $0x18] sm:$0xff] %v2231_v0 }
  0xb4   : > { %468 = vst [vmem:[#allocation2 + $0x50] sm:$0xff] %v2231_v0  ;;  %469 = vst [vmem:[#allocation2 + $0x68] sm:$0xff] %v2231_v0 }
  0xb5   : > { %470 = vst [vmem:[#allocation2 + $0x8] sm:$0xff] %v2231_v0  ;;  %471 = vst [vmem:[#allocation2 + $0x48] sm:$0xff] %v2231_v0 }
  0xb6   : > { %472 = vst [vmem:[#allocation2 + $0x40] sm:$0xff] %v2231_v0  ;;  %473 = vst [vmem:[#allocation2 + $0x20] sm:$0xff] %v2231_v0 }
  0xb7   : > { %474 = vst [vmem:[#allocation2 + $0x10] sm:$0xff] %v2231_v0  ;;  %475 = vst [vmem:[#allocation2 + $0x38] sm:$0xff] %v2231_v0 }
  0xb8   : > { %476 = vst [vmem:[#allocation2 + $0x60] sm:$0xff] %v2231_v0  ;;  %477 = vst [vmem:[#allocation2 + $0x70] sm:$0xff] %v2231_v0 }
  0xb9   : > { %478 = vst [vmem:[#allocation2 + $0x78] sm:$0xff] %v2231_v0  ;;  %479 = vst [vmem:[#allocation2 + $0x28] sm:$0xff] %v2231_v0 }
  0xba PF: > { %v2697_v1 = vld [vmem:[%s3594_s5 + $0x78] sm:$0xff]   ;;  %v2699_v3 = vld [vmem:[%s3594_s5 + $0x70] sm:$0xff]   ;;  %v2701_v5 = vld [vmem:[%s3594_s5 + $0x68] sm:$0xff]   ;;  %s4263_s19 = sld [smem:[#allocation19_spill]] }
  0xbb   : > { %v2698_v2 = vld [vmem:[%s3594_s5 + $0x38] sm:$0xff]   ;;  %2353 = vmatprep.subr.bf16.mxu0 %v2697_v1  ;;  %2513 = vmatprep.subr.bf16.mxu1 %v2697_v1  ;;  %v2700_v4 = vld [vmem:[%s3594_s5 + $0x30] sm:$0xff]   ;;  %v2702_v6 = vld [vmem:[%s3594_s5 + $0x28] sm:$0xff]  }
  0xbc   : > { %2354 = vmatpush3.bf16.msra.mxu0 %v2698_v2  ;;  %2521 = vmatpush3.bf16.msra.mxu1 %v2698_v2  ;;  %v2703_v7 = vld [vmem:[%s3594_s5 + $0x60] sm:$0xff]   ;;  %v2705_v9 = vld [vmem:[%s3594_s5 + $0x58] sm:$0xff]   ;;  %v2707_v11 = vld [vmem:[%s3594_s5 + $0x50] sm:$0xff]  }
  0xbd   : > { %2355 = vmatprep.subr.bf16.mxu0 %v2699_v3  ;;  %2514 = vmatprep.subr.bf16.mxu1 %v2699_v3  ;;  %v2704_v8 = vld [vmem:[%s3594_s5 + $0x20] sm:$0xff]   ;;  %v2706_v10 = vld [vmem:[%s3594_s5 + $0x18] sm:$0xff]   ;;  %v2708_v14 = vld [vmem:[%s3594_s5 + $0x10] sm:$0xff]  }
  0xbe   : > { %v2715_v12 = vld [vmem:[%s3586_s26 + $0x4] ss:$8 sps:$4 sm:$0xff]   ;;  %v2713_v19 = vld [vmem:[%s3586_s26] ss:$8 sps:$4 sm:$0xff]   ;;  %v2719_v21 = vld [vmem:[%s3586_s26 + $0x14] ss:$8 sps:$4 sm:$0xff]  }
  0xbf   : > { %v2718_v13 = vld [vmem:[%s3586_s26 + $0x44] ss:$8 sps:$4 sm:$0xff]   ;;  %752 = vmatprep.mubr.bf16.mxu0 %v2715_v12  ;;  %v2716_v20 = vld [vmem:[%s3586_s26 + $0x40] ss:$8 sps:$4 sm:$0xff]   ;;  %v2721_v22 = vld [vmem:[%s3586_s26 + $0x54] ss:$8 sps:$4 sm:$0xff]  }
  0xc0   : > { %2356 = vmatpush3.bf16.msra.mxu0 %v2700_v4  ;;  %2522 = vmatpush3.bf16.msra.mxu1 %v2700_v4  ;;  %v2709_v15 = vld [vmem:[%s3594_s5 + $0x48] sm:$0xff]   ;;  %v2711_v17 = vld [vmem:[%s3594_s5 + $0x40] sm:$0xff]   ;;  %v2723_v23 = vld [vmem:[%s3586_s26 + $0x10] ss:$8 sps:$4 sm:$0xff]   ;;  %p2264_p13 = scmp.ne.s32.totalorder %s4263_s19, 2 }
  0xc1   : > { %2357 = vmatprep.subr.bf16.mxu0 %v2701_v5  ;;  %2515 = vmatprep.subr.bf16.mxu1 %v2701_v5  ;;  %v2710_v16 = vld [vmem:[%s3594_s5 + $0x8] sm:$0xff]   ;;  %v2712_v18 = vld [vmem:[%s3594_s5] sm:$0xff]   ;;  %v2724_v24 = vld [vmem:[%s3586_s26 + $0x50] ss:$8 sps:$4 sm:$0xff]  }
  0xc2   : > { %784 = vmatprep.mubr.bf16.mxu1 %v2718_v13  ;;  %v2725_v25 = vld [vmem:[%s3586_s26 + $0x24] ss:$8 sps:$4 sm:$0xff]   ;;  %v2729_v27 = vld [vmem:[%s3586_s26 + $0x20] ss:$8 sps:$4 sm:$0xff]   ;;  %v2731_v29 = vld [vmem:[%s3586_s26 + $0x34] ss:$8 sps:$4 sm:$0xff]  }
  0xc3   : > { %v2727_v26 = vld [vmem:[%s3586_s26 + $0x64] ss:$8 sps:$4 sm:$0xff]   ;;  %v2730_v28 = vld [vmem:[%s3586_s26 + $0x60] ss:$8 sps:$4 sm:$0xff]   ;;  %v2733_v30 = vld [vmem:[%s3586_s26 + $0x74] ss:$8 sps:$4 sm:$0xff]  }
  0xc4   : > { %2358 = vmatpush3.bf16.msra.mxu0 %v2702_v6  ;;  %2523 = vmatpush3.bf16.msra.mxu1 %v2702_v6  ;;  %v2735_v31 = vld [vmem:[%s3586_s26 + $0x30] ss:$8 sps:$4 sm:$0xff]   ;;  %v488_v37 = vld [vmem:[#allocation2 + $0x40] sm:$0xff] }
  0xc5   : > { %2359 = vmatprep.subr.bf16.mxu0 %v2703_v7  ;;  %2516 = vmatprep.subr.bf16.mxu1 %v2703_v7  ;;  %v2736_v32 = vld [vmem:[%s3586_s26 + $0x70] ss:$8 sps:$4 sm:$0xff]   ;;  %v481_v45 = vld [vmem:[#allocation2] sm:$0xff] }
  0xc6   : > { %v480_v35 = vld [vmem:[#allocation2 + $0x30] sm:$0xff]  ;;  %v489_v47 = vld [vmem:[#allocation2 + $0x20] sm:$0xff]  ;;  %v482_v55 = vld [vmem:[#allocation2 + $0x58] sm:$0xff] }
  0xc7   : > { %v490_v57 = vld [vmem:[#allocation2 + $0x10] sm:$0xff]  ;;  %v483_v1 = vld [vmem:[#allocation2 + $0x18] sm:$0xff]  ;;  %v492_v13 = vld [vmem:[#allocation2 + $0x60] sm:$0xff] }
  0xc8   : > { %2360 = vmatpush3.bf16.msra.mxu0 %v2704_v8  ;;  %2524 = vmatpush3.bf16.msra.mxu1 %v2704_v8  ;;  %v491_v3 = vld [vmem:[#allocation2 + $0x38] sm:$0xff] }
  0xc9   : > { %2361 = vmatprep.subr.bf16.mxu0 %v2705_v9  ;;  %2517 = vmatprep.subr.bf16.mxu1 %v2705_v9 }
  0xcc   : > { %2362 = vmatpush3.bf16.msra.mxu0 %v2706_v10  ;;  %2525 = vmatpush3.bf16.msra.mxu1 %v2706_v10 }
  0xcd   : > { %2363 = vmatprep.subr.bf16.mxu0 %v2707_v11  ;;  %2518 = vmatprep.subr.bf16.mxu1 %v2707_v11  ;;  %v484_v11 = vld [vmem:[#allocation2 + $0x50] sm:$0xff] }
  0xd0   : > { %2364 = vmatpush3.bf16.msra.mxu0 %v2708_v14  ;;  %2526 = vmatpush3.bf16.msra.mxu1 %v2708_v14 }
  0xd1   : > { %2365 = vmatprep.subr.bf16.mxu0 %v2709_v15  ;;  %2519 = vmatprep.subr.bf16.mxu1 %v2709_v15 }
  0xd4   : > { %2366 = vmatpush3.bf16.msra.mxu0 %v2710_v16  ;;  %2527 = vmatpush3.bf16.msra.mxu1 %v2710_v16 }
  0xd5   : > { %2367 = vmatprep.subr.bf16.mxu0 %v2711_v17  ;;  %2520 = vmatprep.subr.bf16.mxu1 %v2711_v17 }
  0xd8   : > { %2368 = vmatpush3.bf16.msra.mxu0 %v2712_v18  ;;  %2528 = vmatpush3.bf16.msra.mxu1 %v2712_v18 }
  0xdb   : > { %753 = vmatmul.mubr.bf16.vlgmr.msra.gmra.mxu0 %v2713_v19  ;;  %785 = vmatmul.mubr.bf16.vlgmr.msra.gmra.mxu1 %v2716_v20 }
  0xdc   : > { %760 = vmatprep.mubr.bf16.mxu0 %v2719_v21  ;;  %792 = vmatprep.mubr.bf16.mxu1 %v2721_v22  ;;  %v485_v21 = vld [vmem:[#allocation2 + $0x68] sm:$0xff] }
  0xe3   : > { %761 = vmatmul.mubr.bf16.gmra.mxu0 %v2723_v23  ;;  %793 = vmatmul.mubr.bf16.gmra.mxu1 %v2724_v24  ;;  %v493_v23 = vld [vmem:[#allocation2 + $0x70] sm:$0xff] }
  0xe4   : > { %768 = vmatprep.mubr.bf16.mxu0 %v2725_v25  ;;  %800 = vmatprep.mubr.bf16.mxu1 %v2727_v26 }
  0xeb   : > { %769 = vmatmul.mubr.bf16.gmra.mxu0 %v2729_v27  ;;  %801 = vmatmul.mubr.bf16.gmra.mxu1 %v2730_v28 }
  0xec   : > { %776 = vmatprep.mubr.bf16.mxu0 %v2731_v29  ;;  %808 = vmatprep.mubr.bf16.mxu1 %v2733_v30 }
  0xf3   : > { %777 = vmatmul.mubr.bf16.gmra.mxu0 %v2735_v31  ;;  %809 = vmatmul.mubr.bf16.gmra.mxu1 %v2736_v32  ;;  %v486_v31 = vld [vmem:[#allocation2 + $0x8] sm:$0xff] }
 0x19b   : > { %v2369_v33 = vpop.f32.mrf.mxu0  ;;  %v2393_v34 = vpop.f32.mrf.mxu1 }
 0x19d   : > { %v2370_v36 = vpop.f32.mrf.mxu0  ;;  %v2394_v38 = vpop.f32.mrf.mxu1 }
 0x19e   : > { %v2371_v39 = vadd.f32 %v2370_v36, %v2369_v33  ;;  %v2395_v40 = vadd.f32 %v2394_v38, %v2393_v34  ;;  %v494_v33 = vld [vmem:[#allocation2 + $0x78] sm:$0xff] }
 0x19f   : > { %v2372_v41 = vpop.f32.mrf.mxu0  ;;  %v2396_v42 = vpop.f32.mrf.mxu1 }
 0x1a0   : > { %v817_v43 = vadd.f32 %v2371_v39, %v480_v35  ;;  %v825_v44 = vadd.f32 %v2395_v40, %v488_v37 }
 0x1a1   : > { %v2373_v46 = vpop.f32.mrf.mxu0  ;;  %v2397_v48 = vpop.f32.mrf.mxu1 }
 0x1a2   : > { %833 = vst [vmem:[#allocation2 + $0x30] sm:$0xff] %v817_v43  ;;  %841 = vst [vmem:[#allocation2 + $0x40] sm:$0xff] %v825_v44  ;;  %v2374_v49 = vadd.f32 %v2373_v46, %v2372_v41  ;;  %v2398_v50 = vadd.f32 %v2397_v48, %v2396_v42  ;;  %v487_v41 = vld [vmem:[#allocation2 + $0x48] sm:$0xff] }
 0x1a3   : > { %v2375_v51 = vpop.f32.mrf.mxu0  ;;  %v2399_v52 = vpop.f32.mrf.mxu1  ;;  %v495_v43 = vld [vmem:[#allocation2 + $0x28] sm:$0xff] }
 0x1a4   : > { %v818_v53 = vadd.f32 %v2374_v49, %v481_v45  ;;  %v826_v54 = vadd.f32 %v2398_v50, %v489_v47 }
 0x1a5   : > { %v2376_v56 = vpop.f32.mrf.mxu0  ;;  %v2400_v58 = vpop.f32.mrf.mxu1 }
 0x1a6   : > { %834 = vst [vmem:[#allocation2] sm:$0xff] %v818_v53  ;;  %842 = vst [vmem:[#allocation2 + $0x20] sm:$0xff] %v826_v54  ;;  %v2377_v59 = vadd.f32 %v2376_v56, %v2375_v51  ;;  %v2401_v60 = vadd.f32 %v2400_v58, %v2399_v52 }
 0x1a7   : > { %v2378_v61 = vpop.f32.mrf.mxu0  ;;  %v2402_v62 = vpop.f32.mrf.mxu1 }
 0x1a8   : > { %v819_v63 = vadd.f32 %v2377_v59, %v482_v55  ;;  %v827_v0 = vadd.f32 %v2401_v60, %v490_v57 }
 0x1a9   : > { %v2379_v2 = vpop.f32.mrf.mxu0  ;;  %v2403_v4 = vpop.f32.mrf.mxu1 }
 0x1aa   : > { %835 = vst [vmem:[#allocation2 + $0x58] sm:$0xff] %v819_v63  ;;  %843 = vst [vmem:[#allocation2 + $0x10] sm:$0xff] %v827_v0  ;;  %v2380_v5 = vadd.f32 %v2379_v2, %v2378_v61  ;;  %v2404_v6 = vadd.f32 %v2403_v4, %v2402_v62 }
 0x1ab   : > { %v2381_v7 = vpop.f32.mrf.mxu0  ;;  %v2405_v8 = vpop.f32.mrf.mxu1 }
 0x1ac   : > { %v820_v9 = vadd.f32 %v2380_v5, %v483_v1  ;;  %v828_v10 = vadd.f32 %v2404_v6, %v491_v3 }
 0x1ad   : > { %v2382_v12 = vpop.f32.mrf.mxu0  ;;  %v2406_v14 = vpop.f32.mrf.mxu1 }
 0x1ae   : > { %836 = vst [vmem:[#allocation2 + $0x18] sm:$0xff] %v820_v9  ;;  %844 = vst [vmem:[#allocation2 + $0x38] sm:$0xff] %v828_v10  ;;  %v2383_v15 = vadd.f32 %v2382_v12, %v2381_v7  ;;  %v2407_v16 = vadd.f32 %v2406_v14, %v2405_v8 }
 0x1af   : > { %v2384_v17 = vpop.f32.mrf.mxu0  ;;  %v2408_v18 = vpop.f32.mrf.mxu1 }
 0x1b0   : > { %v821_v19 = vadd.f32 %v2383_v15, %v484_v11  ;;  %v829_v20 = vadd.f32 %v2407_v16, %v492_v13 }
 0x1b1   : > { %v2385_v22 = vpop.f32.mrf.mxu0  ;;  %v2409_v24 = vpop.f32.mrf.mxu1 }
 0x1b2   : > { %837 = vst [vmem:[#allocation2 + $0x50] sm:$0xff] %v821_v19  ;;  %845 = vst [vmem:[#allocation2 + $0x60] sm:$0xff] %v829_v20  ;;  %v2386_v25 = vadd.f32 %v2385_v22, %v2384_v17  ;;  %v2410_v26 = vadd.f32 %v2409_v24, %v2408_v18 }
 0x1b3   : > { %v2387_v27 = vpop.f32.mrf.mxu0  ;;  %v2411_v28 = vpop.f32.mrf.mxu1 }
 0x1b4   : > { %v822_v29 = vadd.f32 %v2386_v25, %v485_v21  ;;  %v830_v30 = vadd.f32 %v2410_v26, %v493_v23 }
 0x1b5   : > { %v2388_v32 = vpop.f32.mrf.mxu0  ;;  %v2412_v34 = vpop.f32.mrf.mxu1 }
 0x1b6   : > { %838 = vst [vmem:[#allocation2 + $0x68] sm:$0xff] %v822_v29  ;;  %846 = vst [vmem:[#allocation2 + $0x70] sm:$0xff] %v830_v30  ;;  %v2389_v35 = vadd.f32 %v2388_v32, %v2387_v27  ;;  %v2413_v36 = vadd.f32 %v2412_v34, %v2411_v28 }
 0x1b7   : > { %v2390_v37 = vpop.f32.mrf.mxu0  ;;  %v2414_v38 = vpop.f32.mrf.mxu1 }
 0x1b8   : > { %v823_v39 = vadd.f32 %v2389_v35, %v486_v31  ;;  %v831_v40 = vadd.f32 %v2413_v36, %v494_v33 }
 0x1b9   : > { %v2391_v42 = vpop.f32.mrf.mxu0  ;;  %v2415_v44 = vpop.f32.mrf.mxu1 }
 0x1ba   : > { %839 = vst [vmem:[#allocation2 + $0x8] sm:$0xff] %v823_v39  ;;  %847 = vst [vmem:[#allocation2 + $0x78] sm:$0xff] %v831_v40  ;;  %v2392_v45 = vadd.f32 %v2391_v42, %v2390_v37  ;;  %v2416_v46 = vadd.f32 %v2415_v44, %v2414_v38  ;;  %852 = sbr.rel (%p2264_p13) target bundleno = 835 (0x343), region = 80 }
 0x1bc   : > { %v824_v47 = vadd.f32 %v2392_v45, %v487_v41  ;;  %v832_v48 = vadd.f32 %v2416_v46, %v495_v43 }
 0x1be   : > { %840 = vst [vmem:[#allocation2 + $0x48] sm:$0xff] %v824_v47  ;;  %848 = vst [vmem:[#allocation2 + $0x28] sm:$0xff] %v832_v48 }
 0x1bf   : > { %v2737_v49 = vld [vmem:[#allocation9 + $0xac] ss:$12 sps:$4 sm:$0xff]   ;;  %v2739_v50 = vld [vmem:[#allocation9 + $0xb0] ss:$12 sps:$4 sm:$0xff]   ;;  %v3275_v51 = vmov 0   ;;  %v854_v5 = vld [vmem:[#allocation2] sm:$0xff] }
 0x1c0   : > { %1118 = vmatprep.mubr.bf16.mxu0 %v3275_v51  ;;  %1086 = vmatprep.subr.bf16.mxu0 %v2737_v49  ;;  %v2740_v52 = vld [vmem:[#allocation9 + $0xa8] ss:$12 sps:$4 sm:$0xff]   ;;  %v2743_v54 = vld [vmem:[#allocation9 + $0x98] ss:$12 sps:$4 sm:$0xff]   ;;  %v2744_v55 = vld [vmem:[#allocation9 + $0x90] ss:$12 sps:$4 sm:$0xff]  }
 0x1c1   : > { %2449 = vmatprep.subr.bf16.mxu1 %v2739_v50  ;;  %v2741_v53 = vld [vmem:[#allocation9 + $0x94] ss:$12 sps:$4 sm:$0xff]   ;;  %1087 = vmatpush1.bf16.msra.mxu0 %v2740_v52  ;;  %v2745_v56 = vld [vmem:[#allocation9 + $0x7c] ss:$12 sps:$4 sm:$0xff]   ;;  %v2748_v58 = vld [vmem:[#allocation9 + $0x78] ss:$12 sps:$4 sm:$0xff]  }
 0x1c2   : > { %2450 = vmatpush3.bf16.msra.mxu1 %v2739_v50  ;;  %1088 = vmatprep.subr.bf16.mxu0 %v2741_v53  ;;  %v2747_v57 = vld [vmem:[#allocation9 + $0x80] ss:$12 sps:$4 sm:$0xff]   ;;  %v2749_v59 = vld [vmem:[#allocation9 + $0x64] ss:$12 sps:$4 sm:$0xff]   ;;  %v2751_v60 = vld [vmem:[#allocation9 + $0x68] ss:$12 sps:$4 sm:$0xff]  }
 0x1c3   : > { %2451 = vmatprep.subr.bf16.mxu1 %v2743_v54  ;;  %v2752_v61 = vld [vmem:[#allocation9 + $0x60] ss:$12 sps:$4 sm:$0xff]   ;;  %v2755_v63 = vld [vmem:[#allocation9 + $0x50] ss:$12 sps:$4 sm:$0xff]   ;;  %v2756_v0 = vld [vmem:[#allocation9 + $0x48] ss:$12 sps:$4 sm:$0xff]  }
 0x1c4   : > { %v2753_v62 = vld [vmem:[#allocation9 + $0x4c] ss:$12 sps:$4 sm:$0xff]   ;;  %v2757_v1 = vld [vmem:[#allocation9 + $0x34] ss:$12 sps:$4 sm:$0xff]   ;;  %v2760_v4 = vld [vmem:[#allocation9 + $0x30] ss:$12 sps:$4 sm:$0xff]  }
 0x1c5   : > { %1089 = vmatpush1.bf16.msra.mxu0 %v2744_v55  ;;  %v2759_v2 = vld [vmem:[#allocation9 + $0x38] ss:$12 sps:$4 sm:$0xff]   ;;  %v853_v3 = vld [vmem:[#allocation2 + $0x30] sm:$0xff]  ;;  %v870_v7 = vmax.f32 %v854_v5, 0.0  ;;  %v2761_v8 = vld [vmem:[#allocation9 + $0x1c] ss:$12 sps:$4 sm:$0xff]  }
 0x1c6   : > { %2452 = vmatpush3.bf16.msra.mxu1 %v2743_v54  ;;  %1090 = vmatprep.subr.bf16.mxu0 %v2745_v56  ;;  %v869_v6 = vmax.f32 %v853_v3, 0.0  ;;  %v2763_v9 = vld [vmem:[#allocation9 + $0x20] ss:$12 sps:$4 sm:$0xff]   ;;  %v2764_v11 = vld [vmem:[#allocation9 + $0x18] ss:$12 sps:$4 sm:$0xff]   ;;  %v857_v16 = vld [vmem:[#allocation2 + $0x50] sm:$0xff] }
 0x1c7   : > { %2453 = vmatprep.subr.bf16.mxu1 %v2747_v57  ;;  %v855_v12 = vld [vmem:[#allocation2 + $0x58] sm:$0xff]  ;;  %v2765_v14 = vld [vmem:[#allocation9 + $0x4] ss:$12 sps:$4 sm:$0xff]   ;;  %v2767_v15 = vld [vmem:[#allocation9 + $0x8] ss:$12 sps:$4 sm:$0xff]   ;;  %v873_v22 = vmax.f32 %v857_v16, 0.0 }
 0x1c8   : > { %v885_v10 = vpack.c.bf16 %v870_v7, %v869_v6  ;;  %v856_v13 = vld [vmem:[#allocation2 + $0x18] sm:$0xff]  ;;  %v858_v17 = vld [vmem:[#allocation2 + $0x68] sm:$0xff]  ;;  %v871_v19 = vmax.f32 %v855_v12, 0.0  ;;  %v2774_v28 = vld [vmem:[#allocation11 + $0x94] ss:$12 sps:$4 sm:$0xff]   ;;  %s4265_s20 = sld [smem:[#allocation35_spill]] }
 0x1c9   : > { %1091 = vmatpush1.bf16.msra.mxu0 %v2748_v58  ;;  %v2768_v18 = vld [vmem:[#allocation9] ss:$12 sps:$4 sm:$0xff]   ;;  %v872_v20 = vmax.f32 %v856_v13, 0.0  ;;  %v874_v23 = vmax.f32 %v858_v17, 0.0  ;;  %v2769_v25 = vld [vmem:[#allocation11 + $0xa8] ss:$12 sps:$4 sm:$0xff]  }
 0x1ca   : > { %2454 = vmatpush3.bf16.msra.mxu1 %v2747_v57  ;;  %1092 = vmatprep.subr.bf16.mxu0 %v2749_v59  ;;  %v2771_v21 = vld [vmem:[#allocation11 + $0xac] ss:$12 sps:$4 sm:$0xff]   ;;  %v2772_v30 = vld [vmem:[#allocation11 + $0x90] ss:$12 sps:$4 sm:$0xff]   ;;  %v861_v31 = vld [vmem:[#allocation2 + $0x40] sm:$0xff]  ;;  %s4268_s3 = sld [smem:[#allocation36_spill]] }
 0x1cb   : > { %2455 = vmatprep.subr.bf16.mxu1 %v2751_v60  ;;  %2465 = vmatprep.mubr.bf16.mxu1 %v885_v10  ;;  %v886_v24 = vpack.c.bf16 %v872_v20, %v871_v19  ;;  %v859_v26 = vld [vmem:[#allocation2 + $0x8] sm:$0xff]  ;;  %v887_v29 = vpack.c.bf16 %v874_v23, %v873_v22  ;;  %v862_v32 = vld [vmem:[#allocation2 + $0x20] sm:$0xff]  ;;  %v2793_v35 = vld [vmem:[#allocation11 + $0xb0] ss:$12 sps:$4 sm:$0xff]   ;;  %v877_v37 = vmax.f32 %v861_v31, 0.0 }
 0x1cc   : > { %v860_v27 = vld [vmem:[#allocation2 + $0x48] sm:$0xff]  ;;  %v875_v33 = vmax.f32 %v859_v26, 0.0  ;;  %v878_v38 = vmax.f32 %v862_v32, 0.0  ;;  %v2794_v39 = vld [vmem:[#allocation11 + $0x98] ss:$12 sps:$4 sm:$0xff]   ;;  %v863_v40 = vld [vmem:[#allocation2 + $0x10] sm:$0xff] }
 0x1cd   : > { %1093 = vmatpush1.bf16.msra.mxu0 %v2752_v61  ;;  %v876_v34 = vmax.f32 %v860_v27, 0.0  ;;  %v2777_v36 = vld [vmem:[#allocation11 + $0x7c] ss:$12 sps:$4 sm:$0xff]   ;;  %v2775_v43 = vld [vmem:[#allocation11 + $0x78] ss:$12 sps:$4 sm:$0xff]   ;;  %v879_v46 = vmax.f32 %v863_v40, 0.0 }
 0x1ce   : > { %2456 = vmatpush3.bf16.msra.mxu1 %v2751_v60  ;;  %1094 = vmatprep.subr.bf16.mxu0 %v2753_v62  ;;  %v864_v42 = vld [vmem:[#allocation2 + $0x38] sm:$0xff]  ;;  %v2780_v44 = vld [vmem:[#allocation11 + $0x64] ss:$12 sps:$4 sm:$0xff]   ;;  %v889_v45 = vpack.c.bf16 %v878_v38, %v877_v37  ;;  %v2795_v50 = vld [vmem:[#allocation11 + $0x80] ss:$12 sps:$4 sm:$0xff]  }
 0x1cf   : > { %2457 = vmatprep.subr.bf16.mxu1 %v2755_v63  ;;  %v888_v41 = vpack.c.bf16 %v876_v34, %v875_v33  ;;  %v880_v47 = vmax.f32 %v864_v42, 0.0  ;;  %v865_v48 = vld [vmem:[#allocation2 + $0x60] sm:$0xff]  ;;  %v866_v49 = vld [vmem:[#allocation2 + $0x70] sm:$0xff]  ;;  %v2783_v53 = vld [vmem:[#allocation11 + $0x4c] ss:$12 sps:$4 sm:$0xff]  }
 0x1d0   : > { %v2778_v52 = vld [vmem:[#allocation11 + $0x60] ss:$12 sps:$4 sm:$0xff]   ;;  %v881_v54 = vmax.f32 %v865_v48, 0.0  ;;  %v882_v55 = vmax.f32 %v866_v49, 0.0  ;;  %v2781_v57 = vld [vmem:[#allocation11 + $0x48] ss:$12 sps:$4 sm:$0xff]  }
 0x1d1   : > { %1095 = vmatpush1.bf16.msra.mxu0 %v2756_v0  ;;  %v890_v56 = vpack.c.bf16 %v880_v47, %v879_v46  ;;  %v867_v58 = vld [vmem:[#allocation2 + $0x78] sm:$0xff]  ;;  %v868_v59 = vld [vmem:[#allocation2 + $0x28] sm:$0xff]  ;;  %v2786_v60 = vld [vmem:[#allocation11 + $0x34] ss:$12 sps:$4 sm:$0xff]  }
 0x1d2   : > { %2458 = vmatpush3.bf16.msra.mxu1 %v2755_v63  ;;  %1096 = vmatprep.subr.bf16.mxu0 %v2757_v1  ;;  %v891_v61 = vpack.c.bf16 %v882_v55, %v881_v54  ;;  %v2796_v62 = vld [vmem:[#allocation11 + $0x68] ss:$12 sps:$4 sm:$0xff]   ;;  %v883_v63 = vmax.f32 %v867_v58, 0.0  ;;  %v884_v0 = vmax.f32 %v868_v59, 0.0  ;;  %v2784_v1 = vld [vmem:[#allocation11 + $0x30] ss:$12 sps:$4 sm:$0xff]  }
 0x1d3   : > { %2459 = vmatprep.subr.bf16.mxu1 %v2759_v2  ;;  %v2789_v3 = vld [vmem:[#allocation11 + $0x1c] ss:$12 sps:$4 sm:$0xff]   ;;  %v2787_v5 = vld [vmem:[#allocation11 + $0x18] ss:$12 sps:$4 sm:$0xff]   ;;  %v2799_v12 = vld [vmem:[#allocation11 + $0x20] ss:$12 sps:$4 sm:$0xff]  }
 0x1d4   : > { %v2792_v6 = vld [vmem:[#allocation11 + $0x4] ss:$12 sps:$4 sm:$0xff]   ;;  %v2800_v13 = vld [vmem:[#allocation11 + $0x8] ss:$12 sps:$4 sm:$0xff]   ;;  %v904_v27 = vld [vmem:[%s3603_s15 + $0x58] sm:$0xff] }
 0x1d5   : > { %1097 = vmatpush1.bf16.msra.mxu0 %v2760_v4  ;;  %v892_v4 = vpack.c.bf16 %v884_v0, %v883_v63  ;;  %v2798_v7 = vld [vmem:[#allocation11 + $0x38] ss:$12 sps:$4 sm:$0xff]   ;;  %v3689_v20 = vld [vmem:[%s3603_s15 + $0x30] sm:$0xff]  ;;  %v941_v63 = vld [vmem:[%s4265_s20] sm:$0x7] }
 0x1d6   : > { %2460 = vmatpush3.bf16.msra.mxu1 %v2759_v2  ;;  %1098 = vmatprep.subr.bf16.mxu0 %v2761_v8  ;;  %v2797_v2 = vld [vmem:[#allocation11 + $0x50] ss:$12 sps:$4 sm:$0xff]   ;;  %v2790_v8 = vld [vmem:[#allocation11] ss:$12 sps:$4 sm:$0xff]  }
 0x1d7   : > { %2461 = vmatprep.subr.bf16.mxu1 %v2763_v9  ;;  %v3679_v17 = vld [vmem:[%s3603_s15 + $0x20] sm:$0xff]  ;;  %v903_v26 = vld [vmem:[%s3603_s15 + $0x50] sm:$0xff]  ;;  %v908_v33 = vld [vmem:[%s3603_s15 + $0x78] sm:$0xff] }
 0x1d8   : > { %v901_v23 = vld [vmem:[%s3603_s15 + $0x40] sm:$0xff]  ;;  %v907_v32 = vld [vmem:[%s3603_s15 + $0x70] sm:$0xff] }
 0x1d9   : > { %1099 = vmatpush1.bf16.msra.mxu0 %v2764_v11  ;;  %v1303_v34 = vpack.c.bf16 %v908_v33, %v907_v32 }
 0x1da   : > { %2462 = vmatpush3.bf16.msra.mxu1 %v2763_v9  ;;  %1100 = vmatprep.subr.bf16.mxu0 %v2765_v14  ;;  %v3658_v9 = vld [vmem:[%s3603_s15] sm:$0xff]  ;;  %v3669_v14 = vld [vmem:[%s3603_s15 + $0x10] sm:$0xff] }
 0x1db   : > { %2463 = vmatprep.subr.bf16.mxu1 %v2767_v15 }
 0x1dd   : > { %1101 = vmatpush1.bf16.msra.mxu0 %v2768_v18  ;;  %v3682_v18 = vld [vmem:[%s3603_s15 + $0x28] sm:$0xff] }
 0x1de   : > { %2464 = vmatpush3.bf16.msra.mxu1 %v2767_v15  ;;  %2481 = vmatprep.subr.bf16.mxu0 %v2793_v35  ;;  %v3672_v15 = vld [vmem:[%s3603_s15 + $0x18] sm:$0xff]  ;;  %v1298_v19 = vpack.c.bf16 %v3682_v18, %v3679_v17 }
 0x1df   : > { %1481 = vmatprep.subr.bf16.mxu1 %v2771_v21  ;;  %v1297_v16 = vpack.c.bf16 %v3672_v15, %v3669_v14  ;;  %v3692_v21 = vld [vmem:[%s3603_s15 + $0x38] sm:$0xff] }
 0x1e0   : > { %1119 = vmatmul.mubr.bf16.vlgmr.msra.gmra.mxu0 %v885_v10  ;;  %v3661_v10 = vld [vmem:[%s3603_s15 + $0x8] sm:$0xff]  ;;  %v1299_v22 = vpack.c.bf16 %v3692_v21, %v3689_v20 }
 0x1e1   : > { %2466 = vmatmul.mubr.bf16.vlgmr.msra.gmra.mxu1 %v886_v24  ;;  %1128 = vmatprep.mubr.bf16.mxu0 %v3275_v51  ;;  %v1296_v11 = vpack.c.bf16 %v3661_v10, %v3658_v9 }
 0x1e2   : > { %1482 = vmatpush1.bf16.msra.mxu1 %v2769_v25  ;;  %2469 = vmatprep.mubr.bf16.mxu1 %v887_v29 }
 0x1e3   : > { %1483 = vmatprep.subr.bf16.mxu1 %v2774_v28  ;;  %2482 = vmatpush3.bf16.msra.mxu0 %v2793_v35  ;;  %v1301_v28 = vpack.c.bf16 %v904_v27, %v903_v26 }
 0x1e4   : > { %2483 = vmatprep.subr.bf16.mxu0 %v2794_v39 }
 0x1e6   : > { %1484 = vmatpush1.bf16.msra.mxu1 %v2772_v30  ;;  %v906_v30 = vld [vmem:[%s3603_s15 + $0x68] sm:$0xff] }
 0x1e7   : > { %1485 = vmatprep.subr.bf16.mxu1 %v2777_v36  ;;  %2484 = vmatpush3.bf16.msra.mxu0 %v2794_v39 }
 0x1e8   : > { %1129 = vmatmul.mubr.bf16.gmra.mxu0 %v886_v24  ;;  %2485 = vmatprep.subr.bf16.mxu0 %v2795_v50  ;;  %v902_v24 = vld [vmem:[%s3603_s15 + $0x48] sm:$0xff] }
 0x1e9   : > { %2470 = vmatmul.mubr.bf16.gmra.mxu1 %v888_v41  ;;  %1138 = vmatprep.mubr.bf16.mxu0 %v3275_v51  ;;  %v1300_v25 = vpack.c.bf16 %v902_v24, %v901_v23 }
 0x1ea   : > { %1486 = vmatpush1.bf16.msra.mxu1 %v2775_v43  ;;  %2473 = vmatprep.mubr.bf16.mxu1 %v889_v45 }
 0x1eb   : > { %1487 = vmatprep.subr.bf16.mxu1 %v2780_v44  ;;  %2486 = vmatpush3.bf16.msra.mxu0 %v2795_v50  ;;  %v943_v50 = vlaneseq }
 0x1ec   : > { %2487 = vmatprep.subr.bf16.mxu0 %v2796_v62 }
 0x1ee   : > { %1488 = vmatpush1.bf16.msra.mxu1 %v2778_v52 }
 0x1ef   : > { %1489 = vmatprep.subr.bf16.mxu1 %v2783_v53  ;;  %2488 = vmatpush3.bf16.msra.mxu0 %v2796_v62 }
 0x1f0   : > { %1139 = vmatmul.mubr.bf16.gmra.mxu0 %v887_v29  ;;  %2489 = vmatprep.subr.bf16.mxu0 %v2797_v2  ;;  %v905_v29 = vld [vmem:[%s3603_s15 + $0x60] sm:$0xff] }
 0x1f1   : > { %2474 = vmatmul.mubr.bf16.gmra.mxu1 %v890_v56  ;;  %1148 = vmatprep.mubr.bf16.mxu0 %v3275_v51  ;;  %v1302_v31 = vpack.c.bf16 %v906_v30, %v905_v29 }
 0x1f2   : > { %1490 = vmatpush1.bf16.msra.mxu1 %v2781_v57  ;;  %2477 = vmatprep.mubr.bf16.mxu1 %v891_v61 }
 0x1f3   : > { %1491 = vmatprep.subr.bf16.mxu1 %v2786_v60  ;;  %2490 = vmatpush3.bf16.msra.mxu0 %v2797_v2 }
 0x1f4   : > { %2491 = vmatprep.subr.bf16.mxu0 %v2798_v7 }
 0x1f6   : > { %1492 = vmatpush1.bf16.msra.mxu1 %v2784_v1 }
 0x1f7   : > { %1493 = vmatprep.subr.bf16.mxu1 %v2789_v3  ;;  %2492 = vmatpush3.bf16.msra.mxu0 %v2798_v7 }
 0x1f8   : > { %1149 = vmatmul.mubr.bf16.gmra.mxu0 %v888_v41  ;;  %2493 = vmatprep.subr.bf16.mxu0 %v2799_v12 }
 0x1f9   : > { %2478 = vmatmul.mubr.bf16.gmra.mxu1 %v892_v4  ;;  %1158 = vmatprep.mubr.bf16.mxu0 %v3275_v51 }
 0x1fa   : > { %1494 = vmatpush1.bf16.msra.mxu1 %v2787_v5  ;;  %1513 = vmatprep.mubr.bf16.mxu1 %v3275_v51 }
 0x1fb   : > { %1495 = vmatprep.subr.bf16.mxu1 %v2792_v6  ;;  %2494 = vmatpush3.bf16.msra.mxu0 %v2799_v12 }
 0x1fc   : > { %2495 = vmatprep.subr.bf16.mxu0 %v2800_v13 }
 0x1fe   : > { %1496 = vmatpush1.bf16.msra.mxu1 %v2790_v8 }
 0x1ff   : > { %2496 = vmatpush3.bf16.msra.mxu0 %v2800_v13 }
 0x200   : > { %1159 = vmatmul.mubr.bf16.gmra.mxu0 %v889_v45 }
 0x201   : > { %1514 = vmatmul.mubr.bf16.vlgmr.msra.gmra.mxu1 %v1296_v11  ;;  %1168 = vmatprep.mubr.bf16.mxu0 %v3275_v51 }
 0x202   : > { %1523 = vmatprep.mubr.bf16.mxu1 %v3275_v51 }
 0x208   : > { %1169 = vmatmul.mubr.bf16.gmra.mxu0 %v890_v56  ;;  %v3738_v56 = vshrl.u32 %v943_v50, 7 }
 0x209   : > { %1524 = vmatmul.mubr.bf16.gmra.mxu1 %v1297_v16  ;;  %1178 = vmatprep.mubr.bf16.mxu0 %v3275_v51 }
 0x20a   : > { %1533 = vmatprep.mubr.bf16.mxu1 %v3275_v51  ;;  %v4213_v62 = vsub.s32 2, %v3738_v56  ;;  %v949_v7 = vsub.s32 1, %v3738_v56 }
 0x20c   : > { %v3770_v6 = vrot.slane %v941_v63, %v4213_v62  ;;  %v3786_v23 = vrot.slane %v941_v63, %v949_v7 }
 0x210   : > { %1179 = vmatmul.mubr.bf16.gmra.mxu0 %v891_v61  ;;  %v945_v61 = vsub.s32 0, %v3738_v56 }
 0x211   : > { %1534 = vmatmul.mubr.bf16.gmra.mxu1 %v1298_v19  ;;  %1188 = vmatprep.mubr.bf16.mxu0 %v3275_v51 }
 0x212   : > { %1543 = vmatprep.mubr.bf16.mxu1 %v3275_v51  ;;  %v3766_v5 = vrot.slane %v941_v63, %v945_v61 }
 0x218   : > { %1189 = vmatmul.mubr.bf16.gmra.mxu0 %v892_v4  ;;  %v3764_v4 = vld [vmem:[%s4268_s3] sm:$0x7] }
 0x219   : > { %1544 = vmatmul.mubr.bf16.gmra.mxu1 %v1299_v22  ;;  %2497 = vmatprep.mubr.bf16.mxu0 %v1296_v11  ;;  %v3779_v13 = vrot.slane %v3764_v4, %v945_v61  ;;  %v3789_v24 = vrot.slane %v3764_v4, %v949_v7 }
 0x21a   : > { %1553 = vmatprep.mubr.bf16.mxu1 %v3275_v51 }
 0x220   : > { %2498 = vmatmul.mubr.bf16.vlgmr.msra.gmra.mxu0 %v1297_v16 }
 0x221   : > { %1554 = vmatmul.mubr.bf16.gmra.mxu1 %v1300_v25  ;;  %2501 = vmatprep.mubr.bf16.mxu0 %v1298_v19 }
 0x222   : > { %1563 = vmatprep.mubr.bf16.mxu1 %v3275_v51 }
 0x228   : > { %2502 = vmatmul.mubr.bf16.gmra.mxu0 %v1299_v22 }
 0x229   : > { %1564 = vmatmul.mubr.bf16.gmra.mxu1 %v1301_v28  ;;  %2505 = vmatprep.mubr.bf16.mxu0 %v1300_v25 }
 0x22a   : > { %1573 = vmatprep.mubr.bf16.mxu1 %v3275_v51 }
 0x230   : > { %2506 = vmatmul.mubr.bf16.gmra.mxu0 %v1301_v28 }
 0x231   : > { %1574 = vmatmul.mubr.bf16.gmra.mxu1 %v1302_v31  ;;  %2509 = vmatprep.mubr.bf16.mxu0 %v1302_v31 }
 0x232   : > { %1583 = vmatprep.mubr.bf16.mxu1 %v3275_v51 }
 0x238   : > { %2510 = vmatmul.mubr.bf16.gmra.mxu0 %v1303_v34 }
 0x239   : > { %1584 = vmatmul.mubr.bf16.gmra.mxu1 %v1303_v34 }
 0x2a0   : > { %v1120_v35 = vpop.f32.mrf.mxu0 }
 0x2a1   : > { %v3708_v36 = vpop.f32.mrf.mxu1  ;;  %v1121_v22 = vadd.f32 %v1120_v35, %v3766_v5 }
 0x2a2   : > { %v1122_v37 = vpop.f32.mrf.mxu0 }
 0x2a3   : > { %v3710_v38 = vpop.f32.mrf.mxu1  ;;  %v1123_v30 = vadd.f32 %v1122_v37, %v3786_v23 }
 0x2a4   : > { %v1124_v39 = vpop.f32.mrf.mxu0 }
 0x2a5   : > { %v3712_v40 = vpop.f32.mrf.mxu1  ;;  %v1125_v35 = vadd.f32 %v1124_v39, %v3766_v5 }
 0x2a6   : > { %v1126_v41 = vpop.f32.mrf.mxu0 }
 0x2a7   : > { %v3714_v42 = vpop.f32.mrf.mxu1 }
 0x2a8   : > { %v1130_v43 = vpop.f32.mrf.mxu0 }
 0x2a9   : > { %v3716_v51 = vpop.f32.mrf.mxu1 }
 0x2aa   : > { %v3718_v44 = vpop.f32.mrf.mxu0 }
 0x2ab   : > { %v3720_v45 = vpop.f32.mrf.mxu1 }
 0x2ac   : > { %v3722_v46 = vpop.f32.mrf.mxu0 }
 0x2ad   : > { %v3724_v47 = vpop.f32.mrf.mxu1 }
 0x2ae   : > { %v3726_v48 = vpop.f32.mrf.mxu0 }
 0x2af   : > { %v3728_v49 = vpop.f32.mrf.mxu1 }
 0x2b0   : > { %v3730_v52 = vpop.f32.mrf.mxu0 }
 0x2b1   : > { %v3732_v53 = vpop.f32.mrf.mxu1 }
 0x2b2   : > { %v3734_v54 = vpop.f32.mrf.mxu0 }
 0x2b3   : > { %v3736_v55 = vpop.f32.mrf.mxu1 }
 0x2b4   : > { %v3740_v57 = vpop.f32.mrf.mxu0 }
 0x2b5   : > { %v3742_v58 = vpop.f32.mrf.mxu1 }
 0x2b6   : > { %4264 = vst [vmem:[#allocation26_spill] sm:$0xff] %v3742_v58  ;;  %v3744_v59 = vpop.f32.mrf.mxu0 }
 0x2b7   : > { %v3746_v60 = vpop.f32.mrf.mxu1 }
 0x2b8   : > { %v3753_v0 = vpop.f32.mrf.mxu0 }
 0x2b9   : > { %v3755_v1 = vpop.f32.mrf.mxu1 }
 0x2ba   : > { %4266 = vst [vmem:[#allocation27_spill] sm:$0xff] %v3755_v1  ;;  %v3757_v2 = vpop.f32.mrf.mxu0 }
 0x2bb   : > { %v3759_v3 = vpop.f32.mrf.mxu1 }
 0x2bc   : > { %4267 = vst [vmem:[#allocation28_spill] sm:$0xff] %v3759_v3  ;;  %v3773_v8 = vpop.f32.mrf.mxu0 }
 0x2bd   : > { %v2480_v11 = vpop.f32.mrf.mxu1 }
 0x2be   : > { %v3776_v12 = vadd.f32 %v2480_v11, %v3770_v6  ;;  %v3781_v16 = vpop.f32.mrf.mxu0 }
 0x2bf   : > { %v3783_v19 = vpop.f32.mrf.mxu1 }
 0x2c0   : > { %4269 = vst [vmem:[#allocation29_spill] sm:$0xff] %v3776_v12  ;;  %4270 = vst [vmem:[#allocation30_spill] sm:$0xff] %v3783_v19  ;;  %v3791_v25 = vpop.f32.mrf.mxu0 }
 0x2c1   : > { %v1515_v26 = vpop.f32.mrf.mxu1 }
 0x2c2   : > { %v1516_v27 = vadd.f32 %v1515_v26, %v3779_v13  ;;  %v3794_v28 = vpop.f32.mrf.mxu0  ;;  %v1131_v26 = vadd.f32 %v1130_v43, %v3766_v5  ;;  %v1133_v43 = vadd.f32 %v3718_v44, %v3786_v23  ;;  %v1141_v44 = vadd.f32 %v3730_v52, %v3766_v5 }
 0x2c3   : > { %v1517_v29 = vpop.f32.mrf.mxu1  ;;  %v1143_v52 = vadd.f32 %v3734_v54, %v3786_v23 }
 0x2c4   : > { %v1691_v31 = vadd.f32 %v1516_v27, %v1121_v22  ;;  %v1518_v32 = vadd.f32 %v1517_v29, %v3789_v24  ;;  %v3798_v33 = vpop.f32.mrf.mxu0  ;;  %v1127_v22 = vadd.f32 %v1126_v41, %v3786_v23 }
 0x2c5   : > { %v1519_v34 = vpop.f32.mrf.mxu1 }
 0x2c6   : > { %v2313_v50 = vmul.f32 -1.442695, %v1691_v31  ;;  %v1803_v61 = vadd.f32 %v1518_v32, %v1123_v30  ;;  %v1520_v63 = vadd.f32 %v1519_v34, %v3779_v13  ;;  %v3802_v7 = vpop.f32.mrf.mxu0 }
 0x2c7   : > { %v1521_v11 = vpop.f32.mrf.mxu1 }
 0x2c8   : > { %2801 = vpow2.f32 %v2313_v50  ;;  %v2329_v62 = vmul.f32 -1.442695, %v1803_v61  ;;  %v1692_v37 = vadd.f32 %v1520_v63, %v1125_v35  ;;  %v1522_v27 = vadd.f32 %v1521_v11, %v3789_v24  ;;  %v3807_v29 = vpop.f32.mrf.mxu0 }
 0x2c9   : > { %v1525_v12 = vpop.f32.mrf.mxu1  ;;  %v1135_v11 = vadd.f32 %v3722_v46, %v3766_v5 }
 0x2ca   : > { %v2314_v39 = vmul.f32 -1.442695, %v1692_v37  ;;  %v1526_v30 = vadd.f32 %v1525_v12, %v3779_v13  ;;  %2803 = vpow2.f32 %v2329_v62  ;;  %v1804_v31 = vadd.f32 %v1522_v27, %v1127_v22  ;;  %v3810_v32 = vpop.f32.mrf.mxu0 }
 0x2cb   : > { %v1527_v34 = vpop.f32.mrf.mxu1 }
 0x2cc   : > { %2805 = vpow2.f32 %v2314_v39  ;;  %v1693_v35 = vadd.f32 %v1526_v30, %v1131_v26  ;;  %v1528_v41 = vadd.f32 %v1527_v34, %v3789_v24  ;;  %v2330_v50 = vmul.f32 -1.442695, %v1804_v31  ;;  %v3815_v61 = vpop.f32.mrf.mxu0 }
 0x2cd   : > { %v1529_v63 = vpop.f32.mrf.mxu1  ;;  %v1137_v30 = vadd.f32 %v3726_v48, %v3786_v23 }
 0x2ce   : > { %v2315_v12 = vmul.f32 -1.442695, %v1693_v35  ;;  %v1805_v62 = vadd.f32 %v1528_v41, %v1133_v43  ;;  %v1530_v37 = vadd.f32 %v1529_v63, %v3779_v13  ;;  %2807 = vpow2.f32 %v2330_v50  ;;  %v3820_v22 = vpop.f32.mrf.mxu0 }
 0x2cf   : > { %v1531_v27 = vpop.f32.mrf.mxu1 }
 0x2d0   : > { %2809 = vpow2.f32 %v2315_v12  ;;  %v2331_v26 = vmul.f32 -1.442695, %v1805_v62  ;;  %v1694_v39 = vadd.f32 %v1530_v37, %v1135_v11  ;;  %v1532_v31 = vadd.f32 %v1531_v27, %v3789_v24  ;;  %v3827_v46 = vpop.f32.mrf.mxu0 }
 0x2d1   : > { %v1535_v34 = vpop.f32.mrf.mxu1 }
 0x2d2   : > { %v2316_v43 = vmul.f32 -1.442695, %v1694_v39  ;;  %v1536_v35 = vadd.f32 %v1535_v34, %v3779_v13  ;;  %2811 = vpow2.f32 %v2331_v26  ;;  %v1806_v41 = vadd.f32 %v1532_v31, %v1137_v30  ;;  %v3830_v50 = vpop.f32.mrf.mxu0 }
 0x2d3   : > { %v1537_v63 = vpop.f32.mrf.mxu1  ;;  %v1145_v26 = vadd.f32 %v3740_v57, %v3766_v5 }
 0x2d4   : > { %2813 = vpow2.f32 %v2316_v43  ;;  %v1695_v11 = vadd.f32 %v1536_v35, %v1141_v44  ;;  %v1538_v48 = vadd.f32 %v1537_v63, %v3789_v24  ;;  %v2332_v62 = vmul.f32 -1.442695, %v1806_v41  ;;  %v3835_v37 = vpop.f32.mrf.mxu0 }
 0x2d5   : > { %v2802_v12 = vpop.eup %2801  ;;  %v1539_v27 = vpop.f32.mrf.mxu1  ;;  %v4271_v44 = vsub.s32 2, %v3738_v56  ;;  %v3849_v41 = vadd.f32 %v3708_v36, %v3770_v6  ;;  %v1151_v63 = vadd.f32 %v3753_v0, %v3766_v5  ;;  %v3860_v36 = vadd.f32 %v3710_v38, %v3770_v6 }
 0x2d6   : > { %v1755_v39 = vadd.f32 1.0, %v2802_v12  ;;  %v2317_v1 = vmul.f32 -1.442695, %v1695_v11  ;;  %v1807_v34 = vadd.f32 %v1538_v48, %v1143_v52  ;;  %2815 = vpow2.f32 %v2332_v62  ;;  %v3840_v31 = vpop.f32.mrf.mxu0 }
 0x2d7   : > { %v1540_v30 = vadd.f32 %v1539_v27, %v3779_v13  ;;  %v1541_v54 = vpop.f32.mrf.mxu1  ;;  %v3845_v43 = vrot.slane %v3764_v4, %v4271_v44  ;;  %v2804_v35 = vpop.eup %2803  ;;  %v1147_v11 = vadd.f32 %v3744_v59, %v3786_v23  ;;  %v3864_v0 = vadd.f32 %v3712_v40, %v3770_v6 }
 0x2d8   : > { %2817 = vrcp.f32 %v1755_v39  ;;  %v2333_v57 = vmul.f32 -1.442695, %v1807_v34  ;;  %v1542_v56 = vadd.f32 %v1541_v54, %v3789_v24  ;;  %v3856_v4 = vpop.f32.mrf.mxu0  ;;  %v1867_v39 = vadd.f32 1.0, %v2804_v35 }
 0x2d9   : > { %v2806_v52 = vpop.eup %2805  ;;  %2819 = vpow2.f32 %v2317_v1  ;;  %v1696_v48 = vadd.f32 %v1540_v30, %v1145_v26  ;;  %v1545_v12 = vpop.f32.mrf.mxu1  ;;  %v1153_v54 = vadd.f32 %v3757_v2, %v3786_v23  ;;  %v3878_v35 = vadd.f32 %v3716_v51, %v3770_v6 }
 0x2da   : > { %v1756_v62 = vadd.f32 1.0, %v2806_v52  ;;  %v1546_v27 = vadd.f32 %v1545_v12, %v3779_v13  ;;  %2821 = vpow2.f32 %v2333_v57  ;;  %v1808_v1 = vadd.f32 %v1542_v56, %v1147_v11  ;;  %v3867_v34 = vpop.f32.mrf.mxu0 }
 0x2db   : > { %v2318_v59 = vmul.f32 -1.442695, %v1696_v48  ;;  %v1547_v26 = vpop.f32.mrf.mxu1  ;;  %v2808_v30 = vpop.eup %2807  ;;  %v3874_v52 = vadd.f32 %v3714_v42, %v3770_v6  ;;  %v3884_v2 = vadd.f32 %v3720_v45, %v3770_v6  ;;  %v1155_v42 = vadd.f32 %v3773_v8, %v3766_v5 }
 0x2dc   : > { %2823 = vrcp.f32 %v1756_v62  ;;  %v1697_v38 = vadd.f32 %v1546_v27, %v1151_v63  ;;  %v1548_v44 = vadd.f32 %v1547_v26, %v3789_v24  ;;  %v2334_v57 = vmul.f32 -1.442695, %v1808_v1  ;;  %v3880_v11 = vpop.f32.mrf.mxu0 }
 0x2dd   : > { %v2810_v40 = vpop.eup %2809  ;;  %2825 = vpow2.f32 %v2318_v59  ;;  %v1549_v48 = vpop.f32.mrf.mxu1  ;;  %v1868_v63 = vadd.f32 1.0, %v2808_v30  ;;  %v3893_v26 = vadd.f32 %v3724_v47, %v3770_v6  ;;  %v1157_v45 = vadd.f32 %v3781_v16, %v3786_v23 }
 0x2de   : > { %v1757_v56 = vadd.f32 1.0, %v2810_v40  ;;  %v1809_v12 = vadd.f32 %v1548_v44, %v1153_v54  ;;  %2827 = vrcp.f32 %v1867_v39  ;;  %v2319_v62 = vmul.f32 -1.442695, %v1697_v38  ;;  %v3889_v27 = vpop.f32.mrf.mxu0 }
 0x2df   : > { %v1550_v51 = vadd.f32 %v1549_v48, %v3779_v13  ;;  %v1551_v59 = vpop.f32.mrf.mxu1  ;;  %v2812_v1 = vpop.eup %2811  ;;  %v1161_v30 = vadd.f32 %v3791_v25, %v3766_v5  ;;  %v3902_v48 = vadd.f32 %v3728_v49, %v3770_v6  ;;  %v1163_v49 = vadd.f32 %v3794_v28, %v3786_v23 }
 0x2e0   : > { %2829 = vrcp.f32 %v1757_v56  ;;  %v2335_v39 = vmul.f32 -1.442695, %v1809_v12  ;;  %v1552_v38 = vadd.f32 %v1551_v59, %v3789_v24  ;;  %v2499_v40 = vpop.f32.mrf.mxu0  ;;  %v1869_v19 = vadd.f32 1.0, %v2812_v1 }
 0x2e1   : > { %v2814_v8 = vpop.eup %2813  ;;  %2831 = vpow2.f32 %v2334_v57  ;;  %v1698_v54 = vadd.f32 %v1550_v51, %v1155_v42  ;;  %v1555_v44 = vpop.f32.mrf.mxu1 }
 0x2e2   : > { %2833 = vrcp.f32 %v1868_v63  ;;  %v1758_v47 = vadd.f32 1.0, %v2814_v8  ;;  %v1556_v16 = vadd.f32 %v1555_v44, %v3779_v13  ;;  %v1810_v56 = vadd.f32 %v1552_v38, %v1157_v45  ;;  %v1628_v57 = vpop.f32.mrf.mxu0 }
 0x2e3   : > { %2835 = vpow2.f32 %v2319_v62  ;;  %v2320_v25 = vmul.f32 -1.442695, %v1698_v54  ;;  %v1557_v3 = vpop.f32.mrf.mxu1  ;;  %v2816_v12 = vpop.eup %2815  ;;  %v1629_v59 = vadd.f32 %v1628_v57, %v3845_v43  ;;  %v1165_v45 = vadd.f32 %v3798_v33, %v3766_v5 }
 0x2e4   : > { %2837 = vrcp.f32 %v1758_v47  ;;  %v1699_v42 = vadd.f32 %v1556_v16, %v1161_v30  ;;  %v1558_v51 = vadd.f32 %v1557_v3, %v3789_v24  ;;  %v1870_v63 = vadd.f32 1.0, %v2816_v12  ;;  %v2500_v62 = vpop.f32.mrf.mxu0 }
 0x2e5   : > { %v2818_v58 = vpop.eup %2817  ;;  %2839 = vpow2.f32 %v2335_v39  ;;  %v2336_v8 = vmul.f32 -1.442695, %v1810_v56  ;;  %v1559_v1 = vpop.f32.mrf.mxu1  ;;  %v1167_v39 = vadd.f32 %v3802_v7, %v3786_v23  ;;  %v1171_v56 = vadd.f32 %v3807_v29, %v3766_v5 }
 0x2e6   : > { %v2820_v54 = vpop.eup %2819  ;;  %2841 = vpow2.f32 %v2320_v25  ;;  %v2321_v38 = vmul.f32 -1.442695, %v1699_v42  ;;  %v1915_v30 = vmul.f32 %v2818_v58, %v1629_v59  ;;  %v1811_v44 = vadd.f32 %v1558_v51, %v1163_v49  ;;  %v1631_v57 = vpop.f32.mrf.mxu0 }
 0x2e7   : > { %2843 = vrcp.f32 %v1869_v19  ;;  %v1759_v3 = vadd.f32 1.0, %v2820_v54  ;;  %v1560_v47 = vadd.f32 %v1559_v1, %v3779_v13  ;;  %v1561_v16 = vpop.f32.mrf.mxu1  ;;  %v2822_v28 = vpop.eup %2821  ;;  %v3918_v33 = vadd.f32 %v3810_v32, %v3786_v23 }
 0x2e8   : > { %2845 = vpow2.f32 %v2336_v8  ;;  %v1871_v19 = vadd.f32 1.0, %v2822_v28  ;;  %v1637_v25 = vadd.f32 %v2499_v40, %v3845_v43  ;;  %v1931_v59 = vadd.f32 %v1915_v30, %v3860_v36 }
 0x2e9   : > { %v2824_v58 = vpop.eup %2823  ;;  %2847 = vrcp.f32 %v1870_v63  ;;  %v1700_v12 = vadd.f32 %v1560_v47, %v1165_v45  ;;  %v1565_v42 = vpop.f32.mrf.mxu1  ;;  %v1562_v7 = vadd.f32 %v1561_v16, %v3789_v24  ;;  %v1632_v29 = vadd.f32 %v1631_v57, %v3845_v43 }
 0x2ea   : > { %v2826_v51 = vpop.eup %2825  ;;  %2849 = vpow2.f32 %v2321_v38  ;;  %v2337_v32 = vmul.f32 -1.442695, %v1811_v44  ;;  %v1566_v45 = vadd.f32 %v1565_v42, %v3779_v13  ;;  %v2503_v47 = vpop.f32.mrf.mxu0  ;;  %v1175_v36 = vadd.f32 %v3815_v61, %v3766_v5 }
 0x2eb   : > { %2851 = vrcp.f32 %v1759_v3  ;;  %v1760_v49 = vadd.f32 1.0, %v2826_v51  ;;  %v2322_v1 = vmul.f32 -1.442695, %v1700_v12  ;;  %v1567_v8 = vpop.f32.mrf.mxu1  ;;  %v3924_v54 = vpop.eup %2827  ;;  %v1812_v63 = vadd.f32 %v1562_v7, %v1167_v39 }
 0x2ec   : > { %2853 = vrcp.f32 %v1871_v19  ;;  %v1916_v40 = vmul.f32 %v2824_v58, %v1632_v29  ;;  %v3931_v30 = vadd.f32 %v3820_v22, %v3786_v23  ;;  %v3935_v3 = vadd.f32 %v3827_v46, %v3766_v5  ;;  %v1644_v51 = vpop.f32.mrf.mxu0 }
 0x2ed   : > { %v2830_v38 = vpop.eup %2829  ;;  %2855 = vrcp.f32 %v1760_v49  ;;  %v1569_v44 = vpop.f32.mrf.mxu1  ;;  %v1640_v28 = vadd.f32 %v2500_v62, %v3845_v43  ;;  %v2338_v39 = vmul.f32 -1.442695, %v1812_v63  ;;  %v3942_v61 = vadd.f32 %v3830_v50, %v3786_v23 }
 0x2ee   : > { %v2832_v16 = vpop.eup %2831  ;;  %v1917_v57 = vmul.f32 %v2830_v38, %v1637_v25  ;;  %2857 = vtanh.f32 %v1931_v59  ;;  %v3946_v22 = vadd.f32 %v3835_v37, %v3766_v5  ;;  %v3950_v46 = vadd.f32 %v3840_v31, %v3786_v23 }
 0x2ef   : > { %v3938_v58 = vpop.eup %2833  ;;  %2859 = vpow2.f32 %v2322_v1  ;;  %v1571_v19 = vpop.f32.mrf.mxu1  ;;  %v1932_v12 = vadd.f32 %v1916_v40, %v3874_v52  ;;  %v1701_v42 = vadd.f32 %v1566_v45, %v1171_v56  ;;  %v1872_v59 = vadd.f32 1.0, %v2832_v16 }
 0x2f0   : > { %v2836_v25 = vpop.eup %2835  ;;  %v1933_v62 = vadd.f32 %v1917_v57, %v3849_v41  ;;  %2861 = vpow2.f32 %v2337_v32  ;;  %v1570_v37 = vadd.f32 %v1569_v44, %v3779_v13  ;;  %v3957_v31 = vadd.f32 %v3856_v4, %v3766_v5 }
 0x2f1   : > { %v2838_v50 = vpop.eup %2837  ;;  %v1761_v7 = vadd.f32 1.0, %v2836_v25  ;;  %2863 = vpow2.f32 %v2338_v39  ;;  %v1575_v29 = vpop.f32.mrf.mxu1  ;;  %v1568_v41 = vadd.f32 %v1567_v8, %v3789_v24  ;;  %v3962_v52 = vmul.f32 %v3924_v54, %v3658_v9 }
 0x2f2   : > { %v2840_v49 = vpop.eup %2839  ;;  %2865 = vtanh.f32 %v1933_v62  ;;  %v1918_v1 = vmul.f32 %v2838_v50, %v1640_v28  ;;  %v3966_v56 = vadd.f32 %v3880_v11, %v3766_v5  ;;  %v3970_v63 = vadd.f32 %v3889_v27, %v3786_v23  ;;  %v2504_v9 = vpop.f32.mrf.mxu0 }
 0x2f3   : > { %v2842_v32 = vpop.eup %2841  ;;  %2867 = vrcp.f32 %v1761_v7  ;;  %v1577_v4 = vpop.f32.mrf.mxu1  ;;  %v1572_v38 = vadd.f32 %v1571_v19, %v3789_v24  ;;  %v2323_v16 = vmul.f32 -1.442695, %v1701_v42  ;;  %v1702_v57 = vadd.f32 %v1570_v37, %v1175_v36 }
 0x2f4   : > { %v3972_v40 = vpop.eup %2843  ;;  %v1762_v45 = vadd.f32 1.0, %v2842_v32  ;;  %v1934_v8 = vadd.f32 %v1918_v1, %v3864_v0  ;;  %2869 = vtanh.f32 %v1932_v12  ;;  %v1576_v5 = vadd.f32 %v1575_v29, %v3779_v13  ;;  %v1647_v37 = vpop.f32.mrf.mxu0 }
 0x2f5   : > { %v2846_v44 = vpop.eup %2845  ;;  %2871 = vrcp.f32 %v1872_v59  ;;  %v1579_v11 = vpop.f32.mrf.mxu1  ;;  %v1873_v27 = vadd.f32 1.0, %v2840_v49  ;;  %v1963_v39 = vsub.f32 1.0, %v3924_v54  ;;  %v1813_v25 = vadd.f32 %v1568_v41, %v3918_v33 }
 0x2f6   : > { %v3977_v28 = vpop.eup %2847  ;;  %2873 = vrcp.f32 %v1762_v45  ;;  %v3983_v19 = vmul.f32 %v3938_v58, %v3661_v10  ;;  %v1653_v62 = vadd.f32 %v2503_v47, %v3845_v43  ;;  %v1645_v36 = vadd.f32 %v1644_v51, %v3845_v43 }
 0x2f7   : > { %v2850_v0 = vpop.eup %2849  ;;  %2875 = vtanh.f32 %v1934_v8  ;;  %v1581_v12 = vpop.f32.mrf.mxu1  ;;  %v1874_v50 = vadd.f32 1.0, %v2846_v44  ;;  %v1814_v7 = vadd.f32 %v1572_v38, %v3931_v30  ;;  %v1580_v54 = vadd.f32 %v1579_v11, %v3779_v13 }
 0x2f8   : > { %v2852_v42 = vpop.eup %2851  ;;  %v1763_v59 = vadd.f32 1.0, %v2850_v0  ;;  %2877 = vpow2.f32 %v2323_v16  ;;  %v2324_v29 = vmul.f32 -1.442695, %v1702_v57  ;;  %v1703_v10 = vadd.f32 %v1576_v5, %v3935_v3  ;;  %v3998_v3 = vpop.f32.mrf.mxu0 }
 0x2f9   : > { %v3989_v33 = vpop.eup %2853  ;;  %v1578_v49 = vadd.f32 %v1577_v4, %v3789_v24  ;;  %v1585_v47 = vpop.f32.mrf.mxu1  ;;  %v1997_v51 = vmul.f32 %v3972_v40, %v3669_v14  ;;  %2879 = vrcp.f32 %v1873_v27  ;;  %v1964_v41 = vsub.f32 1.0, %v3938_v58 }
 0x2fa   : > { %v2856_v1 = vpop.eup %2855  ;;  %v2339_v30 = vmul.f32 -1.442695, %v1813_v25  ;;  %2881 = vrcp.f32 %v1763_v59  ;;  %v1965_v45 = vsub.f32 1.0, %v3972_v40  ;;  %v1919_v8 = vmul.f32 %v2852_v42, %v1645_v36 }
 0x2fb   : > { %v2858_v32 = vpop.eup %2857  ;;  %v1648_v38 = vadd.f32 %v1647_v37, %v3845_v43  ;;  %v1587_v44 = vpop.f32.mrf.mxu1  ;;  %2883 = vrcp.f32 %v1874_v50  ;;  %v2340_v57 = vmul.f32 -1.442695, %v1814_v7  ;;  %v1704_v14 = vadd.f32 %v1580_v54, %v3946_v22 }
 0x2fc   : > { %v2860_v4 = vpop.eup %2859  ;;  %v1979_v16 = vmul.f32 %v2858_v32, %v1963_v39  ;;  %2885 = vpow2.f32 %v2324_v29  ;;  %v2325_v11 = vmul.f32 -1.442695, %v1703_v10  ;;  %v1815_v27 = vadd.f32 %v1578_v49, %v3942_v61  ;;  %v1660_v7 = vpop.f32.mrf.mxu0 }
 0x2fd   : > { %v4001_v5 = vpop.eup %2861  ;;  %v1764_v58 = vadd.f32 1.0, %v2860_v4  ;;  %v1589_v40 = vpop.f32.mrf.mxu1  ;;  %v1998_v0 = vmul.f32 %v3977_v28, %v3672_v15  ;;  %2887 = vpow2.f32 %v2339_v30  ;;  %v1586_v39 = vadd.f32 %v1585_v47, %v3779_v13 }
 0x2fe   : > { %v4004_v25 = vpop.eup %2863  ;;  %v2011_v36 = vadd.f32 %v3962_v52, %v1979_v16  ;;  %v1935_v42 = vadd.f32 %v1919_v8, %v3884_v2  ;;  %v1656_v50 = vadd.f32 %v2504_v9, %v3845_v43  ;;  %v1920_v59 = vmul.f32 %v2856_v1, %v1648_v38  ;;  %v4022_v38 = vpop.f32.mrf.mxu0 }
 0x2ff   : > { %v2866_v22 = vpop.eup %2865  ;;  %2889 = vrcp.f32 %v1764_v58  ;;  %v1591_v61 = vpop.f32.mrf.mxu1  ;;  %v2326_v29 = vmul.f32 -1.442695, %v1704_v14  ;;  %v1582_v15 = vadd.f32 %v1581_v12, %v3789_v24  ;;  %v2341_v49 = vmul.f32 -1.442695, %v1815_v27 }
 0x300   : > { %v2868_v54 = vpop.eup %2867  ;;  %v1981_v37 = vmul.f32 %v2866_v22, %v1965_v45  ;;  %2027 = vst [vmem:[%s3613_s23] sm:$0xff] %v2011_v36  ;;  %2891 = vpow2.f32 %v2340_v57  ;;  %v1590_v47 = vadd.f32 %v1589_v40, %v3779_v13  ;;  %v1705_v30 = vadd.f32 %v1586_v39, %v3957_v31 }
 0x301   : > { %v2870_v52 = vpop.eup %2869  ;;  %2893 = vpow2.f32 %v2325_v11  ;;  %v1921_v10 = vmul.f32 %v2868_v54, %v1653_v62  ;;  %v1592_v32 = vadd.f32 %v1591_v61, %v3789_v24  ;;  %v1966_v8 = vsub.f32 1.0, %v3977_v28 }
 0x302   : > { %v4015_v2 = vpop.eup %2871  ;;  %v2013_v9 = vadd.f32 %v1997_v51, %v1981_v37  ;;  %v1980_v1 = vmul.f32 %v2870_v52, %v1964_v41  ;;  %2895 = vtanh.f32 %v1935_v42  ;;  %v1936_v62 = vadd.f32 %v1920_v59, %v3902_v48 }
 0x303   : > { %v2874_v45 = vpop.eup %2873  ;;  %v1937_v12 = vadd.f32 %v1921_v10, %v3878_v35  ;;  %2897 = vpow2.f32 %v2326_v29  ;;  %v1816_v31 = vadd.f32 %v1582_v15, %v3950_v46  ;;  %v1706_v28 = vadd.f32 %v1590_v47, %v3966_v56  ;;  %v1663_v46 = vpop.f32.mrf.mxu0 }
 0x304   : > { %v2876_v13 = vpop.eup %2875  ;;  %2029 = vst [vmem:[%s3613_s23 + $0x10] sm:$0xff] %v2013_v9  ;;  %v2012_v51 = vadd.f32 %v3983_v19, %v1980_v1  ;;  %v1922_v41 = vmul.f32 %v2874_v45, %v1656_v50  ;;  %v4029_v16 = vadd.f32 %v1592_v32, %v3970_v63  ;;  %v2327_v57 = vmul.f32 -1.442695, %v1705_v30 }
 0x305   : > { %v1982_v4 = vmul.f32 %v2876_v13, %v1966_v8  ;;  %2899 = vtanh.f32 %v1937_v12  ;;  %v2878_v35 = vpop.eup %2877  ;;  %v1588_v19 = vadd.f32 %v1587_v44, %v3789_v24  ;;  %v1193_v56 = vadd.f32 %v3867_v34, %v3786_v23  ;;  %v4048_v10 = vpop.f32.mrf.mxu0 }
 0x306   : > { %2028 = vst [vmem:[%s3613_s23 + $0x8] sm:$0xff] %v2012_v51  ;;  %2901 = vpow2.f32 %v2341_v49  ;;  %v1938_v48 = vadd.f32 %v1922_v41, %v3893_v26  ;;  %v2880_v14 = vpop.eup %2879  ;;  %v1765_v11 = vadd.f32 1.0, %v2878_v35  ;;  %v1875_v63 = vadd.f32 1.0, %v4001_v5 }
 0x307   : > { %v2014_v58 = vadd.f32 %v1998_v0, %v1982_v4  ;;  %2903 = vtanh.f32 %v1936_v62  ;;  %v2882_v27 = vpop.eup %2881  ;;  %v1661_v26 = vadd.f32 %v1660_v7, %v3845_v43  ;;  %v2342_v24 = vmul.f32 -1.442695, %v1816_v31  ;;  %v1676_v13 = vpop.f32.mrf.mxu0 }
 0x308   : > { %2905 = vtanh.f32 %v1938_v48  ;;  %v4037_v40 = vpop.eup %2883  ;;  %v1817_v44 = vadd.f32 %v1588_v19, %v1193_v56  ;;  %v1664_v0 = vadd.f32 %v1663_v46, %v3845_v43  ;;  %v2328_v42 = vmul.f32 -1.442695, %v1706_v28 }
 0x309   : > { %2030 = vst [vmem:[%s3613_s23 + $0x18] sm:$0xff] %v2014_v58  ;;  %2907 = vrcp.f32 %v1765_v11  ;;  %v2886_v36 = vpop.eup %2885  ;;  %v1923_v50 = vmul.f32 %v2882_v27, %v1661_v26  ;;  %v1876_v34 = vadd.f32 1.0, %v4004_v25  ;;  %v1266_v59 = vadd.f32 %v3736_v55, %v3770_v6  ;;  %v4272_v26 = vld [vmem:[#allocation26_spill] sm:$0xff] }
 0x30a   : > { %2909 = vpow2.f32 %v2327_v57  ;;  %v2888_v39 = vpop.eup %2887  ;;  %v1766_v22 = vadd.f32 1.0, %v2886_v36  ;;  %v1269_v54 = vadd.f32 %v3746_v60, %v3770_v6  ;;  %v2343_v37 = vmul.f32 -1.442695, %v1817_v44 }
 0x30b   : > { %2911 = vrcp.f32 %v1875_v63  ;;  %v1967_v15 = vsub.f32 1.0, %v3989_v33  ;;  %v1939_v52 = vadd.f32 %v1923_v50, %v1266_v59  ;;  %v1999_v49 = vmul.f32 %v3989_v33, %v3679_v17  ;;  %v4273_v59 = vld [vmem:[#allocation28_spill] sm:$0xff] }
 0x30c   : > { %v2890_v23 = vpop.eup %2889  ;;  %2913 = vrcp.f32 %v1766_v22  ;;  %v1968_v55 = vsub.f32 1.0, %v4015_v2  ;;  %v1969_v9 = vsub.f32 1.0, %v2880_v14  ;;  %v2001_v32 = vmul.f32 %v2880_v14, %v3689_v20 }
 0x30d   : > { %v2892_v5 = vpop.eup %2891  ;;  %v1924_v61 = vmul.f32 %v2890_v23, %v1664_v0  ;;  %2915 = vpow2.f32 %v2342_v24  ;;  %v1669_v8 = vadd.f32 %v3998_v3, %v3845_v43  ;;  %v1877_v62 = vadd.f32 1.0, %v2888_v39 }
 0x30e   : > { %v2894_v7 = vpop.eup %2893  ;;  %2917 = vpow2.f32 %v2328_v42  ;;  %v2000_v41 = vmul.f32 %v4015_v2, %v3682_v18  ;;  %v1970_v20 = vsub.f32 1.0, %v4037_v40  ;;  %v2344_v3 = vmul.f32 -1.442695, %v4029_v16  ;;  %v4068_v16 = vpop.f32.mrf.mxu0 }
 0x30f   : > { %v1767_v29 = vadd.f32 1.0, %v2894_v7  ;;  %v2896_v25 = vpop.eup %2895  ;;  %2919 = vrcp.f32 %v1876_v34  ;;  %v1940_v1 = vadd.f32 %v1924_v61, %v1269_v54  ;;  %v1274_v48 = vadd.f32 %v3732_v53, %v3770_v6 }
 0x310   : > { %v2898_v47 = vpop.eup %2897  ;;  %v1983_v60 = vmul.f32 %v2896_v25, %v1967_v15  ;;  %v2002_v57 = vmul.f32 %v4037_v40, %v3692_v21  ;;  %v1672_v58 = vadd.f32 %v4022_v38, %v3845_v43  ;;  %v1878_v56 = vadd.f32 1.0, %v2892_v5  ;;  %v1679_v44 = vpop.f32.mrf.mxu0 }
 0x311   : > { %2921 = vrcp.f32 %v1767_v29  ;;  %v1768_v45 = vadd.f32 1.0, %v2898_v47  ;;  %v1277_v36 = vadd.f32 %v4272_v26, %v3770_v6  ;;  %v1677_v38 = vadd.f32 %v1676_v13, %v3845_v43  ;;  %v2961_v29 = vld [vmem:[%s3603_s15 + $0x40] sm:$0xff]  ;;  %v4276_v26 = vld [vmem:[#allocation29_spill] sm:$0xff] }
 0x312   : > { %v2900_v30 = vpop.eup %2899  ;;  %2923 = vpow2.f32 %v2343_v37  ;;  %v2015_v33 = vadd.f32 %v1999_v49, %v1983_v60  ;;  %v1680_v34 = vadd.f32 %v1679_v44, %v3845_v43  ;;  %v1282_v61 = vadd.f32 %v4273_v59, %v3770_v6 }
 0x313   : > { %v2902_v12 = vpop.eup %2901  ;;  %v1985_v17 = vmul.f32 %v2900_v30, %v1969_v9  ;;  %2925 = vtanh.f32 %v1939_v52  ;;  %v4274_v9 = vld [vmem:[#allocation30_spill] sm:$0xff]  ;;  %v2962_v30 = vld [vmem:[%s3603_s15 + $0x48] sm:$0xff] }
 0x314   : > { %v2904_v51 = vpop.eup %2903  ;;  %2927 = vrcp.f32 %v1768_v45  ;;  %2031 = vst [vmem:[%s3613_s23 + $0x20] sm:$0xff] %v2015_v33  ;;  %v1879_v63 = vadd.f32 1.0, %v2902_v12  ;;  %v1285_v60 = vadd.f32 %v4274_v9, %v3770_v6 }
 0x315   : > { %v2906_v31 = vpop.eup %2905  ;;  %v2017_v4 = vadd.f32 %v2001_v32, %v1985_v17  ;;  %v1984_v28 = vmul.f32 %v2904_v51, %v1968_v55  ;;  %2929 = vtanh.f32 %v1940_v1  ;;  %v1685_v51 = vadd.f32 %v4048_v10, %v3845_v43 }
 0x316   : > { %v2908_v35 = vpop.eup %2907  ;;  %v1986_v19 = vmul.f32 %v2906_v31, %v1970_v20  ;;  %2931 = vrcp.f32 %v1877_v62 }
 0x317   : > { %v2910_v18 = vpop.eup %2909  ;;  %2033 = vst [vmem:[%s3613_s23 + $0x30] sm:$0xff] %v2017_v4  ;;  %v2016_v2 = vadd.f32 %v2000_v41, %v1984_v28  ;;  %v1925_v14 = vmul.f32 %v2908_v35, %v1669_v8  ;;  %2933 = vpow2.f32 %v2344_v3  ;;  %v4275_v4 = vld [vmem:[#allocation27_spill] sm:$0xff]  ;;  %v2963_v35 = vld [vmem:[%s3603_s15 + $0x50] sm:$0xff] }
 0x318   : > { %v2018_v11 = vadd.f32 %v2002_v57, %v1986_v19  ;;  %v1769_v46 = vadd.f32 1.0, %v2910_v18  ;;  %v2912_v27 = vpop.eup %2911  ;;  %v1290_v28 = vadd.f32 %v4275_v4, %v3770_v6 }
 0x319   : > { %2032 = vst [vmem:[%s3613_s23 + $0x28] sm:$0xff] %v2016_v2  ;;  %v1941_v53 = vadd.f32 %v1925_v14, %v1274_v48  ;;  %v2914_v21 = vpop.eup %2913  ;;  %v1971_v7 = vsub.f32 1.0, %v2912_v27  ;;  %v2003_v15 = vmul.f32 %v2961_v29, %v2912_v27 }
 0x31a   : > { %2034 = vst [vmem:[%s3613_s23 + $0x38] sm:$0xff] %v2018_v11  ;;  %2935 = vrcp.f32 %v1769_v46  ;;  %v2916_v40 = vpop.eup %2915  ;;  %v1926_v24 = vmul.f32 %v2914_v21, %v1672_v58  ;;  %v1688_v58 = vadd.f32 %v4068_v16, %v3845_v43 }
 0x31b   : > { %2937 = vtanh.f32 %v1941_v53  ;;  %v2918_v0 = vpop.eup %2917  ;;  %v1880_v23 = vadd.f32 1.0, %v2916_v40  ;;  %v2964_v53 = vld [vmem:[%s3603_s15 + $0x58] sm:$0xff] }
 0x31c   : > { %v2920_v39 = vpop.eup %2919  ;;  %2939 = vrcp.f32 %v1878_v56  ;;  %v1770_v22 = vadd.f32 1.0, %v2918_v0  ;;  %v1942_v42 = vadd.f32 %v1926_v24, %v1277_v36 }
 0x31d   : > { %2941 = vrcp.f32 %v1879_v63  ;;  %v1972_v49 = vsub.f32 1.0, %v2920_v39  ;;  %v2004_v32 = vmul.f32 %v2962_v30, %v2920_v39 }
 0x31e   : > { %v2922_v50 = vpop.eup %2921  ;;  %2943 = vrcp.f32 %v1770_v22 }
 0x31f   : > { %v2924_v5 = vpop.eup %2923  ;;  %v1927_v54 = vmul.f32 %v2922_v50, %v1677_v38  ;;  %2945 = vtanh.f32 %v1942_v42  ;;  %v2965_v38 = vld [vmem:[%s3603_s15 + $0x60] sm:$0xff]  ;;  %v2966_v42 = vld [vmem:[%s3603_s15 + $0x68] sm:$0xff] }
 0x320   : > { %v2926_v37 = vpop.eup %2925  ;;  %2947 = vrcp.f32 %v1880_v23  ;;  %v1881_v62 = vadd.f32 1.0, %v2924_v5 }
 0x321   : > { %v2928_v52 = vpop.eup %2927  ;;  %v1987_v25 = vmul.f32 %v2926_v37, %v1971_v7  ;;  %v1943_v55 = vadd.f32 %v1927_v54, %v1282_v61  ;;  %v2967_v54 = vld [vmem:[%s3603_s15 + $0x70] sm:$0xff] }
 0x322   : > { %v2930_v47 = vpop.eup %2929  ;;  %v1928_v1 = vmul.f32 %v2928_v52, %v1680_v34 }
 0x323   : > { %v2019_v45 = vadd.f32 %v2003_v15, %v1987_v25  ;;  %v1988_v8 = vmul.f32 %v2930_v47, %v1972_v49  ;;  %2949 = vtanh.f32 %v1943_v55  ;;  %v2932_v12 = vpop.eup %2931  ;;  %v2968_v49 = vld [vmem:[%s3603_s15 + $0x78] sm:$0xff] }
 0x324   : > { %v1944_v17 = vadd.f32 %v1928_v1, %v1285_v60  ;;  %v2934_v13 = vpop.eup %2933  ;;  %v1973_v20 = vsub.f32 1.0, %v2932_v12  ;;  %v2005_v48 = vmul.f32 %v2963_v35, %v2932_v12 }
 0x325   : > { %2035 = vst [vmem:[%s3613_s23 + $0x40] sm:$0xff] %v2019_v45  ;;  %v2020_v33 = vadd.f32 %v2004_v32, %v1988_v8  ;;  %v1882_v57 = vadd.f32 1.0, %v2934_v13 }
 0x326   : > { %2951 = vtanh.f32 %v1944_v17 }
 0x327   : > { %v2936_v41 = vpop.eup %2935  ;;  %2036 = vst [vmem:[%s3613_s23 + $0x48] sm:$0xff] %v2020_v33  ;;  %2953 = vrcp.f32 %v1881_v62 }
 0x328   : > { %v2938_v31 = vpop.eup %2937  ;;  %v1929_v3 = vmul.f32 %v2936_v41, %v1685_v51 }
 0x329   : > { %v1989_v19 = vmul.f32 %v2938_v31, %v1973_v20  ;;  %v2940_v18 = vpop.eup %2939 }
 0x32a   : > { %v1945_v2 = vadd.f32 %v1929_v3, %v1290_v28  ;;  %v2942_v14 = vpop.eup %2941  ;;  %v1974_v6 = vsub.f32 1.0, %v2940_v18  ;;  %v2006_v21 = vmul.f32 %v2964_v53, %v2940_v18 }
 0x32b   : > { %v2021_v10 = vadd.f32 %v2005_v48, %v1989_v19  ;;  %v2944_v11 = vpop.eup %2943  ;;  %v1975_v40 = vsub.f32 1.0, %v2942_v14  ;;  %v2007_v43 = vmul.f32 %v2965_v38, %v2942_v14 }
 0x32c   : > { %2955 = vtanh.f32 %v1945_v2  ;;  %v1930_v46 = vmul.f32 %v2944_v11, %v1688_v58  ;;  %v2946_v27 = vpop.eup %2945 }
 0x32d   : > { %2957 = vrcp.f32 %v1882_v57  ;;  %2037 = vst [vmem:[%s3613_s23 + $0x50] sm:$0xff] %v2021_v10  ;;  %v2948_v56 = vpop.eup %2947  ;;  %v1990_v63 = vmul.f32 %v2946_v27, %v1974_v6 }
 0x32e   : > { %v1946_v36 = vadd.f32 %v1930_v46, %v4276_v26  ;;  %v1976_v0 = vsub.f32 1.0, %v2948_v56  ;;  %v2008_v50 = vmul.f32 %v2966_v42, %v2948_v56 }
 0x32f   : > { %v2022_v16 = vadd.f32 %v2006_v21, %v1990_v63 }
 0x330   : > { %v2950_v24 = vpop.eup %2949  ;;  %2959 = vtanh.f32 %v1946_v36 }
 0x331   : > { %v1991_v44 = vmul.f32 %v2950_v24, %v1975_v40  ;;  %2038 = vst [vmem:[%s3613_s23 + $0x58] sm:$0xff] %v2022_v16 }
 0x333   : > { %v2952_v39 = vpop.eup %2951  ;;  %v2023_v22 = vadd.f32 %v2007_v43, %v1991_v44 }
 0x334   : > { %v1992_v23 = vmul.f32 %v2952_v39, %v1976_v0  ;;  %v2954_v34 = vpop.eup %2953 }
 0x335   : > { %2039 = vst [vmem:[%s3613_s23 + $0x60] sm:$0xff] %v2023_v22  ;;  %v1977_v59 = vsub.f32 1.0, %v2954_v34  ;;  %v2009_v37 = vmul.f32 %v2967_v54, %v2954_v34 }
 0x336   : > { %v2024_v5 = vadd.f32 %v2008_v50, %v1992_v23 }
 0x338   : > { %2040 = vst [vmem:[%s3613_s23 + $0x68] sm:$0xff] %v2024_v5 }
 0x339   : > { %v2956_v61 = vpop.eup %2955 }
 0x33a   : > { %v2958_v7 = vpop.eup %2957  ;;  %v1993_v29 = vmul.f32 %v2956_v61, %v1977_v59 }
 0x33b   : > { %v1978_v52 = vsub.f32 1.0, %v2958_v7  ;;  %v2010_v55 = vmul.f32 %v2968_v49, %v2958_v7 }
 0x33c   : > { %v2025_v15 = vadd.f32 %v2009_v37, %v1993_v29 }
 0x33d   : > { %v2960_v25 = vpop.eup %2959 }
 0x33e   : > { %2041 = vst [vmem:[%s3613_s23 + $0x70] sm:$0xff] %v2025_v15  ;;  %v1994_v47 = vmul.f32 %v2960_v25, %v1978_v52 }
 0x340   : > { %v2026_v9 = vadd.f32 %v2010_v55, %v1994_v47 }
 0x342   : > { %2042 = vst [vmem:[%s3613_s23 + $0x78] sm:$0xff] %v2026_v9 }
 0x343 PF: > { %s4277_s5 = sld [smem:[#allocation20_spill]]  ;;  %s2057_s19 = sshll.u32 %s3613_s23, 4  ;;  %s4110_s19 = int_to_ptr.vmem [resolvable:$true] %s2057_s19 }
 0x344   : > { %s4278_s4 = sld [smem:[#allocation37_spill]]  ;;  %s4114_s15 = scalar_lea.sflag [#allocation5], %s394_s30 }
 0x345   : > { %s3105_s8 = scalar_lea.vmem %s4110_s19, 2048  ;;  %p4279_p3 = scmp.ne.s32.totalorder %s4250_s14, 0 }
 0x346   : > { %p3106_p11 = scmp.ne.s32.totalorder %s4110_s19, %s3105_s8  ;;  %s3276_s26 = smov [#allocation12]  }
 0x347   : > { %s3109_s20 = sshll.u32 %s3276_s26, 4  ;;  %s3110_s20 = int_to_ptr.vmem [resolvable:$false] %s3109_s20 }
 0x348   : > { %p3107_p10 = pnand %p3106_p11, %p4279_p3  ;;  %s3111_s6 = scalar_lea.vmem %s3110_s20, 4096 }
 0x349   : > { %s2352_s9 = sshll.u32 %s4277_s5, 11  ;;  %p3112_p6 = scmp.lt.s32.totalorder %s4110_s19, %s3110_s20 }
 0x34a   : > { %s4107_s22 = scalar_lea.hbm %s4278_s4, %s2352_s9  ;;  %p3108_p9 = pneg %p3107_p10 }
 0x34b   : > { %p3113_p8 = scmp.lt.s32.totalorder %s3111_s6, %s3105_s8 }
 0x34d   : > { %p3114_p12 = por %p3113_p8, %p3112_p6 }
 0x34f   : > { %p3115_p5 = pnand %p3114_p12, %p3108_p9 }
 0x351   : > { %3118 = shalt.err (!%p3115_p5)
}
 0x352   : > { %s3119_s30 = scalar_lea.hbm %s4107_s22, 2048  ;;  %s3123_s3 = scalar_lea.hbm %s4278_s4, 4096 }
 0x353   : > { %p3120_p7 = scmp.ne.s32.totalorder %s4107_s22, %s3119_s30  ;;  %p3124_p1 = scmp.lt.s32.totalorder %s4107_s22, %s4278_s4 }
 0x354   : > { %p3125_p0 = scmp.lt.s32.totalorder %s3123_s3, %s3119_s30 }
 0x355   : > { %p3121_p4 = pnand %p3120_p7, %p4279_p3 }
 0x356   : > { %p3126_p13 = por %p3125_p0, %p3124_p1 }
 0x357   : > { %p3122_p2 = pneg %p3121_p4 }
 0x359   : > { %p3127_p11 = pnand %p3126_p13, %p3122_p2 }
 0x35b   : > { %3130 = shalt.err (!%p3127_p11)
}
 0x35c   : > { %s3277_s7 = smov 128   ;;  %s3278_s21 = smov 8  }
 0x35d   : > { %2544 = dma.vmem_to_hbm [thread:$0]  (%p4279_p3), %s4110_s19, 2048, %s4107_s22, %s4114_s15, %s3277_s7, %s3277_s7, %s3278_s21  }
 0x35e PF: > { %p2572_p10 = scmp.ge.s32.totalorder %s3261_s18, 2  ;;  %s2072_s8 = sand.u32 1, %s3209_s27  }
 0x35f   : > { %p4280_p9 = scmp.ne.s32.totalorder %s4251_s24, 0  ;;  %s2073_s26 = scalar_lea.sflag [#allocation5], %s2072_s8 }
 0x361   : > { %p2564_p6 = pnand %p2572_p10, %p4280_p9 }
 0x363   : > { %p2565_p8 = pneg %p2564_p6 }
 0x365   : > { %3204 = dma.done.wait (%p2565_p8), %s2073_s26, 2048  }
 0x366   : > { %3206 = vsyncadd (%p2565_p8), %s2073_s26, 4294965248  ;;  %s28_s18 = sadd.s32 1, %s3261_s18   ;;  %s4282_s30 = sld [smem:[#allocation18_spill]] }
 0x367   : > { %p4142_p12 = scmp.ge.s32.totalorder %s28_s18, 8   ;;  %s4283_s14 = sld [smem:[#allocation24_spill]] }
 0x368   : > { %s4284_s24 = sld [smem:[#allocation22_spill]]  ;;  %s4286_s27 = smov %s3213_s28 }
 0x369   : > { %s4285_s22 = sld [smem:[#allocation23_spill]]  ;;  %s4287_s28 = smov %s3217_s29 }
 0x36a   : > { %s4288_s29 = smov %s3540_s11  ;;  %s4289_s9 = smov %s3229_s10 }
 0x36b   : > { %s4291_s11 = smov %s3237_s12  ;;  %s4292_s12 = smov %s3241_s13 }
 0x36c   : > { %s4293_s13 = smov %s3503_s25  ;;  %s4295_s15 = smov %s3257_s17 }
 0x36d   : > { %s4290_s10 = smov %s4283_s14  ;;  %s4294_s14 = smov %s3253_s16 }
 0x36e   : > { %s4296_s16 = smov %s4284_s24  ;;  %27 = sbr.rel (!%p4142_p12) target bundleno = 21 (0x15), region = 137 }
 0x36f   : > { %s4297_s17 = smov %s4285_s22 }
 0x373   :  { %2078 = vsyncpa [#allocation4], 1 }
 0x374   :  { %2080 = vsyncpa [#allocation4 + $0x1], 1 }
 0x375   :  { %2081 = vsyncpa [#allocation7], 1 }
 0x376   :  { %2083 = vsyncpa [#allocation7 + $0x1], 1 }
 0x377   :  { %2084 = vsyncpa [#allocation10], 1 }
 0x378   :  { %2085 = vsyncpa [#allocation5], 1 }
 0x379   :  { %2087 = vsyncpa [#allocation5 + $0x1], 1 }

// kernel: tpu_custom_call.1
= control target key start
LH: loop header
LB: loop body
LE: loop exit
PB: predicated region body
PF: predicated region fallthrough
CT: control target
= control target key end

     0   :  { %s4189_s0 = inlined_call_operand.hbm [shape: bf16[256,768], index: 0, kind: input, shape index: {}]   ;;  %s4190_s1 = inlined_call_operand.hbm [shape: bf16[768,128], index: 1, kind: input, shape index: {}]   ;;  %s4191_s2 = inlined_call_operand.hbm [shape: f32[256,128], index: 2, kind: input, shape index: {}]   ;;  %s4192_s3 = inlined_call_operand.hbm [shape: bf16[128,384], index: 3, kind: input, shape index: {}]   ;;  %s4193_s4 = inlined_call_operand.hbm [shape: bf16[128,384], index: 4, kind: input, shape index: {}]   ;;  %s4194_s5 = inlined_call_operand.vmem [shape: f32[1,128], index: 5, kind: input, shape index: {}]   ;;  %s4195_s6 = inlined_call_operand.vmem [shape: f32[1,384], index: 6, kind: input, shape index: {}]   ;;  %s4196_s7 = inlined_call_operand.vmem [shape: f32[1,384], index: 7, kind: input, shape index: {}]   ;;  %s4197_s8 = inlined_call_operand.hbm [shape: f32[256,128], index: 8, kind: output, shape index: {}]  }
   0x1   :  { %4214 = sst [smem:[#allocation31_spill]] %s4190_s1 }
   0x2   :  { %4215 = sst [smem:[#allocation32_spill]] %s4192_s3 }
   0x3   :  { %4216 = sst [smem:[#allocation33_spill]] %s4193_s4 }
   0x4   :  { %4217 = sst [smem:[#allocation34_spill]] %s4194_s5 }
   0x5   :  { %4218 = sst [smem:[#allocation35_spill]] %s4195_s6 }
   0x6   :  { %4219 = sst [smem:[#allocation36_spill]] %s4196_s7 }
   0x7   :  { %4220 = sst [smem:[#allocation37_spill]] %s4197_s8 }
   0x8   :  { %13 = vsyncpa [#allocation4], 0 }
   0x9   :  { %15 = vsyncpa [#allocation4 + $0x1], 0 }
   0xa   :  { %16 = vsyncpa [#allocation7], 0 }
   0xb   :  { %18 = vsyncpa [#allocation7 + $0x1], 0 }
   0xc   :  { %19 = vsyncpa [#allocation10], 0 }
   0xd   :  { %20 = vsyncpa [#allocation5], 0 }
   0xe   :  { %22 = vsyncpa [#allocation5 + $0x1], 0  ;;  %s3324_s27 = smov 0   ;;  %s3326_s28 = smov 0  }
   0xf   :  { %s3328_s29 = smov 0   ;;  %s3330_s30 = smov 0  }
  0x10   :  { %s3332_s9 = smov 0   ;;  %s3334_s10 = smov 0  }
  0x11   :  { %s3336_s11 = smov 0   ;;  %s3338_s12 = smov 0  }
  0x12   :  { %s3340_s13 = smov 0   ;;  %s3342_s14 = smov 0  }
  0x13   :  { %s3344_s15 = smov 0   ;;  %s3346_s16 = smov 0  }
  0x14   :  { %s3348_s17 = smov 0   ;;  %s3350_s18 = smov 0  }
  0x15 LB: > { %4221 = sst [smem:[#allocation18_spill]] %s3225_s9  ;;  %s3395_s19 = sadd.s32 4294967295, %s3261_s18   ;;  %s3261_s18 = sphi %s3350_s18, %s28_s18   ;;  %s3257_s17 = sphi %s3348_s17, %s4297_s17   ;;  %s3253_s16 = sphi %s3346_s16, %s4296_s16   ;;  %s3249_s15 = sphi %s3344_s15, %s4295_s15   ;;  %s3245_s14 = sphi %s3342_s14, %s4294_s14   ;;  %s3241_s13 = sphi %s3340_s13, %s4293_s13   ;;  %s3237_s12 = sphi %s3338_s12, %s4292_s12   ;;  %s3233_s11 = sphi %s3336_s11, %s4291_s11   ;;  %s3229_s10 = sphi %s3334_s10, %s4290_s10   ;;  %s3225_s9 = sphi %s3332_s9, %s4289_s9   ;;  %s3221_s30 = sphi %s3330_s30, %s4282_s30   ;;  %s3217_s29 = sphi %s3328_s29, %s4288_s29   ;;  %s3213_s28 = sphi %s3326_s28, %s4287_s28   ;;  %s3209_s27 = sphi %s3324_s27, %s4286_s27  }
  0x16   : > { %4222 = sst [smem:[#allocation19_spill]] %s3245_s14  ;;  %p2208_p0 = scmp.ge.s32.totalorder %s3261_s18, 1 }
  0x17   : > { %4223 = sst [smem:[#allocation20_spill]] %s3249_s15  ;;  %p4207_p1 = scmp.eq.s32.totalorder %s3395_s19, 0 }
  0x18   : > { %p256_p3 = scmp.lt.s32.totalorder %s3261_s18, 7  ;;  %s3263_s21 = smov [#allocation9]  }
  0x19   : > { %s268_s22 = sshll.u32 %s3263_s21, 4  ;;  %s269_s22 = int_to_ptr.vmem [resolvable:$true] %s268_s22 }
  0x1a   : > { %p3401_p4 = pnand %p2208_p0, %p256_p3  ;;  %s2980_s24 = scalar_lea.vmem %s269_s22, 3072 }
  0x1b   : > { %p2981_p8 = scmp.ne.s32.totalorder %s269_s22, %s2980_s24  ;;  %p2988_p11 = scmp.lt.s32.totalorder %s269_s22, %s269_s22 }
  0x1c   : > { %s4224_s20 = scalar_select %p3401_p4, 1, 0 }
  0x1d   : > { %p2546_p5 = pneg %p3401_p4  ;;  %p2989_p12 = scmp.lt.s32.totalorder %s2980_s24, %s2980_s24 }
  0x1e   : > { %4225 = sst [smem:[#allocation21_spill]] %s4224_s20 }
  0x1f   : > { %p3409_p6 = pnand %p2546_p5, %p4207_p1  ;;  %p2990_p13 = por %p2989_p12, %p2988_p11 }
  0x21   : > { %p2971_p7 = pneg %p3409_p6 }
  0x23   : > { %p2983_p9 = pnand %p2981_p8, %p2971_p7 }
  0x25   : > { %p2984_p10 = pneg %p2983_p9 }
  0x27   : > { %p2991_p0 = pnand %p2990_p13, %p2984_p10 }
  0x29   : > { %2994 = shalt.err (!%p2991_p0)
}
  0x2a   : > { %s4199_s25 = smov 192   ;;  %s4200_s26 = smov 12  }
  0x2b   : > { %s4227_s3 = sld [smem:[#allocation32_spill]]  ;;  %s37_s8 = sadd.s32 1, %s3253_s16 }
  0x2c   : > { %s40_s15 = sadd.s32 1, %s3257_s17  ;;  %p38_p3 = scmp.ge.s32.totalorder %s37_s8, 3 }
  0x2d   : > { %p4208_p5 = scmp.eq.s32.totalorder %s3261_s18, 0  ;;  %s75_s7 = sadd.s32 1, %s3229_s10 }
  0x2e   : > { %p82_p8 = scmp.ne.s32.totalorder %s3229_s10, %s3225_s9  ;;  %s4299_s8 = smov (%p38_p3, %s37_s8), 0 }
  0x2f   : > { %4228 = sst [smem:[#allocation22_spill]] %s4299_s8  ;;  %s4301_s15 = smov (!%p38_p3, %s40_s15), %s3257_s17 }
  0x30   : > { %s45_s6 = ssub.s32 %s3253_s16, %s4299_s8  ;;  %p3439_p9 = por %p82_p8, %p4208_p5 }
  0x31   : > { %2549 = dma.hbm_to_vmem [thread:$0]  (!%p3409_p6), %s4227_s3, 3072, %s269_s22, [#allocation10], %s4199_s25, %s4199_s25, %s4200_s26  }
  0x32   : > { %p42_p10 = scmp.ge.s32.totalorder %s4301_s15, 2  ;;  %p73_p11 = scmp.eq.s32.totalorder %s45_s6, 0 }
  0x33   : > { %p88_p12 = scmp.ne.s32.totalorder %s3225_s9, %s3221_s30  ;;  %p4209_p13 = scmp.lt.s32.totalorder %s3261_s18, 6 }
  0x34   : > { %s4303_s15 = smov (%p42_p10, %s4301_s15), 0  ;;  %s328_s3 = sand.u32 1, %s3261_s18  }
  0x35   : > { %4230 = sst [smem:[#allocation23_spill]] %s4303_s15  ;;  %s3453_s24 = ssub.s32 %s3257_s17, %s4303_s15 }
  0x36   : > { %s3449_s21 = scalar_select %p73_p11, %s3229_s10, %s75_s7  }
  0x37   : > { %p3457_p0 = por %p88_p12, %p4207_p1  ;;  %s46_s26 = sor.u32 %s45_s6, %s3453_s24 }
  0x38   : > { %4231 = sst [smem:[#allocation24_spill]] %s3449_s21  ;;  %p3463_p8 = scmp.eq.s32.totalorder %s46_s26, 0 }
  0x39   : > { %s4232_s25 = scalar_select %p3457_p0, 1, 0 }
  0x3a   : > { %s330_s8 = sand.u32 1, %s3229_s10   ;;  %s2350_s7 = sshll.u32 %s3253_s16, 11 }
  0x3b   : > { %4233 = sst [smem:[#allocation25_spill]] %s4232_s25  ;;  %s2217_s5 = sshll.u32 %s330_s8, 7 }
  0x3c   : > { %s4235_s1 = sld [smem:[#allocation31_spill]]  ;;  %s332_s9 = scalar_lea.vmem [#allocation6], %s2217_s5 }
  0x3d   : > { %s339_s20 = sshll.u32 %s332_s9, 4  ;;  %p3477_p10 = pnand %p4209_p13, %p3439_p9  ;;  %s340_s20 = int_to_ptr.vmem [resolvable:$true] %s339_s20 }
  0x3e   : > { %s3481_s6 = scalar_lea.sflag [#allocation7], %s328_s3  ;;  %s3008_s8 = scalar_lea.vmem %s340_s20, 2048 }
  0x3f   : > { %p2997_p11 = pneg %p3477_p10  ;;  %p3009_p12 = scmp.ne.s32.totalorder %s340_s20, %s3008_s8 }
  0x40   : > { %s3266_s15 = smov [#allocation6]  }
  0x41   : > { %p3011_p2 = pnand %p3009_p12, %p2997_p11  ;;  %s3013_s26 = sshll.u32 %s3266_s15, 4  ;;  %s3014_s26 = int_to_ptr.vmem [resolvable:$false] %s3013_s26 }
  0x42   : > { %s338_s14 = scalar_lea.hbm %s4235_s1, %s2350_s7  ;;  %s3015_s5 = scalar_lea.vmem %s3014_s26, 4096 }
  0x43   : > { %p3012_p3 = pneg %p3011_p2  ;;  %p3016_p1 = scmp.lt.s32.totalorder %s340_s20, %s3014_s26 }
  0x44   : > { %p3017_p5 = scmp.lt.s32.totalorder %s3015_s5, %s3008_s8 }
  0x46   : > { %p3018_p9 = por %p3017_p5, %p3016_p1 }
  0x48   : > { %p3019_p13 = pnand %p3018_p9, %p3012_p3 }
  0x4a   : > { %3022 = shalt.err (!%p3019_p13)
}
  0x4b   : > { %s3267_s9 = smov 64   ;;  %s3268_s3 = smov 4  }
  0x4c   : > { %2559 = dma.hbm_to_vmem [thread:$0]  (!%p3477_p10), %s338_s14, 2048, %s340_s20, %s3481_s6, %s3267_s9, %s3267_s9, %s3268_s3  }
  0x4d   : > { %s3269_s22 = smov [#allocation11]  }
  0x4e   : > { %s281_s21 = sshll.u32 %s3269_s22, 4  ;;  %s282_s21 = int_to_ptr.vmem [resolvable:$true] %s281_s21 }
  0x4f   : > { %s3034_s7 = scalar_lea.vmem %s282_s21, 3072  ;;  %p3042_p0 = scmp.lt.s32.totalorder %s282_s21, %s282_s21 }
  0x50   : > { %p3035_p2 = scmp.ne.s32.totalorder %s282_s21, %s3034_s7  ;;  %p3043_p1 = scmp.lt.s32.totalorder %s3034_s7, %s3034_s7 }
  0x52   : > { %p3037_p11 = pnand %p3035_p2, %p2971_p7  ;;  %p3044_p5 = por %p3043_p1, %p3042_p0 }
  0x54   : > { %p3038_p12 = pneg %p3037_p11 }
  0x56   : > { %p3045_p13 = pnand %p3044_p5, %p3038_p12 }
  0x58   : > { %3048 = shalt.err (!%p3045_p13)
}
  0x59   : > { %s4237_s8 = smov 12   ;;  %s4238_s15 = smov 192  }
  0x5a   : > { %s4239_s4 = sld [smem:[#allocation33_spill]]  ;;  %s49_s23 = sadd.s32 1, %s3241_s13 }
  0x5b   : > { %s3503_s25 = scalar_select %p3463_p8, %s3241_s13, %s49_s23  }
  0x5c   : > { %p56_p7 = scmp.ne.s32.totalorder %s3241_s13, %s3237_s12  ;;  %p62_p0 = scmp.ne.s32.totalorder %s3237_s12, %s3233_s11 }
  0x5d   : > { %s304_s26 = sand.u32 1, %s3241_s13   ;;  %s2214_s5 = sshll.u32 %s3253_s16, 1 }
  0x5e   : > { %p4240_p3 = scmp.eq.s32.totalorder %s3261_s18, 0  ;;  %p4241_p9 = scmp.eq.s32.totalorder %s3395_s19, 0 }
  0x5f   : > { %s2212_s3 = sshll.u32 %s304_s26, 7  ;;  %s2529_s22 = smul.u32 96, %s3257_s17 }
  0x60   : > { %2552 = dma.hbm_to_vmem [thread:$0]  (!%p3409_p6), %s4239_s4, 3072, %s282_s21, [#allocation10], %s4238_s15, %s4238_s15, %s4237_s8  }
  0x61   : > { %p58_p10 = por %p4240_p3, %p56_p7  ;;  %p3515_p2 = por %p4241_p9, %p62_p0 }
  0x62   : > { %s308_s7 = scalar_lea.vmem [#allocation3], %s2212_s3  ;;  %p4243_p6 = scmp.lt.s32.totalorder %s3261_s18, 6 }
  0x63   : > { %s318_s14 = sshll.u32 %s308_s7, 4  ;;  %s315_s11 = sadd.s32 %s2529_s22, %s2214_s5  ;;  %s319_s14 = int_to_ptr.vmem [resolvable:$true] %s318_s14 }
  0x64   : > { %p3522_p11 = pnand %p4243_p6, %p58_p10  ;;  %s2216_s21 = sshll.u32 %s315_s11, 6 }
  0x65   : > { %s317_s20 = scalar_lea.hbm %s4189_s0, %s2216_s21  ;;  %s305_s23 = scalar_lea.sflag [#allocation4], %s304_s26 }
  0x66   : > { %p3051_p8 = pneg %p3522_p11  ;;  %s3062_s1 = scalar_lea.vmem %s319_s14, 2048 }
  0x67   : > { %p3063_p12 = scmp.ne.s32.totalorder %s319_s14, %s3062_s1  ;;  %s3270_s3 = smov [#allocation3]  }
  0x68   : > { %s3067_s7 = sshll.u32 %s3270_s3, 4  ;;  %s3068_s7 = int_to_ptr.vmem [resolvable:$false] %s3067_s7 }
  0x69   : > { %p3065_p1 = pnand %p3063_p12, %p3051_p8  ;;  %s3069_s4 = scalar_lea.vmem %s3068_s7, 4096 }
  0x6a   : > { %p3070_p13 = scmp.lt.s32.totalorder %s319_s14, %s3068_s7  ;;  %p3071_p7 = scmp.lt.s32.totalorder %s3069_s4, %s3062_s1 }
  0x6b   : > { %p3066_p5 = pneg %p3065_p1 }
  0x6c   : > { %p3072_p0 = por %p3071_p7, %p3070_p13 }
  0x6e   : > { %p3073_p3 = pnand %p3072_p0, %p3066_p5 }
  0x70   : > { %3076 = shalt.err (!%p3073_p3)
}
  0x71   : > { %s3271_s5 = smov 384   ;;  %s4211_s26 = smov 128  }
  0x72   : > { %s3273_s1 = smov 8   ;;  %s2207_s4 = sadd.s32 4294967294, %s3261_s18  }
  0x73   : > { %2556 = dma.hbm_to_vmem [thread:$0]  (!%p3522_p11), %s317_s20, 2048, %s319_s14, %s305_s23, %s3271_s5, %s4211_s26, %s3273_s1  }
  0x74   : > { %s101_s22 = sadd.s32 1, %s3217_s29  ;;  %p4245_p10 = scmp.eq.s32.totalorder %s3453_s24, 0 }
  0x75   : > { %p108_p9 = scmp.ne.s32.totalorder %s3217_s29, %s3213_s28  ;;  %p114_p6 = scmp.ne.s32.totalorder %s3213_s28, %s3209_s27 }
  0x76   : > { %s3540_s11 = scalar_select %p4245_p10, %s3217_s29, %s101_s22  }
  0x77   : > { %p249_p8 = scmp.eq.s32.totalorder %s2207_s4, 5  ;;  %s351_s21 = sand.u32 1, %s3217_s29  }
  0x78   : > { %p4246_p12 = scmp.eq.s32.totalorder %s3261_s18, 0  ;;  %p4247_p5 = scmp.eq.s32.totalorder %s3395_s19, 0 }
  0x79   : > { %p4249_p7 = scmp.eq.s32.totalorder %s3395_s19, 5  ;;  %p3561_p11 = por %p249_p8, %p114_p6 }
  0x7a   : > { %p110_p1 = por %p108_p9, %p4246_p12  ;;  %p3551_p13 = por %p114_p6, %p4247_p5 }
  0x7b   : > { %p3557_p0 = por %p4249_p7, %p108_p9  ;;  %s2220_s30 = sshll.u32 %s351_s21, 7 }
  0x7c   : > { %s4251_s24 = scalar_select %p3561_p11, 1, 0 }
  0x7d   : > { %s4250_s14 = scalar_select %p3557_p0, 1, 0 }
  0x7e   : > { %s2351_s15 = sshll.u32 %s3257_s17, 11  ;;  %s353_s7 = scalar_lea.vmem [#allocation8], %s2220_s30 }
  0x7f   : > { %s359_s3 = scalar_lea.hbm %s4191_s2, %s2351_s15  ;;  %s360_s5 = sshll.u32 %s353_s7, 4  ;;  %s361_s5 = int_to_ptr.vmem [resolvable:$true] %s360_s5 }
  0x80   : > { %p4252_p3 = scmp.lt.s32.totalorder %s3261_s18, 6  ;;  %s3090_s22 = scalar_lea.vmem %s361_s5, 2048 }
  0x81   : > { %p3091_p6 = scmp.ne.s32.totalorder %s361_s5, %s3090_s22  ;;  %s3274_s21 = smov [#allocation8]  }
  0x82   : > { %p3571_p10 = pnand %p4252_p3, %p110_p1  ;;  %s3095_s26 = sshll.u32 %s3274_s21, 4  ;;  %s3096_s26 = int_to_ptr.vmem [resolvable:$false] %s3095_s26 }
  0x83   : > { %s3097_s20 = scalar_lea.vmem %s3096_s26, 4096  ;;  %p3098_p5 = scmp.lt.s32.totalorder %s361_s5, %s3096_s26 }
  0x84   : > { %p3079_p9 = pneg %p3571_p10  ;;  %p3099_p7 = scmp.lt.s32.totalorder %s3097_s20, %s3090_s22 }
  0x86   : > { %p3093_p8 = pnand %p3091_p6, %p3079_p9  ;;  %p3100_p11 = por %p3099_p7, %p3098_p5 }
  0x88   : > { %p3094_p12 = pneg %p3093_p8 }
  0x8a   : > { %p3101_p0 = pnand %p3100_p11, %p3094_p12 }
  0x8c   : > { %3104 = shalt.err (!%p3101_p0)
}
  0x8d   : > { %s4254_s30 = smov 128   ;;  %372 = sbr.rel (%p3401_p4) target bundleno = 862 (0x35e), region = 52 }
  0x8e   : > { %2562 = dma.hbm_to_vmem [thread:$0]  (!%p3571_p10), %s359_s3, 2048, %s361_s5, %s3481_s6, %s4254_s30, %s4254_s30, %s3273_s1  }
  0x8f   : > { %s374_s23 = sand.u32 (!%p3401_p4), 1, %s3237_s12  }
  0x90   : > { %s2224_s7 = sshll.u32 (!%p3401_p4), %s374_s23, 7  ;;  %s375_s21 = scalar_lea.sflag (!%p3401_p4), [#allocation4], %s374_s23 }
  0x91   : > { %s3586_s26 = scalar_lea.vmem (!%p3401_p4), [#allocation3], %s2224_s7 }
  0x92   : > { %3188 = dma.done.wait (%p3515_p2), %s375_s21, 2048  }
  0x93   : > { %3190 = vsyncadd (%p3515_p2), %s375_s21, 4294965248  ;;  %s4256_s4 = sld [smem:[#allocation18_spill]]  ;;  %s383_s20 = sand.u32 1, %s3395_s19  }
  0x94   : > { %s4257_s22 = sld [smem:[#allocation25_spill]]  ;;  %s384_s3 = scalar_lea.sflag [#allocation7], %s383_s20 }
  0x99   : > { %s385_s6 = sand.u32 1, %s4256_s4  }
  0x9a   : > { %s2225_s1 = sshll.u32 %s385_s6, 7  ;;  %p4258_p4 = scmp.ne.s32.totalorder %s4257_s22, 0 }
  0x9b   : > { %s3594_s5 = scalar_lea.vmem [#allocation6], %s2225_s1 }
  0x9c   : > { %3192 = dma.done.wait (%p4258_p4), %s384_s3, 2048  }
  0x9d   : > { %3194 = vsyncadd (%p4258_p4), %s384_s3, 4294965248  ;;  %s394_s30 = sand.u32 1, %s3213_s28  }
  0x9e   : > { %s2226_s9 = sshll.u32 %s394_s30, 7 }
  0x9f   : > { %s3603_s15 = scalar_lea.vmem [#allocation8], %s2226_s9 }
  0xa0   : > { %3196 = dma.done.wait (%p3551_p13), %s384_s3, 2048  }
  0xa1   : > { %3198 = vsyncadd (%p3551_p13), %s384_s3, 4294965248  ;;  %p4259_p2 = scmp.eq.s32.totalorder %s3395_s19, 0 }
  0xa3   : > { %3200 = dma.done.wait (%p4259_p2), [#allocation10], 6144   ;;  %p4260_p1 = pmov %p4259_p2 }
  0xa4   : > { %s3613_s23 = scalar_lea.vmem [#allocation12], %s2226_s9  ;;  %s4261_s7 = sld [smem:[#allocation19_spill]] }
  0xa5   : > { %3202 = vsyncadd (%p4260_p1), [#allocation10], 4294961152 }
  0xaa   : > { %p2230_p0 = scmp.ne.s32.totalorder %s4261_s7, 0 }
  0xab   : > { %s4262_s22 = sld [smem:[#allocation34_spill]] (!%p2230_p0) }
  0xac   : > { %456 = sbr.rel (%p2230_p0) target bundleno = 186 (0xba), region = 76 }
  0xb1   : > { %v2231_v0 = vld [vmem:[%s4262_s22] ss:$0 sm:$0xff] }
  0xb2   : > { %464 = vst [vmem:[#allocation2 + $0x30] sm:$0xff] %v2231_v0  ;;  %465 = vst [vmem:[#allocation2] sm:$0xff] %v2231_v0 }
  0xb3   : > { %466 = vst [vmem:[#allocation2 + $0x58] sm:$0xff] %v2231_v0  ;;  %467 = vst [vmem:[#allocation2 + $0x18] sm:$0xff] %v2231_v0 }
  0xb4   : > { %468 = vst [vmem:[#allocation2 + $0x50] sm:$0xff] %v2231_v0  ;;  %469 = vst [vmem:[#allocation2 + $0x68] sm:$0xff] %v2231_v0 }
  0xb5   : > { %470 = vst [vmem:[#allocation2 + $0x8] sm:$0xff] %v2231_v0  ;;  %471 = vst [vmem:[#allocation2 + $0x48] sm:$0xff] %v2231_v0 }
  0xb6   : > { %472 = vst [vmem:[#allocation2 + $0x40] sm:$0xff] %v2231_v0  ;;  %473 = vst [vmem:[#allocation2 + $0x20] sm:$0xff] %v2231_v0 }
  0xb7   : > { %474 = vst [vmem:[#allocation2 + $0x10] sm:$0xff] %v2231_v0  ;;  %475 = vst [vmem:[#allocation2 + $0x38] sm:$0xff] %v2231_v0 }
  0xb8   : > { %476 = vst [vmem:[#allocation2 + $0x60] sm:$0xff] %v2231_v0  ;;  %477 = vst [vmem:[#allocation2 + $0x70] sm:$0xff] %v2231_v0 }
  0xb9   : > { %478 = vst [vmem:[#allocation2 + $0x78] sm:$0xff] %v2231_v0  ;;  %479 = vst [vmem:[#allocation2 + $0x28] sm:$0xff] %v2231_v0 }
  0xba PF: > { %v2697_v1 = vld [vmem:[%s3594_s5 + $0x78] sm:$0xff]   ;;  %v2699_v3 = vld [vmem:[%s3594_s5 + $0x70] sm:$0xff]   ;;  %v2701_v5 = vld [vmem:[%s3594_s5 + $0x68] sm:$0xff]   ;;  %s4263_s19 = sld [smem:[#allocation19_spill]] }
  0xbb   : > { %v2698_v2 = vld [vmem:[%s3594_s5 + $0x38] sm:$0xff]   ;;  %2353 = vmatprep.subr.bf16.mxu0 %v2697_v1  ;;  %2513 = vmatprep.subr.bf16.mxu1 %v2697_v1  ;;  %v2700_v4 = vld [vmem:[%s3594_s5 + $0x30] sm:$0xff]   ;;  %v2702_v6 = vld [vmem:[%s3594_s5 + $0x28] sm:$0xff]  }
  0xbc   : > { %2354 = vmatpush3.bf16.msra.mxu0 %v2698_v2  ;;  %2521 = vmatpush3.bf16.msra.mxu1 %v2698_v2  ;;  %v2703_v7 = vld [vmem:[%s3594_s5 + $0x60] sm:$0xff]   ;;  %v2705_v9 = vld [vmem:[%s3594_s5 + $0x58] sm:$0xff]   ;;  %v2707_v11 = vld [vmem:[%s3594_s5 + $0x50] sm:$0xff]  }
  0xbd   : > { %2355 = vmatprep.subr.bf16.mxu0 %v2699_v3  ;;  %2514 = vmatprep.subr.bf16.mxu1 %v2699_v3  ;;  %v2704_v8 = vld [vmem:[%s3594_s5 + $0x20] sm:$0xff]   ;;  %v2706_v10 = vld [vmem:[%s3594_s5 + $0x18] sm:$0xff]   ;;  %v2708_v14 = vld [vmem:[%s3594_s5 + $0x10] sm:$0xff]  }
  0xbe   : > { %v2715_v12 = vld [vmem:[%s3586_s26 + $0x4] ss:$8 sps:$4 sm:$0xff]   ;;  %v2713_v19 = vld [vmem:[%s3586_s26] ss:$8 sps:$4 sm:$0xff]   ;;  %v2719_v21 = vld [vmem:[%s3586_s26 + $0x14] ss:$8 sps:$4 sm:$0xff]  }
  0xbf   : > { %v2718_v13 = vld [vmem:[%s3586_s26 + $0x44] ss:$8 sps:$4 sm:$0xff]   ;;  %752 = vmatprep.mubr.bf16.mxu0 %v2715_v12  ;;  %v2716_v20 = vld [vmem:[%s3586_s26 + $0x40] ss:$8 sps:$4 sm:$0xff]   ;;  %v2721_v22 = vld [vmem:[%s3586_s26 + $0x54] ss:$8 sps:$4 sm:$0xff]  }
  0xc0   : > { %2356 = vmatpush3.bf16.msra.mxu0 %v2700_v4  ;;  %2522 = vmatpush3.bf16.msra.mxu1 %v2700_v4  ;;  %v2709_v15 = vld [vmem:[%s3594_s5 + $0x48] sm:$0xff]   ;;  %v2711_v17 = vld [vmem:[%s3594_s5 + $0x40] sm:$0xff]   ;;  %v2723_v23 = vld [vmem:[%s3586_s26 + $0x10] ss:$8 sps:$4 sm:$0xff]   ;;  %p2264_p13 = scmp.ne.s32.totalorder %s4263_s19, 2 }
  0xc1   : > { %2357 = vmatprep.subr.bf16.mxu0 %v2701_v5  ;;  %2515 = vmatprep.subr.bf16.mxu1 %v2701_v5  ;;  %v2710_v16 = vld [vmem:[%s3594_s5 + $0x8] sm:$0xff]   ;;  %v2712_v18 = vld [vmem:[%s3594_s5] sm:$0xff]   ;;  %v2724_v24 = vld [vmem:[%s3586_s26 + $0x50] ss:$8 sps:$4 sm:$0xff]  }
  0xc2   : > { %784 = vmatprep.mubr.bf16.mxu1 %v2718_v13  ;;  %v2725_v25 = vld [vmem:[%s3586_s26 + $0x24] ss:$8 sps:$4 sm:$0xff]   ;;  %v2729_v27 = vld [vmem:[%s3586_s26 + $0x20] ss:$8 sps:$4 sm:$0xff]   ;;  %v2731_v29 = vld [vmem:[%s3586_s26 + $0x34] ss:$8 sps:$4 sm:$0xff]  }
  0xc3   : > { %v2727_v26 = vld [vmem:[%s3586_s26 + $0x64] ss:$8 sps:$4 sm:$0xff]   ;;  %v2730_v28 = vld [vmem:[%s3586_s26 + $0x60] ss:$8 sps:$4 sm:$0xff]   ;;  %v2733_v30 = vld [vmem:[%s3586_s26 + $0x74] ss:$8 sps:$4 sm:$0xff]  }
  0xc4   : > { %2358 = vmatpush3.bf16.msra.mxu0 %v2702_v6  ;;  %2523 = vmatpush3.bf16.msra.mxu1 %v2702_v6  ;;  %v2735_v31 = vld [vmem:[%s3586_s26 + $0x30] ss:$8 sps:$4 sm:$0xff]   ;;  %v488_v37 = vld [vmem:[#allocation2 + $0x40] sm:$0xff] }
  0xc5   : > { %2359 = vmatprep.subr.bf16.mxu0 %v2703_v7  ;;  %2516 = vmatprep.subr.bf16.mxu1 %v2703_v7  ;;  %v2736_v32 = vld [vmem:[%s3586_s26 + $0x70] ss:$8 sps:$4 sm:$0xff]   ;;  %v481_v45 = vld [vmem:[#allocation2] sm:$0xff] }
  0xc6   : > { %v480_v35 = vld [vmem:[#allocation2 + $0x30] sm:$0xff]  ;;  %v489_v47 = vld [vmem:[#allocation2 + $0x20] sm:$0xff]  ;;  %v482_v55 = vld [vmem:[#allocation2 + $0x58] sm:$0xff] }
  0xc7   : > { %v490_v57 = vld [vmem:[#allocation2 + $0x10] sm:$0xff]  ;;  %v483_v1 = vld [vmem:[#allocation2 + $0x18] sm:$0xff]  ;;  %v492_v13 = vld [vmem:[#allocation2 + $0x60] sm:$0xff] }
  0xc8   : > { %2360 = vmatpush3.bf16.msra.mxu0 %v2704_v8  ;;  %2524 = vmatpush3.bf16.msra.mxu1 %v2704_v8  ;;  %v491_v3 = vld [vmem:[#allocation2 + $0x38] sm:$0xff] }
  0xc9   : > { %2361 = vmatprep.subr.bf16.mxu0 %v2705_v9  ;;  %2517 = vmatprep.subr.bf16.mxu1 %v2705_v9 }
  0xcc   : > { %2362 = vmatpush3.bf16.msra.mxu0 %v2706_v10  ;;  %2525 = vmatpush3.bf16.msra.mxu1 %v2706_v10 }
  0xcd   : > { %2363 = vmatprep.subr.bf16.mxu0 %v2707_v11  ;;  %2518 = vmatprep.subr.bf16.mxu1 %v2707_v11  ;;  %v484_v11 = vld [vmem:[#allocation2 + $0x50] sm:$0xff] }
  0xd0   : > { %2364 = vmatpush3.bf16.msra.mxu0 %v2708_v14  ;;  %2526 = vmatpush3.bf16.msra.mxu1 %v2708_v14 }
  0xd1   : > { %2365 = vmatprep.subr.bf16.mxu0 %v2709_v15  ;;  %2519 = vmatprep.subr.bf16.mxu1 %v2709_v15 }
  0xd4   : > { %2366 = vmatpush3.bf16.msra.mxu0 %v2710_v16  ;;  %2527 = vmatpush3.bf16.msra.mxu1 %v2710_v16 }
  0xd5   : > { %2367 = vmatprep.subr.bf16.mxu0 %v2711_v17  ;;  %2520 = vmatprep.subr.bf16.mxu1 %v2711_v17 }
  0xd8   : > { %2368 = vmatpush3.bf16.msra.mxu0 %v2712_v18  ;;  %2528 = vmatpush3.bf16.msra.mxu1 %v2712_v18 }
  0xdb   : > { %753 = vmatmul.mubr.bf16.vlgmr.msra.gmra.mxu0 %v2713_v19  ;;  %785 = vmatmul.mubr.bf16.vlgmr.msra.gmra.mxu1 %v2716_v20 }
  0xdc   : > { %760 = vmatprep.mubr.bf16.mxu0 %v2719_v21  ;;  %792 = vmatprep.mubr.bf16.mxu1 %v2721_v22  ;;  %v485_v21 = vld [vmem:[#allocation2 + $0x68] sm:$0xff] }
  0xe3   : > { %761 = vmatmul.mubr.bf16.gmra.mxu0 %v2723_v23  ;;  %793 = vmatmul.mubr.bf16.gmra.mxu1 %v2724_v24  ;;  %v493_v23 = vld [vmem:[#allocation2 + $0x70] sm:$0xff] }
  0xe4   : > { %768 = vmatprep.mubr.bf16.mxu0 %v2725_v25  ;;  %800 = vmatprep.mubr.bf16.mxu1 %v2727_v26 }
  0xeb   : > { %769 = vmatmul.mubr.bf16.gmra.mxu0 %v2729_v27  ;;  %801 = vmatmul.mubr.bf16.gmra.mxu1 %v2730_v28 }
  0xec   : > { %776 = vmatprep.mubr.bf16.mxu0 %v2731_v29  ;;  %808 = vmatprep.mubr.bf16.mxu1 %v2733_v30 }
  0xf3   : > { %777 = vmatmul.mubr.bf16.gmra.mxu0 %v2735_v31  ;;  %809 = vmatmul.mubr.bf16.gmra.mxu1 %v2736_v32  ;;  %v486_v31 = vld [vmem:[#allocation2 + $0x8] sm:$0xff] }
 0x19b   : > { %v2369_v33 = vpop.f32.mrf.mxu0  ;;  %v2393_v34 = vpop.f32.mrf.mxu1 }
 0x19d   : > { %v2370_v36 = vpop.f32.mrf.mxu0  ;;  %v2394_v38 = vpop.f32.mrf.mxu1 }
 0x19e   : > { %v2371_v39 = vadd.f32 %v2370_v36, %v2369_v33  ;;  %v2395_v40 = vadd.f32 %v2394_v38, %v2393_v34  ;;  %v494_v33 = vld [vmem:[#allocation2 + $0x78] sm:$0xff] }
 0x19f   : > { %v2372_v41 = vpop.f32.mrf.mxu0  ;;  %v2396_v42 = vpop.f32.mrf.mxu1 }
 0x1a0   : > { %v817_v43 = vadd.f32 %v2371_v39, %v480_v35  ;;  %v825_v44 = vadd.f32 %v2395_v40, %v488_v37 }
 0x1a1   : > { %v2373_v46 = vpop.f32.mrf.mxu0  ;;  %v2397_v48 = vpop.f32.mrf.mxu1 }
 0x1a2   : > { %833 = vst [vmem:[#allocation2 + $0x30] sm:$0xff] %v817_v43  ;;  %841 = vst [vmem:[#allocation2 + $0x40] sm:$0xff] %v825_v44  ;;  %v2374_v49 = vadd.f32 %v2373_v46, %v2372_v41  ;;  %v2398_v50 = vadd.f32 %v2397_v48, %v2396_v42  ;;  %v487_v41 = vld [vmem:[#allocation2 + $0x48] sm:$0xff] }
 0x1a3   : > { %v2375_v51 = vpop.f32.mrf.mxu0  ;;  %v2399_v52 = vpop.f32.mrf.mxu1  ;;  %v495_v43 = vld [vmem:[#allocation2 + $0x28] sm:$0xff] }
 0x1a4   : > { %v818_v53 = vadd.f32 %v2374_v49, %v481_v45  ;;  %v826_v54 = vadd.f32 %v2398_v50, %v489_v47 }
 0x1a5   : > { %v2376_v56 = vpop.f32.mrf.mxu0  ;;  %v2400_v58 = vpop.f32.mrf.mxu1 }
 0x1a6   : > { %834 = vst [vmem:[#allocation2] sm:$0xff] %v818_v53  ;;  %842 = vst [vmem:[#allocation2 + $0x20] sm:$0xff] %v826_v54  ;;  %v2377_v59 = vadd.f32 %v2376_v56, %v2375_v51  ;;  %v2401_v60 = vadd.f32 %v2400_v58, %v2399_v52 }
 0x1a7   : > { %v2378_v61 = vpop.f32.mrf.mxu0  ;;  %v2402_v62 = vpop.f32.mrf.mxu1 }
 0x1a8   : > { %v819_v63 = vadd.f32 %v2377_v59, %v482_v55  ;;  %v827_v0 = vadd.f32 %v2401_v60, %v490_v57 }
 0x1a9   : > { %v2379_v2 = vpop.f32.mrf.mxu0  ;;  %v2403_v4 = vpop.f32.mrf.mxu1 }
 0x1aa   : > { %835 = vst [vmem:[#allocation2 + $0x58] sm:$0xff] %v819_v63  ;;  %843 = vst [vmem:[#allocation2 + $0x10] sm:$0xff] %v827_v0  ;;  %v2380_v5 = vadd.f32 %v2379_v2, %v2378_v61  ;;  %v2404_v6 = vadd.f32 %v2403_v4, %v2402_v62 }
 0x1ab   : > { %v2381_v7 = vpop.f32.mrf.mxu0  ;;  %v2405_v8 = vpop.f32.mrf.mxu1 }
 0x1ac   : > { %v820_v9 = vadd.f32 %v2380_v5, %v483_v1  ;;  %v828_v10 = vadd.f32 %v2404_v6, %v491_v3 }
 0x1ad   : > { %v2382_v12 = vpop.f32.mrf.mxu0  ;;  %v2406_v14 = vpop.f32.mrf.mxu1 }
 0x1ae   : > { %836 = vst [vmem:[#allocation2 + $0x18] sm:$0xff] %v820_v9  ;;  %844 = vst [vmem:[#allocation2 + $0x38] sm:$0xff] %v828_v10  ;;  %v2383_v15 = vadd.f32 %v2382_v12, %v2381_v7  ;;  %v2407_v16 = vadd.f32 %v2406_v14, %v2405_v8 }
 0x1af   : > { %v2384_v17 = vpop.f32.mrf.mxu0  ;;  %v2408_v18 = vpop.f32.mrf.mxu1 }
 0x1b0   : > { %v821_v19 = vadd.f32 %v2383_v15, %v484_v11  ;;  %v829_v20 = vadd.f32 %v2407_v16, %v492_v13 }
 0x1b1   : > { %v2385_v22 = vpop.f32.mrf.mxu0  ;;  %v2409_v24 = vpop.f32.mrf.mxu1 }
 0x1b2   : > { %837 = vst [vmem:[#allocation2 + $0x50] sm:$0xff] %v821_v19  ;;  %845 = vst [vmem:[#allocation2 + $0x60] sm:$0xff] %v829_v20  ;;  %v2386_v25 = vadd.f32 %v2385_v22, %v2384_v17  ;;  %v2410_v26 = vadd.f32 %v2409_v24, %v2408_v18 }
 0x1b3   : > { %v2387_v27 = vpop.f32.mrf.mxu0  ;;  %v2411_v28 = vpop.f32.mrf.mxu1 }
 0x1b4   : > { %v822_v29 = vadd.f32 %v2386_v25, %v485_v21  ;;  %v830_v30 = vadd.f32 %v2410_v26, %v493_v23 }
 0x1b5   : > { %v2388_v32 = vpop.f32.mrf.mxu0  ;;  %v2412_v34 = vpop.f32.mrf.mxu1 }
 0x1b6   : > { %838 = vst [vmem:[#allocation2 + $0x68] sm:$0xff] %v822_v29  ;;  %846 = vst [vmem:[#allocation2 + $0x70] sm:$0xff] %v830_v30  ;;  %v2389_v35 = vadd.f32 %v2388_v32, %v2387_v27  ;;  %v2413_v36 = vadd.f32 %v2412_v34, %v2411_v28 }
 0x1b7   : > { %v2390_v37 = vpop.f32.mrf.mxu0  ;;  %v2414_v38 = vpop.f32.mrf.mxu1 }
 0x1b8   : > { %v823_v39 = vadd.f32 %v2389_v35, %v486_v31  ;;  %v831_v40 = vadd.f32 %v2413_v36, %v494_v33 }
 0x1b9   : > { %v2391_v42 = vpop.f32.mrf.mxu0  ;;  %v2415_v44 = vpop.f32.mrf.mxu1 }
 0x1ba   : > { %839 = vst [vmem:[#allocation2 + $0x8] sm:$0xff] %v823_v39  ;;  %847 = vst [vmem:[#allocation2 + $0x78] sm:$0xff] %v831_v40  ;;  %v2392_v45 = vadd.f32 %v2391_v42, %v2390_v37  ;;  %v2416_v46 = vadd.f32 %v2415_v44, %v2414_v38  ;;  %852 = sbr.rel (%p2264_p13) target bundleno = 835 (0x343), region = 80 }
 0x1bc   : > { %v824_v47 = vadd.f32 %v2392_v45, %v487_v41  ;;  %v832_v48 = vadd.f32 %v2416_v46, %v495_v43 }
 0x1be   : > { %840 = vst [vmem:[#allocation2 + $0x48] sm:$0xff] %v824_v47  ;;  %848 = vst [vmem:[#allocation2 + $0x28] sm:$0xff] %v832_v48 }
 0x1bf   : > { %v2737_v49 = vld [vmem:[#allocation9 + $0xac] ss:$12 sps:$4 sm:$0xff]   ;;  %v2739_v50 = vld [vmem:[#allocation9 + $0xb0] ss:$12 sps:$4 sm:$0xff]   ;;  %v3275_v51 = vmov 0   ;;  %v854_v5 = vld [vmem:[#allocation2] sm:$0xff] }
 0x1c0   : > { %1118 = vmatprep.mubr.bf16.mxu0 %v3275_v51  ;;  %1086 = vmatprep.subr.bf16.mxu0 %v2737_v49  ;;  %v2740_v52 = vld [vmem:[#allocation9 + $0xa8] ss:$12 sps:$4 sm:$0xff]   ;;  %v2743_v54 = vld [vmem:[#allocation9 + $0x98] ss:$12 sps:$4 sm:$0xff]   ;;  %v2744_v55 = vld [vmem:[#allocation9 + $0x90] ss:$12 sps:$4 sm:$0xff]  }
 0x1c1   : > { %2449 = vmatprep.subr.bf16.mxu1 %v2739_v50  ;;  %v2741_v53 = vld [vmem:[#allocation9 + $0x94] ss:$12 sps:$4 sm:$0xff]   ;;  %1087 = vmatpush1.bf16.msra.mxu0 %v2740_v52  ;;  %v2745_v56 = vld [vmem:[#allocation9 + $0x7c] ss:$12 sps:$4 sm:$0xff]   ;;  %v2748_v58 = vld [vmem:[#allocation9 + $0x78] ss:$12 sps:$4 sm:$0xff]  }
 0x1c2   : > { %2450 = vmatpush3.bf16.msra.mxu1 %v2739_v50  ;;  %1088 = vmatprep.subr.bf16.mxu0 %v2741_v53  ;;  %v2747_v57 = vld [vmem:[#allocation9 + $0x80] ss:$12 sps:$4 sm:$0xff]   ;;  %v2749_v59 = vld [vmem:[#allocation9 + $0x64] ss:$12 sps:$4 sm:$0xff]   ;;  %v2751_v60 = vld [vmem:[#allocation9 + $0x68] ss:$12 sps:$4 sm:$0xff]  }
 0x1c3   : > { %2451 = vmatprep.subr.bf16.mxu1 %v2743_v54  ;;  %v2752_v61 = vld [vmem:[#allocation9 + $0x60] ss:$12 sps:$4 sm:$0xff]   ;;  %v2755_v63 = vld [vmem:[#allocation9 + $0x50] ss:$12 sps:$4 sm:$0xff]   ;;  %v2756_v0 = vld [vmem:[#allocation9 + $0x48] ss:$12 sps:$4 sm:$0xff]  }
 0x1c4   : > { %v2753_v62 = vld [vmem:[#allocation9 + $0x4c] ss:$12 sps:$4 sm:$0xff]   ;;  %v2757_v1 = vld [vmem:[#allocation9 + $0x34] ss:$12 sps:$4 sm:$0xff]   ;;  %v2760_v4 = vld [vmem:[#allocation9 + $0x30] ss:$12 sps:$4 sm:$0xff]  }
 0x1c5   : > { %1089 = vmatpush1.bf16.msra.mxu0 %v2744_v55  ;;  %v2759_v2 = vld [vmem:[#allocation9 + $0x38] ss:$12 sps:$4 sm:$0xff]   ;;  %v853_v3 = vld [vmem:[#allocation2 + $0x30] sm:$0xff]  ;;  %v870_v7 = vmax.f32 %v854_v5, 0.0  ;;  %v2761_v8 = vld [vmem:[#allocation9 + $0x1c] ss:$12 sps:$4 sm:$0xff]  }
 0x1c6   : > { %2452 = vmatpush3.bf16.msra.mxu1 %v2743_v54  ;;  %1090 = vmatprep.subr.bf16.mxu0 %v2745_v56  ;;  %v869_v6 = vmax.f32 %v853_v3, 0.0  ;;  %v2763_v9 = vld [vmem:[#allocation9 + $0x20] ss:$12 sps:$4 sm:$0xff]   ;;  %v2764_v11 = vld [vmem:[#allocation9 + $0x18] ss:$12 sps:$4 sm:$0xff]   ;;  %v857_v16 = vld [vmem:[#allocation2 + $0x50] sm:$0xff] }
 0x1c7   : > { %2453 = vmatprep.subr.bf16.mxu1 %v2747_v57  ;;  %v855_v12 = vld [vmem:[#allocation2 + $0x58] sm:$0xff]  ;;  %v2765_v14 = vld [vmem:[#allocation9 + $0x4] ss:$12 sps:$4 sm:$0xff]   ;;  %v2767_v15 = vld [vmem:[#allocation9 + $0x8] ss:$12 sps:$4 sm:$0xff]   ;;  %v873_v22 = vmax.f32 %v857_v16, 0.0 }
 0x1c8   : > { %v885_v10 = vpack.c.bf16 %v870_v7, %v869_v6  ;;  %v856_v13 = vld [vmem:[#allocation2 + $0x18] sm:$0xff]  ;;  %v858_v17 = vld [vmem:[#allocation2 + $0x68] sm:$0xff]  ;;  %v871_v19 = vmax.f32 %v855_v12, 0.0  ;;  %v2774_v28 = vld [vmem:[#allocation11 + $0x94] ss:$12 sps:$4 sm:$0xff]   ;;  %s4265_s20 = sld [smem:[#allocation35_spill]] }
 0x1c9   : > { %1091 = vmatpush1.bf16.msra.mxu0 %v2748_v58  ;;  %v2768_v18 = vld [vmem:[#allocation9] ss:$12 sps:$4 sm:$0xff]   ;;  %v872_v20 = vmax.f32 %v856_v13, 0.0  ;;  %v874_v23 = vmax.f32 %v858_v17, 0.0  ;;  %v2769_v25 = vld [vmem:[#allocation11 + $0xa8] ss:$12 sps:$4 sm:$0xff]  }
 0x1ca   : > { %2454 = vmatpush3.bf16.msra.mxu1 %v2747_v57  ;;  %1092 = vmatprep.subr.bf16.mxu0 %v2749_v59  ;;  %v2771_v21 = vld [vmem:[#allocation11 + $0xac] ss:$12 sps:$4 sm:$0xff]   ;;  %v2772_v30 = vld [vmem:[#allocation11 + $0x90] ss:$12 sps:$4 sm:$0xff]   ;;  %v861_v31 = vld [vmem:[#allocation2 + $0x40] sm:$0xff]  ;;  %s4268_s3 = sld [smem:[#allocation36_spill]] }
 0x1cb   : > { %2455 = vmatprep.subr.bf16.mxu1 %v2751_v60  ;;  %2465 = vmatprep.mubr.bf16.mxu1 %v885_v10  ;;  %v886_v24 = vpack.c.bf16 %v872_v20, %v871_v19  ;;  %v859_v26 = vld [vmem:[#allocation2 + $0x8] sm:$0xff]  ;;  %v887_v29 = vpack.c.bf16 %v874_v23, %v873_v22  ;;  %v862_v32 = vld [vmem:[#allocation2 + $0x20] sm:$0xff]  ;;  %v2793_v35 = vld [vmem:[#allocation11 + $0xb0] ss:$12 sps:$4 sm:$0xff]   ;;  %v877_v37 = vmax.f32 %v861_v31, 0.0 }
 0x1cc   : > { %v860_v27 = vld [vmem:[#allocation2 + $0x48] sm:$0xff]  ;;  %v875_v33 = vmax.f32 %v859_v26, 0.0  ;;  %v878_v38 = vmax.f32 %v862_v32, 0.0  ;;  %v2794_v39 = vld [vmem:[#allocation11 + $0x98] ss:$12 sps:$4 sm:$0xff]   ;;  %v863_v40 = vld [vmem:[#allocation2 + $0x10] sm:$0xff] }
 0x1cd   : > { %1093 = vmatpush1.bf16.msra.mxu0 %v2752_v61  ;;  %v876_v34 = vmax.f32 %v860_v27, 0.0  ;;  %v2777_v36 = vld [vmem:[#allocation11 + $0x7c] ss:$12 sps:$4 sm:$0xff]   ;;  %v2775_v43 = vld [vmem:[#allocation11 + $0x78] ss:$12 sps:$4 sm:$0xff]   ;;  %v879_v46 = vmax.f32 %v863_v40, 0.0 }
 0x1ce   : > { %2456 = vmatpush3.bf16.msra.mxu1 %v2751_v60  ;;  %1094 = vmatprep.subr.bf16.mxu0 %v2753_v62  ;;  %v864_v42 = vld [vmem:[#allocation2 + $0x38] sm:$0xff]  ;;  %v2780_v44 = vld [vmem:[#allocation11 + $0x64] ss:$12 sps:$4 sm:$0xff]   ;;  %v889_v45 = vpack.c.bf16 %v878_v38, %v877_v37  ;;  %v2795_v50 = vld [vmem:[#allocation11 + $0x80] ss:$12 sps:$4 sm:$0xff]  }
 0x1cf   : > { %2457 = vmatprep.subr.bf16.mxu1 %v2755_v63  ;;  %v888_v41 = vpack.c.bf16 %v876_v34, %v875_v33  ;;  %v880_v47 = vmax.f32 %v864_v42, 0.0  ;;  %v865_v48 = vld [vmem:[#allocation2 + $0x60] sm:$0xff]  ;;  %v866_v49 = vld [vmem:[#allocation2 + $0x70] sm:$0xff]  ;;  %v2783_v53 = vld [vmem:[#allocation11 + $0x4c] ss:$12 sps:$4 sm:$0xff]  }
 0x1d0   : > { %v2778_v52 = vld [vmem:[#allocation11 + $0x60] ss:$12 sps:$4 sm:$0xff]   ;;  %v881_v54 = vmax.f32 %v865_v48, 0.0  ;;  %v882_v55 = vmax.f32 %v866_v49, 0.0  ;;  %v2781_v57 = vld [vmem:[#allocation11 + $0x48] ss:$12 sps:$4 sm:$0xff]  }
 0x1d1   : > { %1095 = vmatpush1.bf16.msra.mxu0 %v2756_v0  ;;  %v890_v56 = vpack.c.bf16 %v880_v47, %v879_v46  ;;  %v867_v58 = vld [vmem:[#allocation2 + $0x78] sm:$0xff]  ;;  %v868_v59 = vld [vmem:[#allocation2 + $0x28] sm:$0xff]  ;;  %v2786_v60 = vld [vmem:[#allocation11 + $0x34] ss:$12 sps:$4 sm:$0xff]  }
 0x1d2   : > { %2458 = vmatpush3.bf16.msra.mxu1 %v2755_v63  ;;  %1096 = vmatprep.subr.bf16.mxu0 %v2757_v1  ;;  %v891_v61 = vpack.c.bf16 %v882_v55, %v881_v54  ;;  %v2796_v62 = vld [vmem:[#allocation11 + $0x68] ss:$12 sps:$4 sm:$0xff]   ;;  %v883_v63 = vmax.f32 %v867_v58, 0.0  ;;  %v884_v0 = vmax.f32 %v868_v59, 0.0  ;;  %v2784_v1 = vld [vmem:[#allocation11 + $0x30] ss:$12 sps:$4 sm:$0xff]  }
 0x1d3   : > { %2459 = vmatprep.subr.bf16.mxu1 %v2759_v2  ;;  %v2789_v3 = vld [vmem:[#allocation11 + $0x1c] ss:$12 sps:$4 sm:$0xff]   ;;  %v2787_v5 = vld [vmem:[#allocation11 + $0x18] ss:$12 sps:$4 sm:$0xff]   ;;  %v2799_v12 = vld [vmem:[#allocation11 + $0x20] ss:$12 sps:$4 sm:$0xff]  }
 0x1d4   : > { %v2792_v6 = vld [vmem:[#allocation11 + $0x4] ss:$12 sps:$4 sm:$0xff]   ;;  %v2800_v13 = vld [vmem:[#allocation11 + $0x8] ss:$12 sps:$4 sm:$0xff]   ;;  %v904_v27 = vld [vmem:[%s3603_s15 + $0x58] sm:$0xff] }
 0x1d5   : > { %1097 = vmatpush1.bf16.msra.mxu0 %v2760_v4  ;;  %v892_v4 = vpack.c.bf16 %v884_v0, %v883_v63  ;;  %v2798_v7 = vld [vmem:[#allocation11 + $0x38] ss:$12 sps:$4 sm:$0xff]   ;;  %v3689_v20 = vld [vmem:[%s3603_s15 + $0x30] sm:$0xff]  ;;  %v941_v63 = vld [vmem:[%s4265_s20] sm:$0x7] }
 0x1d6   : > { %2460 = vmatpush3.bf16.msra.mxu1 %v2759_v2  ;;  %1098 = vmatprep.subr.bf16.mxu0 %v2761_v8  ;;  %v2797_v2 = vld [vmem:[#allocation11 + $0x50] ss:$12 sps:$4 sm:$0xff]   ;;  %v2790_v8 = vld [vmem:[#allocation11] ss:$12 sps:$4 sm:$0xff]  }
 0x1d7   : > { %2461 = vmatprep.subr.bf16.mxu1 %v2763_v9  ;;  %v3679_v17 = vld [vmem:[%s3603_s15 + $0x20] sm:$0xff]  ;;  %v903_v26 = vld [vmem:[%s3603_s15 + $0x50] sm:$0xff]  ;;  %v908_v33 = vld [vmem:[%s3603_s15 + $0x78] sm:$0xff] }
 0x1d8   : > { %v901_v23 = vld [vmem:[%s3603_s15 + $0x40] sm:$0xff]  ;;  %v907_v32 = vld [vmem:[%s3603_s15 + $0x70] sm:$0xff] }
 0x1d9   : > { %1099 = vmatpush1.bf16.msra.mxu0 %v2764_v11  ;;  %v1303_v34 = vpack.c.bf16 %v908_v33, %v907_v32 }
 0x1da   : > { %2462 = vmatpush3.bf16.msra.mxu1 %v2763_v9  ;;  %1100 = vmatprep.subr.bf16.mxu0 %v2765_v14  ;;  %v3658_v9 = vld [vmem:[%s3603_s15] sm:$0xff]  ;;  %v3669_v14 = vld [vmem:[%s3603_s15 + $0x10] sm:$0xff] }
 0x1db   : > { %2463 = vmatprep.subr.bf16.mxu1 %v2767_v15 }
 0x1dd   : > { %1101 = vmatpush1.bf16.msra.mxu0 %v2768_v18  ;;  %v3682_v18 = vld [vmem:[%s3603_s15 + $0x28] sm:$0xff] }
 0x1de   : > { %2464 = vmatpush3.bf16.msra.mxu1 %v2767_v15  ;;  %2481 = vmatprep.subr.bf16.mxu0 %v2793_v35  ;;  %v3672_v15 = vld [vmem:[%s3603_s15 + $0x18] sm:$0xff]  ;;  %v1298_v19 = vpack.c.bf16 %v3682_v18, %v3679_v17 }
 0x1df   : > { %1481 = vmatprep.subr.bf16.mxu1 %v2771_v21  ;;  %v1297_v16 = vpack.c.bf16 %v3672_v15, %v3669_v14  ;;  %v3692_v21 = vld [vmem:[%s3603_s15 + $0x38] sm:$0xff] }
 0x1e0   : > { %1119 = vmatmul.mubr.bf16.vlgmr.msra.gmra.mxu0 %v885_v10  ;;  %v3661_v10 = vld [vmem:[%s3603_s15 + $0x8] sm:$0xff]  ;;  %v1299_v22 = vpack.c.bf16 %v3692_v21, %v3689_v20 }
 0x1e1   : > { %2466 = vmatmul.mubr.bf16.vlgmr.msra.gmra.mxu1 %v886_v24  ;;  %1128 = vmatprep.mubr.bf16.mxu0 %v3275_v51  ;;  %v1296_v11 = vpack.c.bf16 %v3661_v10, %v3658_v9 }
 0x1e2   : > { %1482 = vmatpush1.bf16.msra.mxu1 %v2769_v25  ;;  %2469 = vmatprep.mubr.bf16.mxu1 %v887_v29 }
 0x1e3   : > { %1483 = vmatprep.subr.bf16.mxu1 %v2774_v28  ;;  %2482 = vmatpush3.bf16.msra.mxu0 %v2793_v35  ;;  %v1301_v28 = vpack.c.bf16 %v904_v27, %v903_v26 }
 0x1e4   : > { %2483 = vmatprep.subr.bf16.mxu0 %v2794_v39 }
 0x1e6   : > { %1484 = vmatpush1.bf16.msra.mxu1 %v2772_v30  ;;  %v906_v30 = vld [vmem:[%s3603_s15 + $0x68] sm:$0xff] }
 0x1e7   : > { %1485 = vmatprep.subr.bf16.mxu1 %v2777_v36  ;;  %2484 = vmatpush3.bf16.msra.mxu0 %v2794_v39 }
 0x1e8   : > { %1129 = vmatmul.mubr.bf16.gmra.mxu0 %v886_v24  ;;  %2485 = vmatprep.subr.bf16.mxu0 %v2795_v50  ;;  %v902_v24 = vld [vmem:[%s3603_s15 + $0x48] sm:$0xff] }
 0x1e9   : > { %2470 = vmatmul.mubr.bf16.gmra.mxu1 %v888_v41  ;;  %1138 = vmatprep.mubr.bf16.mxu0 %v3275_v51  ;;  %v1300_v25 = vpack.c.bf16 %v902_v24, %v901_v23 }
 0x1ea   : > { %1486 = vmatpush1.bf16.msra.mxu1 %v2775_v43  ;;  %2473 = vmatprep.mubr.bf16.mxu1 %v889_v45 }
 0x1eb   : > { %1487 = vmatprep.subr.bf16.mxu1 %v2780_v44  ;;  %2486 = vmatpush3.bf16.msra.mxu0 %v2795_v50  ;;  %v943_v50 = vlaneseq }
 0x1ec   : > { %2487 = vmatprep.subr.bf16.mxu0 %v2796_v62 }
 0x1ee   : > { %1488 = vmatpush1.bf16.msra.mxu1 %v2778_v52 }
 0x1ef   : > { %1489 = vmatprep.subr.bf16.mxu1 %v2783_v53  ;;  %2488 = vmatpush3.bf16.msra.mxu0 %v2796_v62 }
 0x1f0   : > { %1139 = vmatmul.mubr.bf16.gmra.mxu0 %v887_v29  ;;  %2489 = vmatprep.subr.bf16.mxu0 %v2797_v2  ;;  %v905_v29 = vld [vmem:[%s3603_s15 + $0x60] sm:$0xff] }
 0x1f1   : > { %2474 = vmatmul.mubr.bf16.gmra.mxu1 %v890_v56  ;;  %1148 = vmatprep.mubr.bf16.mxu0 %v3275_v51  ;;  %v1302_v31 = vpack.c.bf16 %v906_v30, %v905_v29 }
 0x1f2   : > { %1490 = vmatpush1.bf16.msra.mxu1 %v2781_v57  ;;  %2477 = vmatprep.mubr.bf16.mxu1 %v891_v61 }
 0x1f3   : > { %1491 = vmatprep.subr.bf16.mxu1 %v2786_v60  ;;  %2490 = vmatpush3.bf16.msra.mxu0 %v2797_v2 }
 0x1f4   : > { %2491 = vmatprep.subr.bf16.mxu0 %v2798_v7 }
 0x1f6   : > { %1492 = vmatpush1.bf16.msra.mxu1 %v2784_v1 }
 0x1f7   : > { %1493 = vmatprep.subr.bf16.mxu1 %v2789_v3  ;;  %2492 = vmatpush3.bf16.msra.mxu0 %v2798_v7 }
 0x1f8   : > { %1149 = vmatmul.mubr.bf16.gmra.mxu0 %v888_v41  ;;  %2493 = vmatprep.subr.bf16.mxu0 %v2799_v12 }
 0x1f9   : > { %2478 = vmatmul.mubr.bf16.gmra.mxu1 %v892_v4  ;;  %1158 = vmatprep.mubr.bf16.mxu0 %v3275_v51 }
 0x1fa   : > { %1494 = vmatpush1.bf16.msra.mxu1 %v2787_v5  ;;  %1513 = vmatprep.mubr.bf16.mxu1 %v3275_v51 }
 0x1fb   : > { %1495 = vmatprep.subr.bf16.mxu1 %v2792_v6  ;;  %2494 = vmatpush3.bf16.msra.mxu0 %v2799_v12 }
 0x1fc   : > { %2495 = vmatprep.subr.bf16.mxu0 %v2800_v13 }
 0x1fe   : > { %1496 = vmatpush1.bf16.msra.mxu1 %v2790_v8 }
 0x1ff   : > { %2496 = vmatpush3.bf16.msra.mxu0 %v2800_v13 }
 0x200   : > { %1159 = vmatmul.mubr.bf16.gmra.mxu0 %v889_v45 }
 0x201   : > { %1514 = vmatmul.mubr.bf16.vlgmr.msra.gmra.mxu1 %v1296_v11  ;;  %1168 = vmatprep.mubr.bf16.mxu0 %v3275_v51 }
 0x202   : > { %1523 = vmatprep.mubr.bf16.mxu1 %v3275_v51 }
 0x208   : > { %1169 = vmatmul.mubr.bf16.gmra.mxu0 %v890_v56  ;;  %v3738_v56 = vshrl.u32 %v943_v50, 7 }
 0x209   : > { %1524 = vmatmul.mubr.bf16.gmra.mxu1 %v1297_v16  ;;  %1178 = vmatprep.mubr.bf16.mxu0 %v3275_v51 }
 0x20a   : > { %1533 = vmatprep.mubr.bf16.mxu1 %v3275_v51  ;;  %v4213_v62 = vsub.s32 2, %v3738_v56  ;;  %v949_v7 = vsub.s32 1, %v3738_v56 }
 0x20c   : > { %v3770_v6 = vrot.slane %v941_v63, %v4213_v62  ;;  %v3786_v23 = vrot.slane %v941_v63, %v949_v7 }
 0x210   : > { %1179 = vmatmul.mubr.bf16.gmra.mxu0 %v891_v61  ;;  %v945_v61 = vsub.s32 0, %v3738_v56 }
 0x211   : > { %1534 = vmatmul.mubr.bf16.gmra.mxu1 %v1298_v19  ;;  %1188 = vmatprep.mubr.bf16.mxu0 %v3275_v51 }
 0x212   : > { %1543 = vmatprep.mubr.bf16.mxu1 %v3275_v51  ;;  %v3766_v5 = vrot.slane %v941_v63, %v945_v61 }
 0x218   : > { %1189 = vmatmul.mubr.bf16.gmra.mxu0 %v892_v4  ;;  %v3764_v4 = vld [vmem:[%s4268_s3] sm:$0x7] }
 0x219   : > { %1544 = vmatmul.mubr.bf16.gmra.mxu1 %v1299_v22  ;;  %2497 = vmatprep.mubr.bf16.mxu0 %v1296_v11  ;;  %v3779_v13 = vrot.slane %v3764_v4, %v945_v61  ;;  %v3789_v24 = vrot.slane %v3764_v4, %v949_v7 }
 0x21a   : > { %1553 = vmatprep.mubr.bf16.mxu1 %v3275_v51 }
 0x220   : > { %2498 = vmatmul.mubr.bf16.vlgmr.msra.gmra.mxu0 %v1297_v16 }
 0x221   : > { %1554 = vmatmul.mubr.bf16.gmra.mxu1 %v1300_v25  ;;  %2501 = vmatprep.mubr.bf16.mxu0 %v1298_v19 }
 0x222   : > { %1563 = vmatprep.mubr.bf16.mxu1 %v3275_v51 }
 0x228   : > { %2502 = vmatmul.mubr.bf16.gmra.mxu0 %v1299_v22 }
 0x229   : > { %1564 = vmatmul.mubr.bf16.gmra.mxu1 %v1301_v28  ;;  %2505 = vmatprep.mubr.bf16.mxu0 %v1300_v25 }
 0x22a   : > { %1573 = vmatprep.mubr.bf16.mxu1 %v3275_v51 }
 0x230   : > { %2506 = vmatmul.mubr.bf16.gmra.mxu0 %v1301_v28 }
 0x231   : > { %1574 = vmatmul.mubr.bf16.gmra.mxu1 %v1302_v31  ;;  %2509 = vmatprep.mubr.bf16.mxu0 %v1302_v31 }
 0x232   : > { %1583 = vmatprep.mubr.bf16.mxu1 %v3275_v51 }
 0x238   : > { %2510 = vmatmul.mubr.bf16.gmra.mxu0 %v1303_v34 }
 0x239   : > { %1584 = vmatmul.mubr.bf16.gmra.mxu1 %v1303_v34 }
 0x2a0   : > { %v1120_v35 = vpop.f32.mrf.mxu0 }
 0x2a1   : > { %v3708_v36 = vpop.f32.mrf.mxu1  ;;  %v1121_v22 = vadd.f32 %v1120_v35, %v3766_v5 }
 0x2a2   : > { %v1122_v37 = vpop.f32.mrf.mxu0 }
 0x2a3   : > { %v3710_v38 = vpop.f32.mrf.mxu1  ;;  %v1123_v30 = vadd.f32 %v1122_v37, %v3786_v23 }
 0x2a4   : > { %v1124_v39 = vpop.f32.mrf.mxu0 }
 0x2a5   : > { %v3712_v40 = vpop.f32.mrf.mxu1  ;;  %v1125_v35 = vadd.f32 %v1124_v39, %v3766_v5 }
 0x2a6   : > { %v1126_v41 = vpop.f32.mrf.mxu0 }
 0x2a7   : > { %v3714_v42 = vpop.f32.mrf.mxu1 }
 0x2a8   : > { %v1130_v43 = vpop.f32.mrf.mxu0 }
 0x2a9   : > { %v3716_v51 = vpop.f32.mrf.mxu1 }
 0x2aa   : > { %v3718_v44 = vpop.f32.mrf.mxu0 }
 0x2ab   : > { %v3720_v45 = vpop.f32.mrf.mxu1 }
 0x2ac   : > { %v3722_v46 = vpop.f32.mrf.mxu0 }
 0x2ad   : > { %v3724_v47 = vpop.f32.mrf.mxu1 }
 0x2ae   : > { %v3726_v48 = vpop.f32.mrf.mxu0 }
 0x2af   : > { %v3728_v49 = vpop.f32.mrf.mxu1 }
 0x2b0   : > { %v3730_v52 = vpop.f32.mrf.mxu0 }
 0x2b1   : > { %v3732_v53 = vpop.f32.mrf.mxu1 }
 0x2b2   : > { %v3734_v54 = vpop.f32.mrf.mxu0 }
 0x2b3   : > { %v3736_v55 = vpop.f32.mrf.mxu1 }
 0x2b4   : > { %v3740_v57 = vpop.f32.mrf.mxu0 }
 0x2b5   : > { %v3742_v58 = vpop.f32.mrf.mxu1 }
 0x2b6   : > { %4264 = vst [vmem:[#allocation26_spill] sm:$0xff] %v3742_v58  ;;  %v3744_v59 = vpop.f32.mrf.mxu0 }
 0x2b7   : > { %v3746_v60 = vpop.f32.mrf.mxu1 }
 0x2b8   : > { %v3753_v0 = vpop.f32.mrf.mxu0 }
 0x2b9   : > { %v3755_v1 = vpop.f32.mrf.mxu1 }
 0x2ba   : > { %4266 = vst [vmem:[#allocation27_spill] sm:$0xff] %v3755_v1  ;;  %v3757_v2 = vpop.f32.mrf.mxu0 }
 0x2bb   : > { %v3759_v3 = vpop.f32.mrf.mxu1 }
 0x2bc   : > { %4267 = vst [vmem:[#allocation28_spill] sm:$0xff] %v3759_v3  ;;  %v3773_v8 = vpop.f32.mrf.mxu0 }
 0x2bd   : > { %v2480_v11 = vpop.f32.mrf.mxu1 }
 0x2be   : > { %v3776_v12 = vadd.f32 %v2480_v11, %v3770_v6  ;;  %v3781_v16 = vpop.f32.mrf.mxu0 }
 0x2bf   : > { %v3783_v19 = vpop.f32.mrf.mxu1 }
 0x2c0   : > { %4269 = vst [vmem:[#allocation29_spill] sm:$0xff] %v3776_v12  ;;  %4270 = vst [vmem:[#allocation30_spill] sm:$0xff] %v3783_v19  ;;  %v3791_v25 = vpop.f32.mrf.mxu0 }
 0x2c1   : > { %v1515_v26 = vpop.f32.mrf.mxu1 }
 0x2c2   : > { %v1516_v27 = vadd.f32 %v1515_v26, %v3779_v13  ;;  %v3794_v28 = vpop.f32.mrf.mxu0  ;;  %v1131_v26 = vadd.f32 %v1130_v43, %v3766_v5  ;;  %v1133_v43 = vadd.f32 %v3718_v44, %v3786_v23  ;;  %v1141_v44 = vadd.f32 %v3730_v52, %v3766_v5 }
 0x2c3   : > { %v1517_v29 = vpop.f32.mrf.mxu1  ;;  %v1143_v52 = vadd.f32 %v3734_v54, %v3786_v23 }
 0x2c4   : > { %v1691_v31 = vadd.f32 %v1516_v27, %v1121_v22  ;;  %v1518_v32 = vadd.f32 %v1517_v29, %v3789_v24  ;;  %v3798_v33 = vpop.f32.mrf.mxu0  ;;  %v1127_v22 = vadd.f32 %v1126_v41, %v3786_v23 }
 0x2c5   : > { %v1519_v34 = vpop.f32.mrf.mxu1 }
 0x2c6   : > { %v2313_v50 = vmul.f32 -1.442695, %v1691_v31  ;;  %v1803_v61 = vadd.f32 %v1518_v32, %v1123_v30  ;;  %v1520_v63 = vadd.f32 %v1519_v34, %v3779_v13  ;;  %v3802_v7 = vpop.f32.mrf.mxu0 }
 0x2c7   : > { %v1521_v11 = vpop.f32.mrf.mxu1 }
 0x2c8   : > { %2801 = vpow2.f32 %v2313_v50  ;;  %v2329_v62 = vmul.f32 -1.442695, %v1803_v61  ;;  %v1692_v37 = vadd.f32 %v1520_v63, %v1125_v35  ;;  %v1522_v27 = vadd.f32 %v1521_v11, %v3789_v24  ;;  %v3807_v29 = vpop.f32.mrf.mxu0 }
 0x2c9   : > { %v1525_v12 = vpop.f32.mrf.mxu1  ;;  %v1135_v11 = vadd.f32 %v3722_v46, %v3766_v5 }
 0x2ca   : > { %v2314_v39 = vmul.f32 -1.442695, %v1692_v37  ;;  %v1526_v30 = vadd.f32 %v1525_v12, %v3779_v13  ;;  %2803 = vpow2.f32 %v2329_v62  ;;  %v1804_v31 = vadd.f32 %v1522_v27, %v1127_v22  ;;  %v3810_v32 = vpop.f32.mrf.mxu0 }
 0x2cb   : > { %v1527_v34 = vpop.f32.mrf.mxu1 }
 0x2cc   : > { %2805 = vpow2.f32 %v2314_v39  ;;  %v1693_v35 = vadd.f32 %v1526_v30, %v1131_v26  ;;  %v1528_v41 = vadd.f32 %v1527_v34, %v3789_v24  ;;  %v2330_v50 = vmul.f32 -1.442695, %v1804_v31  ;;  %v3815_v61 = vpop.f32.mrf.mxu0 }
 0x2cd   : > { %v1529_v63 = vpop.f32.mrf.mxu1  ;;  %v1137_v30 = vadd.f32 %v3726_v48, %v3786_v23 }
 0x2ce   : > { %v2315_v12 = vmul.f32 -1.442695, %v1693_v35  ;;  %v1805_v62 = vadd.f32 %v1528_v41, %v1133_v43  ;;  %v1530_v37 = vadd.f32 %v1529_v63, %v3779_v13  ;;  %2807 = vpow2.f32 %v2330_v50  ;;  %v3820_v22 = vpop.f32.mrf.mxu0 }
 0x2cf   : > { %v1531_v27 = vpop.f32.mrf.mxu1 }
 0x2d0   : > { %2809 = vpow2.f32 %v2315_v12  ;;  %v2331_v26 = vmul.f32 -1.442695, %v1805_v62  ;;  %v1694_v39 = vadd.f32 %v1530_v37, %v1135_v11  ;;  %v1532_v31 = vadd.f32 %v1531_v27, %v3789_v24  ;;  %v3827_v46 = vpop.f32.mrf.mxu0 }
 0x2d1   : > { %v1535_v34 = vpop.f32.mrf.mxu1 }
 0x2d2   : > { %v2316_v43 = vmul.f32 -1.442695, %v1694_v39  ;;  %v1536_v35 = vadd.f32 %v1535_v34, %v3779_v13  ;;  %2811 = vpow2.f32 %v2331_v26  ;;  %v1806_v41 = vadd.f32 %v1532_v31, %v1137_v30  ;;  %v3830_v50 = vpop.f32.mrf.mxu0 }
 0x2d3   : > { %v1537_v63 = vpop.f32.mrf.mxu1  ;;  %v1145_v26 = vadd.f32 %v3740_v57, %v3766_v5 }
 0x2d4   : > { %2813 = vpow2.f32 %v2316_v43  ;;  %v1695_v11 = vadd.f32 %v1536_v35, %v1141_v44  ;;  %v1538_v48 = vadd.f32 %v1537_v63, %v3789_v24  ;;  %v2332_v62 = vmul.f32 -1.442695, %v1806_v41  ;;  %v3835_v37 = vpop.f32.mrf.mxu0 }
 0x2d5   : > { %v2802_v12 = vpop.eup %2801  ;;  %v1539_v27 = vpop.f32.mrf.mxu1  ;;  %v4271_v44 = vsub.s32 2, %v3738_v56  ;;  %v3849_v41 = vadd.f32 %v3708_v36, %v3770_v6  ;;  %v1151_v63 = vadd.f32 %v3753_v0, %v3766_v5  ;;  %v3860_v36 = vadd.f32 %v3710_v38, %v3770_v6 }
 0x2d6   : > { %v1755_v39 = vadd.f32 1.0, %v2802_v12  ;;  %v2317_v1 = vmul.f32 -1.442695, %v1695_v11  ;;  %v1807_v34 = vadd.f32 %v1538_v48, %v1143_v52  ;;  %2815 = vpow2.f32 %v2332_v62  ;;  %v3840_v31 = vpop.f32.mrf.mxu0 }
 0x2d7   : > { %v1540_v30 = vadd.f32 %v1539_v27, %v3779_v13  ;;  %v1541_v54 = vpop.f32.mrf.mxu1  ;;  %v3845_v43 = vrot.slane %v3764_v4, %v4271_v44  ;;  %v2804_v35 = vpop.eup %2803  ;;  %v1147_v11 = vadd.f32 %v3744_v59, %v3786_v23  ;;  %v3864_v0 = vadd.f32 %v3712_v40, %v3770_v6 }
 0x2d8   : > { %2817 = vrcp.f32 %v1755_v39  ;;  %v2333_v57 = vmul.f32 -1.442695, %v1807_v34  ;;  %v1542_v56 = vadd.f32 %v1541_v54, %v3789_v24  ;;  %v3856_v4 = vpop.f32.mrf.mxu0  ;;  %v1867_v39 = vadd.f32 1.0, %v2804_v35 }
 0x2d9   : > { %v2806_v52 = vpop.eup %2805  ;;  %2819 = vpow2.f32 %v2317_v1  ;;  %v1696_v48 = vadd.f32 %v1540_v30, %v1145_v26  ;;  %v1545_v12 = vpop.f32.mrf.mxu1  ;;  %v1153_v54 = vadd.f32 %v3757_v2, %v3786_v23  ;;  %v3878_v35 = vadd.f32 %v3716_v51, %v3770_v6 }
 0x2da   : > { %v1756_v62 = vadd.f32 1.0, %v2806_v52  ;;  %v1546_v27 = vadd.f32 %v1545_v12, %v3779_v13  ;;  %2821 = vpow2.f32 %v2333_v57  ;;  %v1808_v1 = vadd.f32 %v1542_v56, %v1147_v11  ;;  %v3867_v34 = vpop.f32.mrf.mxu0 }
 0x2db   : > { %v2318_v59 = vmul.f32 -1.442695, %v1696_v48  ;;  %v1547_v26 = vpop.f32.mrf.mxu1  ;;  %v2808_v30 = vpop.eup %2807  ;;  %v3874_v52 = vadd.f32 %v3714_v42, %v3770_v6  ;;  %v3884_v2 = vadd.f32 %v3720_v45, %v3770_v6  ;;  %v1155_v42 = vadd.f32 %v3773_v8, %v3766_v5 }
 0x2dc   : > { %2823 = vrcp.f32 %v1756_v62  ;;  %v1697_v38 = vadd.f32 %v1546_v27, %v1151_v63  ;;  %v1548_v44 = vadd.f32 %v1547_v26, %v3789_v24  ;;  %v2334_v57 = vmul.f32 -1.442695, %v1808_v1  ;;  %v3880_v11 = vpop.f32.mrf.mxu0 }
 0x2dd   : > { %v2810_v40 = vpop.eup %2809  ;;  %2825 = vpow2.f32 %v2318_v59  ;;  %v1549_v48 = vpop.f32.mrf.mxu1  ;;  %v1868_v63 = vadd.f32 1.0, %v2808_v30  ;;  %v3893_v26 = vadd.f32 %v3724_v47, %v3770_v6  ;;  %v1157_v45 = vadd.f32 %v3781_v16, %v3786_v23 }
 0x2de   : > { %v1757_v56 = vadd.f32 1.0, %v2810_v40  ;;  %v1809_v12 = vadd.f32 %v1548_v44, %v1153_v54  ;;  %2827 = vrcp.f32 %v1867_v39  ;;  %v2319_v62 = vmul.f32 -1.442695, %v1697_v38  ;;  %v3889_v27 = vpop.f32.mrf.mxu0 }
 0x2df   : > { %v1550_v51 = vadd.f32 %v1549_v48, %v3779_v13  ;;  %v1551_v59 = vpop.f32.mrf.mxu1  ;;  %v2812_v1 = vpop.eup %2811  ;;  %v1161_v30 = vadd.f32 %v3791_v25, %v3766_v5  ;;  %v3902_v48 = vadd.f32 %v3728_v49, %v3770_v6  ;;  %v1163_v49 = vadd.f32 %v3794_v28, %v3786_v23 }
 0x2e0   : > { %2829 = vrcp.f32 %v1757_v56  ;;  %v2335_v39 = vmul.f32 -1.442695, %v1809_v12  ;;  %v1552_v38 = vadd.f32 %v1551_v59, %v3789_v24  ;;  %v2499_v40 = vpop.f32.mrf.mxu0  ;;  %v1869_v19 = vadd.f32 1.0, %v2812_v1 }
 0x2e1   : > { %v2814_v8 = vpop.eup %2813  ;;  %2831 = vpow2.f32 %v2334_v57  ;;  %v1698_v54 = vadd.f32 %v1550_v51, %v1155_v42  ;;  %v1555_v44 = vpop.f32.mrf.mxu1 }
 0x2e2   : > { %2833 = vrcp.f32 %v1868_v63  ;;  %v1758_v47 = vadd.f32 1.0, %v2814_v8  ;;  %v1556_v16 = vadd.f32 %v1555_v44, %v3779_v13  ;;  %v1810_v56 = vadd.f32 %v1552_v38, %v1157_v45  ;;  %v1628_v57 = vpop.f32.mrf.mxu0 }
 0x2e3   : > { %2835 = vpow2.f32 %v2319_v62  ;;  %v2320_v25 = vmul.f32 -1.442695, %v1698_v54  ;;  %v1557_v3 = vpop.f32.mrf.mxu1  ;;  %v2816_v12 = vpop.eup %2815  ;;  %v1629_v59 = vadd.f32 %v1628_v57, %v3845_v43  ;;  %v1165_v45 = vadd.f32 %v3798_v33, %v3766_v5 }
 0x2e4   : > { %2837 = vrcp.f32 %v1758_v47  ;;  %v1699_v42 = vadd.f32 %v1556_v16, %v1161_v30  ;;  %v1558_v51 = vadd.f32 %v1557_v3, %v3789_v24  ;;  %v1870_v63 = vadd.f32 1.0, %v2816_v12  ;;  %v2500_v62 = vpop.f32.mrf.mxu0 }
 0x2e5   : > { %v2818_v58 = vpop.eup %2817  ;;  %2839 = vpow2.f32 %v2335_v39  ;;  %v2336_v8 = vmul.f32 -1.442695, %v1810_v56  ;;  %v1559_v1 = vpop.f32.mrf.mxu1  ;;  %v1167_v39 = vadd.f32 %v3802_v7, %v3786_v23  ;;  %v1171_v56 = vadd.f32 %v3807_v29, %v3766_v5 }
 0x2e6   : > { %v2820_v54 = vpop.eup %2819  ;;  %2841 = vpow2.f32 %v2320_v25  ;;  %v2321_v38 = vmul.f32 -1.442695, %v1699_v42  ;;  %v1915_v30 = vmul.f32 %v2818_v58, %v1629_v59  ;;  %v1811_v44 = vadd.f32 %v1558_v51, %v1163_v49  ;;  %v1631_v57 = vpop.f32.mrf.mxu0 }
 0x2e7   : > { %2843 = vrcp.f32 %v1869_v19  ;;  %v1759_v3 = vadd.f32 1.0, %v2820_v54  ;;  %v1560_v47 = vadd.f32 %v1559_v1, %v3779_v13  ;;  %v1561_v16 = vpop.f32.mrf.mxu1  ;;  %v2822_v28 = vpop.eup %2821  ;;  %v3918_v33 = vadd.f32 %v3810_v32, %v3786_v23 }
 0x2e8   : > { %2845 = vpow2.f32 %v2336_v8  ;;  %v1871_v19 = vadd.f32 1.0, %v2822_v28  ;;  %v1637_v25 = vadd.f32 %v2499_v40, %v3845_v43  ;;  %v1931_v59 = vadd.f32 %v1915_v30, %v3860_v36 }
 0x2e9   : > { %v2824_v58 = vpop.eup %2823  ;;  %2847 = vrcp.f32 %v1870_v63  ;;  %v1700_v12 = vadd.f32 %v1560_v47, %v1165_v45  ;;  %v1565_v42 = vpop.f32.mrf.mxu1  ;;  %v1562_v7 = vadd.f32 %v1561_v16, %v3789_v24  ;;  %v1632_v29 = vadd.f32 %v1631_v57, %v3845_v43 }
 0x2ea   : > { %v2826_v51 = vpop.eup %2825  ;;  %2849 = vpow2.f32 %v2321_v38  ;;  %v2337_v32 = vmul.f32 -1.442695, %v1811_v44  ;;  %v1566_v45 = vadd.f32 %v1565_v42, %v3779_v13  ;;  %v2503_v47 = vpop.f32.mrf.mxu0  ;;  %v1175_v36 = vadd.f32 %v3815_v61, %v3766_v5 }
 0x2eb   : > { %2851 = vrcp.f32 %v1759_v3  ;;  %v1760_v49 = vadd.f32 1.0, %v2826_v51  ;;  %v2322_v1 = vmul.f32 -1.442695, %v1700_v12  ;;  %v1567_v8 = vpop.f32.mrf.mxu1  ;;  %v3924_v54 = vpop.eup %2827  ;;  %v1812_v63 = vadd.f32 %v1562_v7, %v1167_v39 }
 0x2ec   : > { %2853 = vrcp.f32 %v1871_v19  ;;  %v1916_v40 = vmul.f32 %v2824_v58, %v1632_v29  ;;  %v3931_v30 = vadd.f32 %v3820_v22, %v3786_v23  ;;  %v3935_v3 = vadd.f32 %v3827_v46, %v3766_v5  ;;  %v1644_v51 = vpop.f32.mrf.mxu0 }
 0x2ed   : > { %v2830_v38 = vpop.eup %2829  ;;  %2855 = vrcp.f32 %v1760_v49  ;;  %v1569_v44 = vpop.f32.mrf.mxu1  ;;  %v1640_v28 = vadd.f32 %v2500_v62, %v3845_v43  ;;  %v2338_v39 = vmul.f32 -1.442695, %v1812_v63  ;;  %v3942_v61 = vadd.f32 %v3830_v50, %v3786_v23 }
 0x2ee   : > { %v2832_v16 = vpop.eup %2831  ;;  %v1917_v57 = vmul.f32 %v2830_v38, %v1637_v25  ;;  %2857 = vtanh.f32 %v1931_v59  ;;  %v3946_v22 = vadd.f32 %v3835_v37, %v3766_v5  ;;  %v3950_v46 = vadd.f32 %v3840_v31, %v3786_v23 }
 0x2ef   : > { %v3938_v58 = vpop.eup %2833  ;;  %2859 = vpow2.f32 %v2322_v1  ;;  %v1571_v19 = vpop.f32.mrf.mxu1  ;;  %v1932_v12 = vadd.f32 %v1916_v40, %v3874_v52  ;;  %v1701_v42 = vadd.f32 %v1566_v45, %v1171_v56  ;;  %v1872_v59 = vadd.f32 1.0, %v2832_v16 }
 0x2f0   : > { %v2836_v25 = vpop.eup %2835  ;;  %v1933_v62 = vadd.f32 %v1917_v57, %v3849_v41  ;;  %2861 = vpow2.f32 %v2337_v32  ;;  %v1570_v37 = vadd.f32 %v1569_v44, %v3779_v13  ;;  %v3957_v31 = vadd.f32 %v3856_v4, %v3766_v5 }
 0x2f1   : > { %v2838_v50 = vpop.eup %2837  ;;  %v1761_v7 = vadd.f32 1.0, %v2836_v25  ;;  %2863 = vpow2.f32 %v2338_v39  ;;  %v1575_v29 = vpop.f32.mrf.mxu1  ;;  %v1568_v41 = vadd.f32 %v1567_v8, %v3789_v24  ;;  %v3962_v52 = vmul.f32 %v3924_v54, %v3658_v9 }
 0x2f2   : > { %v2840_v49 = vpop.eup %2839  ;;  %2865 = vtanh.f32 %v1933_v62  ;;  %v1918_v1 = vmul.f32 %v2838_v50, %v1640_v28  ;;  %v3966_v56 = vadd.f32 %v3880_v11, %v3766_v5  ;;  %v3970_v63 = vadd.f32 %v3889_v27, %v3786_v23  ;;  %v2504_v9 = vpop.f32.mrf.mxu0 }
 0x2f3   : > { %v2842_v32 = vpop.eup %2841  ;;  %2867 = vrcp.f32 %v1761_v7  ;;  %v1577_v4 = vpop.f32.mrf.mxu1  ;;  %v1572_v38 = vadd.f32 %v1571_v19, %v3789_v24  ;;  %v2323_v16 = vmul.f32 -1.442695, %v1701_v42  ;;  %v1702_v57 = vadd.f32 %v1570_v37, %v1175_v36 }
 0x2f4   : > { %v3972_v40 = vpop.eup %2843  ;;  %v1762_v45 = vadd.f32 1.0, %v2842_v32  ;;  %v1934_v8 = vadd.f32 %v1918_v1, %v3864_v0  ;;  %2869 = vtanh.f32 %v1932_v12  ;;  %v1576_v5 = vadd.f32 %v1575_v29, %v3779_v13  ;;  %v1647_v37 = vpop.f32.mrf.mxu0 }
 0x2f5   : > { %v2846_v44 = vpop.eup %2845  ;;  %2871 = vrcp.f32 %v1872_v59  ;;  %v1579_v11 = vpop.f32.mrf.mxu1  ;;  %v1873_v27 = vadd.f32 1.0, %v2840_v49  ;;  %v1963_v39 = vsub.f32 1.0, %v3924_v54  ;;  %v1813_v25 = vadd.f32 %v1568_v41, %v3918_v33 }
 0x2f6   : > { %v3977_v28 = vpop.eup %2847  ;;  %2873 = vrcp.f32 %v1762_v45  ;;  %v3983_v19 = vmul.f32 %v3938_v58, %v3661_v10  ;;  %v1653_v62 = vadd.f32 %v2503_v47, %v3845_v43  ;;  %v1645_v36 = vadd.f32 %v1644_v51, %v3845_v43 }
 0x2f7   : > { %v2850_v0 = vpop.eup %2849  ;;  %2875 = vtanh.f32 %v1934_v8  ;;  %v1581_v12 = vpop.f32.mrf.mxu1  ;;  %v1874_v50 = vadd.f32 1.0, %v2846_v44  ;;  %v1814_v7 = vadd.f32 %v1572_v38, %v3931_v30  ;;  %v1580_v54 = vadd.f32 %v1579_v11, %v3779_v13 }
 0x2f8   : > { %v2852_v42 = vpop.eup %2851  ;;  %v1763_v59 = vadd.f32 1.0, %v2850_v0  ;;  %2877 = vpow2.f32 %v2323_v16  ;;  %v2324_v29 = vmul.f32 -1.442695, %v1702_v57  ;;  %v1703_v10 = vadd.f32 %v1576_v5, %v3935_v3  ;;  %v3998_v3 = vpop.f32.mrf.mxu0 }
 0x2f9   : > { %v3989_v33 = vpop.eup %2853  ;;  %v1578_v49 = vadd.f32 %v1577_v4, %v3789_v24  ;;  %v1585_v47 = vpop.f32.mrf.mxu1  ;;  %v1997_v51 = vmul.f32 %v3972_v40, %v3669_v14  ;;  %2879 = vrcp.f32 %v1873_v27  ;;  %v1964_v41 = vsub.f32 1.0, %v3938_v58 }
 0x2fa   : > { %v2856_v1 = vpop.eup %2855  ;;  %v2339_v30 = vmul.f32 -1.442695, %v1813_v25  ;;  %2881 = vrcp.f32 %v1763_v59  ;;  %v1965_v45 = vsub.f32 1.0, %v3972_v40  ;;  %v1919_v8 = vmul.f32 %v2852_v42, %v1645_v36 }
 0x2fb   : > { %v2858_v32 = vpop.eup %2857  ;;  %v1648_v38 = vadd.f32 %v1647_v37, %v3845_v43  ;;  %v1587_v44 = vpop.f32.mrf.mxu1  ;;  %2883 = vrcp.f32 %v1874_v50  ;;  %v2340_v57 = vmul.f32 -1.442695, %v1814_v7  ;;  %v1704_v14 = vadd.f32 %v1580_v54, %v3946_v22 }
 0x2fc   : > { %v2860_v4 = vpop.eup %2859  ;;  %v1979_v16 = vmul.f32 %v2858_v32, %v1963_v39  ;;  %2885 = vpow2.f32 %v2324_v29  ;;  %v2325_v11 = vmul.f32 -1.442695, %v1703_v10  ;;  %v1815_v27 = vadd.f32 %v1578_v49, %v3942_v61  ;;  %v1660_v7 = vpop.f32.mrf.mxu0 }
 0x2fd   : > { %v4001_v5 = vpop.eup %2861  ;;  %v1764_v58 = vadd.f32 1.0, %v2860_v4  ;;  %v1589_v40 = vpop.f32.mrf.mxu1  ;;  %v1998_v0 = vmul.f32 %v3977_v28, %v3672_v15  ;;  %2887 = vpow2.f32 %v2339_v30  ;;  %v1586_v39 = vadd.f32 %v1585_v47, %v3779_v13 }
 0x2fe   : > { %v4004_v25 = vpop.eup %2863  ;;  %v2011_v36 = vadd.f32 %v3962_v52, %v1979_v16  ;;  %v1935_v42 = vadd.f32 %v1919_v8, %v3884_v2  ;;  %v1656_v50 = vadd.f32 %v2504_v9, %v3845_v43  ;;  %v1920_v59 = vmul.f32 %v2856_v1, %v1648_v38  ;;  %v4022_v38 = vpop.f32.mrf.mxu0 }
 0x2ff   : > { %v2866_v22 = vpop.eup %2865  ;;  %2889 = vrcp.f32 %v1764_v58  ;;  %v1591_v61 = vpop.f32.mrf.mxu1  ;;  %v2326_v29 = vmul.f32 -1.442695, %v1704_v14  ;;  %v1582_v15 = vadd.f32 %v1581_v12, %v3789_v24  ;;  %v2341_v49 = vmul.f32 -1.442695, %v1815_v27 }
 0x300   : > { %v2868_v54 = vpop.eup %2867  ;;  %v1981_v37 = vmul.f32 %v2866_v22, %v1965_v45  ;;  %2027 = vst [vmem:[%s3613_s23] sm:$0xff] %v2011_v36  ;;  %2891 = vpow2.f32 %v2340_v57  ;;  %v1590_v47 = vadd.f32 %v1589_v40, %v3779_v13  ;;  %v1705_v30 = vadd.f32 %v1586_v39, %v3957_v31 }
 0x301   : > { %v2870_v52 = vpop.eup %2869  ;;  %2893 = vpow2.f32 %v2325_v11  ;;  %v1921_v10 = vmul.f32 %v2868_v54, %v1653_v62  ;;  %v1592_v32 = vadd.f32 %v1591_v61, %v3789_v24  ;;  %v1966_v8 = vsub.f32 1.0, %v3977_v28 }
 0x302   : > { %v4015_v2 = vpop.eup %2871  ;;  %v2013_v9 = vadd.f32 %v1997_v51, %v1981_v37  ;;  %v1980_v1 = vmul.f32 %v2870_v52, %v1964_v41  ;;  %2895 = vtanh.f32 %v1935_v42  ;;  %v1936_v62 = vadd.f32 %v1920_v59, %v3902_v48 }
 0x303   : > { %v2874_v45 = vpop.eup %2873  ;;  %v1937_v12 = vadd.f32 %v1921_v10, %v3878_v35  ;;  %2897 = vpow2.f32 %v2326_v29  ;;  %v1816_v31 = vadd.f32 %v1582_v15, %v3950_v46  ;;  %v1706_v28 = vadd.f32 %v1590_v47, %v3966_v56  ;;  %v1663_v46 = vpop.f32.mrf.mxu0 }
 0x304   : > { %v2876_v13 = vpop.eup %2875  ;;  %2029 = vst [vmem:[%s3613_s23 + $0x10] sm:$0xff] %v2013_v9  ;;  %v2012_v51 = vadd.f32 %v3983_v19, %v1980_v1  ;;  %v1922_v41 = vmul.f32 %v2874_v45, %v1656_v50  ;;  %v4029_v16 = vadd.f32 %v1592_v32, %v3970_v63  ;;  %v2327_v57 = vmul.f32 -1.442695, %v1705_v30 }
 0x305   : > { %v1982_v4 = vmul.f32 %v2876_v13, %v1966_v8  ;;  %2899 = vtanh.f32 %v1937_v12  ;;  %v2878_v35 = vpop.eup %2877  ;;  %v1588_v19 = vadd.f32 %v1587_v44, %v3789_v24  ;;  %v1193_v56 = vadd.f32 %v3867_v34, %v3786_v23  ;;  %v4048_v10 = vpop.f32.mrf.mxu0 }
 0x306   : > { %2028 = vst [vmem:[%s3613_s23 + $0x8] sm:$0xff] %v2012_v51  ;;  %2901 = vpow2.f32 %v2341_v49  ;;  %v1938_v48 = vadd.f32 %v1922_v41, %v3893_v26  ;;  %v2880_v14 = vpop.eup %2879  ;;  %v1765_v11 = vadd.f32 1.0, %v2878_v35  ;;  %v1875_v63 = vadd.f32 1.0, %v4001_v5 }
 0x307   : > { %v2014_v58 = vadd.f32 %v1998_v0, %v1982_v4  ;;  %2903 = vtanh.f32 %v1936_v62  ;;  %v2882_v27 = vpop.eup %2881  ;;  %v1661_v26 = vadd.f32 %v1660_v7, %v3845_v43  ;;  %v2342_v24 = vmul.f32 -1.442695, %v1816_v31  ;;  %v1676_v13 = vpop.f32.mrf.mxu0 }
 0x308   : > { %2905 = vtanh.f32 %v1938_v48  ;;  %v4037_v40 = vpop.eup %2883  ;;  %v1817_v44 = vadd.f32 %v1588_v19, %v1193_v56  ;;  %v1664_v0 = vadd.f32 %v1663_v46, %v3845_v43  ;;  %v2328_v42 = vmul.f32 -1.442695, %v1706_v28 }
 0x309   : > { %2030 = vst [vmem:[%s3613_s23 + $0x18] sm:$0xff] %v2014_v58  ;;  %2907 = vrcp.f32 %v1765_v11  ;;  %v2886_v36 = vpop.eup %2885  ;;  %v1923_v50 = vmul.f32 %v2882_v27, %v1661_v26  ;;  %v1876_v34 = vadd.f32 1.0, %v4004_v25  ;;  %v1266_v59 = vadd.f32 %v3736_v55, %v3770_v6  ;;  %v4272_v26 = vld [vmem:[#allocation26_spill] sm:$0xff] }
 0x30a   : > { %2909 = vpow2.f32 %v2327_v57  ;;  %v2888_v39 = vpop.eup %2887  ;;  %v1766_v22 = vadd.f32 1.0, %v2886_v36  ;;  %v1269_v54 = vadd.f32 %v3746_v60, %v3770_v6  ;;  %v2343_v37 = vmul.f32 -1.442695, %v1817_v44 }
 0x30b   : > { %2911 = vrcp.f32 %v1875_v63  ;;  %v1967_v15 = vsub.f32 1.0, %v3989_v33  ;;  %v1939_v52 = vadd.f32 %v1923_v50, %v1266_v59  ;;  %v1999_v49 = vmul.f32 %v3989_v33, %v3679_v17  ;;  %v4273_v59 = vld [vmem:[#allocation28_spill] sm:$0xff] }
 0x30c   : > { %v2890_v23 = vpop.eup %2889  ;;  %2913 = vrcp.f32 %v1766_v22  ;;  %v1968_v55 = vsub.f32 1.0, %v4015_v2  ;;  %v1969_v9 = vsub.f32 1.0, %v2880_v14  ;;  %v2001_v32 = vmul.f32 %v2880_v14, %v3689_v20 }
 0x30d   : > { %v2892_v5 = vpop.eup %2891  ;;  %v1924_v61 = vmul.f32 %v2890_v23, %v1664_v0  ;;  %2915 = vpow2.f32 %v2342_v24  ;;  %v1669_v8 = vadd.f32 %v3998_v3, %v3845_v43  ;;  %v1877_v62 = vadd.f32 1.0, %v2888_v39 }
 0x30e   : > { %v2894_v7 = vpop.eup %2893  ;;  %2917 = vpow2.f32 %v2328_v42  ;;  %v2000_v41 = vmul.f32 %v4015_v2, %v3682_v18  ;;  %v1970_v20 = vsub.f32 1.0, %v4037_v40  ;;  %v2344_v3 = vmul.f32 -1.442695, %v4029_v16  ;;  %v4068_v16 = vpop.f32.mrf.mxu0 }
 0x30f   : > { %v1767_v29 = vadd.f32 1.0, %v2894_v7  ;;  %v2896_v25 = vpop.eup %2895  ;;  %2919 = vrcp.f32 %v1876_v34  ;;  %v1940_v1 = vadd.f32 %v1924_v61, %v1269_v54  ;;  %v1274_v48 = vadd.f32 %v3732_v53, %v3770_v6 }
 0x310   : > { %v2898_v47 = vpop.eup %2897  ;;  %v1983_v60 = vmul.f32 %v2896_v25, %v1967_v15  ;;  %v2002_v57 = vmul.f32 %v4037_v40, %v3692_v21  ;;  %v1672_v58 = vadd.f32 %v4022_v38, %v3845_v43  ;;  %v1878_v56 = vadd.f32 1.0, %v2892_v5  ;;  %v1679_v44 = vpop.f32.mrf.mxu0 }
 0x311   : > { %2921 = vrcp.f32 %v1767_v29  ;;  %v1768_v45 = vadd.f32 1.0, %v2898_v47  ;;  %v1277_v36 = vadd.f32 %v4272_v26, %v3770_v6  ;;  %v1677_v38 = vadd.f32 %v1676_v13, %v3845_v43  ;;  %v2961_v29 = vld [vmem:[%s3603_s15 + $0x40] sm:$0xff]  ;;  %v4276_v26 = vld [vmem:[#allocation29_spill] sm:$0xff] }
 0x312   : > { %v2900_v30 = vpop.eup %2899  ;;  %2923 = vpow2.f32 %v2343_v37  ;;  %v2015_v33 = vadd.f32 %v1999_v49, %v1983_v60  ;;  %v1680_v34 = vadd.f32 %v1679_v44, %v3845_v43  ;;  %v1282_v61 = vadd.f32 %v4273_v59, %v3770_v6 }
 0x313   : > { %v2902_v12 = vpop.eup %2901  ;;  %v1985_v17 = vmul.f32 %v2900_v30, %v1969_v9  ;;  %2925 = vtanh.f32 %v1939_v52  ;;  %v4274_v9 = vld [vmem:[#allocation30_spill] sm:$0xff]  ;;  %v2962_v30 = vld [vmem:[%s3603_s15 + $0x48] sm:$0xff] }
 0x314   : > { %v2904_v51 = vpop.eup %2903  ;;  %2927 = vrcp.f32 %v1768_v45  ;;  %2031 = vst [vmem:[%s3613_s23 + $0x20] sm:$0xff] %v2015_v33  ;;  %v1879_v63 = vadd.f32 1.0, %v2902_v12  ;;  %v1285_v60 = vadd.f32 %v4274_v9, %v3770_v6 }
 0x315   : > { %v2906_v31 = vpop.eup %2905  ;;  %v2017_v4 = vadd.f32 %v2001_v32, %v1985_v17  ;;  %v1984_v28 = vmul.f32 %v2904_v51, %v1968_v55  ;;  %2929 = vtanh.f32 %v1940_v1  ;;  %v1685_v51 = vadd.f32 %v4048_v10, %v3845_v43 }
 0x316   : > { %v2908_v35 = vpop.eup %2907  ;;  %v1986_v19 = vmul.f32 %v2906_v31, %v1970_v20  ;;  %2931 = vrcp.f32 %v1877_v62 }
 0x317   : > { %v2910_v18 = vpop.eup %2909  ;;  %2033 = vst [vmem:[%s3613_s23 + $0x30] sm:$0xff] %v2017_v4  ;;  %v2016_v2 = vadd.f32 %v2000_v41, %v1984_v28  ;;  %v1925_v14 = vmul.f32 %v2908_v35, %v1669_v8  ;;  %2933 = vpow2.f32 %v2344_v3  ;;  %v4275_v4 = vld [vmem:[#allocation27_spill] sm:$0xff]  ;;  %v2963_v35 = vld [vmem:[%s3603_s15 + $0x50] sm:$0xff] }
 0x318   : > { %v2018_v11 = vadd.f32 %v2002_v57, %v1986_v19  ;;  %v1769_v46 = vadd.f32 1.0, %v2910_v18  ;;  %v2912_v27 = vpop.eup %2911  ;;  %v1290_v28 = vadd.f32 %v4275_v4, %v3770_v6 }
 0x319   : > { %2032 = vst [vmem:[%s3613_s23 + $0x28] sm:$0xff] %v2016_v2  ;;  %v1941_v53 = vadd.f32 %v1925_v14, %v1274_v48  ;;  %v2914_v21 = vpop.eup %2913  ;;  %v1971_v7 = vsub.f32 1.0, %v2912_v27  ;;  %v2003_v15 = vmul.f32 %v2961_v29, %v2912_v27 }
 0x31a   : > { %2034 = vst [vmem:[%s3613_s23 + $0x38] sm:$0xff] %v2018_v11  ;;  %2935 = vrcp.f32 %v1769_v46  ;;  %v2916_v40 = vpop.eup %2915  ;;  %v1926_v24 = vmul.f32 %v2914_v21, %v1672_v58  ;;  %v1688_v58 = vadd.f32 %v4068_v16, %v3845_v43 }
 0x31b   : > { %2937 = vtanh.f32 %v1941_v53  ;;  %v2918_v0 = vpop.eup %2917  ;;  %v1880_v23 = vadd.f32 1.0, %v2916_v40  ;;  %v2964_v53 = vld [vmem:[%s3603_s15 + $0x58] sm:$0xff] }
 0x31c   : > { %v2920_v39 = vpop.eup %2919  ;;  %2939 = vrcp.f32 %v1878_v56  ;;  %v1770_v22 = vadd.f32 1.0, %v2918_v0  ;;  %v1942_v42 = vadd.f32 %v1926_v24, %v1277_v36 }
 0x31d   : > { %2941 = vrcp.f32 %v1879_v63  ;;  %v1972_v49 = vsub.f32 1.0, %v2920_v39  ;;  %v2004_v32 = vmul.f32 %v2962_v30, %v2920_v39 }
 0x31e   : > { %v2922_v50 = vpop.eup %2921  ;;  %2943 = vrcp.f32 %v1770_v22 }
 0x31f   : > { %v2924_v5 = vpop.eup %2923  ;;  %v1927_v54 = vmul.f32 %v2922_v50, %v1677_v38  ;;  %2945 = vtanh.f32 %v1942_v42  ;;  %v2965_v38 = vld [vmem:[%s3603_s15 + $0x60] sm:$0xff]  ;;  %v2966_v42 = vld [vmem:[%s3603_s15 + $0x68] sm:$0xff] }
 0x320   : > { %v2926_v37 = vpop.eup %2925  ;;  %2947 = vrcp.f32 %v1880_v23  ;;  %v1881_v62 = vadd.f32 1.0, %v2924_v5 }
 0x321   : > { %v2928_v52 = vpop.eup %2927  ;;  %v1987_v25 = vmul.f32 %v2926_v37, %v1971_v7  ;;  %v1943_v55 = vadd.f32 %v1927_v54, %v1282_v61  ;;  %v2967_v54 = vld [vmem:[%s3603_s15 + $0x70] sm:$0xff] }
 0x322   : > { %v2930_v47 = vpop.eup %2929  ;;  %v1928_v1 = vmul.f32 %v2928_v52, %v1680_v34 }
 0x323   : > { %v2019_v45 = vadd.f32 %v2003_v15, %v1987_v25  ;;  %v1988_v8 = vmul.f32 %v2930_v47, %v1972_v49  ;;  %2949 = vtanh.f32 %v1943_v55  ;;  %v2932_v12 = vpop.eup %2931  ;;  %v2968_v49 = vld [vmem:[%s3603_s15 + $0x78] sm:$0xff] }
 0x324   : > { %v1944_v17 = vadd.f32 %v1928_v1, %v1285_v60  ;;  %v2934_v13 = vpop.eup %2933  ;;  %v1973_v20 = vsub.f32 1.0, %v2932_v12  ;;  %v2005_v48 = vmul.f32 %v2963_v35, %v2932_v12 }
 0x325   : > { %2035 = vst [vmem:[%s3613_s23 + $0x40] sm:$0xff] %v2019_v45  ;;  %v2020_v33 = vadd.f32 %v2004_v32, %v1988_v8  ;;  %v1882_v57 = vadd.f32 1.0, %v2934_v13 }
 0x326   : > { %2951 = vtanh.f32 %v1944_v17 }
 0x327   : > { %v2936_v41 = vpop.eup %2935  ;;  %2036 = vst [vmem:[%s3613_s23 + $0x48] sm:$0xff] %v2020_v33  ;;  %2953 = vrcp.f32 %v1881_v62 }
 0x328   : > { %v2938_v31 = vpop.eup %2937  ;;  %v1929_v3 = vmul.f32 %v2936_v41, %v1685_v51 }
 0x329   : > { %v1989_v19 = vmul.f32 %v2938_v31, %v1973_v20  ;;  %v2940_v18 = vpop.eup %2939 }
 0x32a   : > { %v1945_v2 = vadd.f32 %v1929_v3, %v1290_v28  ;;  %v2942_v14 = vpop.eup %2941  ;;  %v1974_v6 = vsub.f32 1.0, %v2940_v18  ;;  %v2006_v21 = vmul.f32 %v2964_v53, %v2940_v18 }
 0x32b   : > { %v2021_v10 = vadd.f32 %v2005_v48, %v1989_v19  ;;  %v2944_v11 = vpop.eup %2943  ;;  %v1975_v40 = vsub.f32 1.0, %v2942_v14  ;;  %v2007_v43 = vmul.f32 %v2965_v38, %v2942_v14 }
 0x32c   : > { %2955 = vtanh.f32 %v1945_v2  ;;  %v1930_v46 = vmul.f32 %v2944_v11, %v1688_v58  ;;  %v2946_v27 = vpop.eup %2945 }
 0x32d   : > { %2957 = vrcp.f32 %v1882_v57  ;;  %2037 = vst [vmem:[%s3613_s23 + $0x50] sm:$0xff] %v2021_v10  ;;  %v2948_v56 = vpop.eup %2947  ;;  %v1990_v63 = vmul.f32 %v2946_v27, %v1974_v6 }
 0x32e   : > { %v1946_v36 = vadd.f32 %v1930_v46, %v4276_v26  ;;  %v1976_v0 = vsub.f32 1.0, %v2948_v56  ;;  %v2008_v50 = vmul.f32 %v2966_v42, %v2948_v56 }
 0x32f   : > { %v2022_v16 = vadd.f32 %v2006_v21, %v1990_v63 }
 0x330   : > { %v2950_v24 = vpop.eup %2949  ;;  %2959 = vtanh.f32 %v1946_v36 }
 0x331   : > { %v1991_v44 = vmul.f32 %v2950_v24, %v1975_v40  ;;  %2038 = vst [vmem:[%s3613_s23 + $0x58] sm:$0xff] %v2022_v16 }
 0x333   : > { %v2952_v39 = vpop.eup %2951  ;;  %v2023_v22 = vadd.f32 %v2007_v43, %v1991_v44 }
 0x334   : > { %v1992_v23 = vmul.f32 %v2952_v39, %v1976_v0  ;;  %v2954_v34 = vpop.eup %2953 }
 0x335   : > { %2039 = vst [vmem:[%s3613_s23 + $0x60] sm:$0xff] %v2023_v22  ;;  %v1977_v59 = vsub.f32 1.0, %v2954_v34  ;;  %v2009_v37 = vmul.f32 %v2967_v54, %v2954_v34 }
 0x336   : > { %v2024_v5 = vadd.f32 %v2008_v50, %v1992_v23 }
 0x338   : > { %2040 = vst [vmem:[%s3613_s23 + $0x68] sm:$0xff] %v2024_v5 }
 0x339   : > { %v2956_v61 = vpop.eup %2955 }
 0x33a   : > { %v2958_v7 = vpop.eup %2957  ;;  %v1993_v29 = vmul.f32 %v2956_v61, %v1977_v59 }
 0x33b   : > { %v1978_v52 = vsub.f32 1.0, %v2958_v7  ;;  %v2010_v55 = vmul.f32 %v2968_v49, %v2958_v7 }
 0x33c   : > { %v2025_v15 = vadd.f32 %v2009_v37, %v1993_v29 }
 0x33d   : > { %v2960_v25 = vpop.eup %2959 }
 0x33e   : > { %2041 = vst [vmem:[%s3613_s23 + $0x70] sm:$0xff] %v2025_v15  ;;  %v1994_v47 = vmul.f32 %v2960_v25, %v1978_v52 }
 0x340   : > { %v2026_v9 = vadd.f32 %v2010_v55, %v1994_v47 }
 0x342   : > { %2042 = vst [vmem:[%s3613_s23 + $0x78] sm:$0xff] %v2026_v9 }
 0x343 PF: > { %s4277_s5 = sld [smem:[#allocation20_spill]]  ;;  %s2057_s19 = sshll.u32 %s3613_s23, 4  ;;  %s4110_s19 = int_to_ptr.vmem [resolvable:$true] %s2057_s19 }
 0x344   : > { %s4278_s4 = sld [smem:[#allocation37_spill]]  ;;  %s4114_s15 = scalar_lea.sflag [#allocation5], %s394_s30 }
 0x345   : > { %s3105_s8 = scalar_lea.vmem %s4110_s19, 2048  ;;  %p4279_p3 = scmp.ne.s32.totalorder %s4250_s14, 0 }
 0x346   : > { %p3106_p11 = scmp.ne.s32.totalorder %s4110_s19, %s3105_s8  ;;  %s3276_s26 = smov [#allocation12]  }
 0x347   : > { %s3109_s20 = sshll.u32 %s3276_s26, 4  ;;  %s3110_s20 = int_to_ptr.vmem [resolvable:$false] %s3109_s20 }
 0x348   : > { %p3107_p10 = pnand %p3106_p11, %p4279_p3  ;;  %s3111_s6 = scalar_lea.vmem %s3110_s20, 4096 }
 0x349   : > { %s2352_s9 = sshll.u32 %s4277_s5, 11  ;;  %p3112_p6 = scmp.lt.s32.totalorder %s4110_s19, %s3110_s20 }
 0x34a   : > { %s4107_s22 = scalar_lea.hbm %s4278_s4, %s2352_s9  ;;  %p3108_p9 = pneg %p3107_p10 }
 0x34b   : > { %p3113_p8 = scmp.lt.s32.totalorder %s3111_s6, %s3105_s8 }
 0x34d   : > { %p3114_p12 = por %p3113_p8, %p3112_p6 }
 0x34f   : > { %p3115_p5 = pnand %p3114_p12, %p3108_p9 }
 0x351   : > { %3118 = shalt.err (!%p3115_p5)
}
 0x352   : > { %s3119_s30 = scalar_lea.hbm %s4107_s22, 2048  ;;  %s3123_s3 = scalar_lea.hbm %s4278_s4, 4096 }
 0x353   : > { %p3120_p7 = scmp.ne.s32.totalorder %s4107_s22, %s3119_s30  ;;  %p3124_p1 = scmp.lt.s32.totalorder %s4107_s22, %s4278_s4 }
 0x354   : > { %p3125_p0 = scmp.lt.s32.totalorder %s3123_s3, %s3119_s30 }
 0x355   : > { %p3121_p4 = pnand %p3120_p7, %p4279_p3 }
 0x356   : > { %p3126_p13 = por %p3125_p0, %p3124_p1 }
 0x357   : > { %p3122_p2 = pneg %p3121_p4 }
 0x359   : > { %p3127_p11 = pnand %p3126_p13, %p3122_p2 }
 0x35b   : > { %3130 = shalt.err (!%p3127_p11)
}
 0x35c   : > { %s3277_s7 = smov 128   ;;  %s3278_s21 = smov 8  }
 0x35d   : > { %2544 = dma.vmem_to_hbm [thread:$0]  (%p4279_p3), %s4110_s19, 2048, %s4107_s22, %s4114_s15, %s3277_s7, %s3277_s7, %s3278_s21  }
 0x35e PF: > { %p2572_p10 = scmp.ge.s32.totalorder %s3261_s18, 2  ;;  %s2072_s8 = sand.u32 1, %s3209_s27  }
 0x35f   : > { %p4280_p9 = scmp.ne.s32.totalorder %s4251_s24, 0  ;;  %s2073_s26 = scalar_lea.sflag [#allocation5], %s2072_s8 }
 0x361   : > { %p2564_p6 = pnand %p2572_p10, %p4280_p9 }
 0x363   : > { %p2565_p8 = pneg %p2564_p6 }
 0x365   : > { %3204 = dma.done.wait (%p2565_p8), %s2073_s26, 2048  }
 0x366   : > { %3206 = vsyncadd (%p2565_p8), %s2073_s26, 4294965248  ;;  %s28_s18 = sadd.s32 1, %s3261_s18   ;;  %s4282_s30 = sld [smem:[#allocation18_spill]] }
 0x367   : > { %p4142_p12 = scmp.ge.s32.totalorder %s28_s18, 8   ;;  %s4283_s14 = sld [smem:[#allocation24_spill]] }
 0x368   : > { %s4284_s24 = sld [smem:[#allocation22_spill]]  ;;  %s4286_s27 = smov %s3213_s28 }
 0x369   : > { %s4285_s22 = sld [smem:[#allocation23_spill]]  ;;  %s4287_s28 = smov %s3217_s29 }
 0x36a   : > { %s4288_s29 = smov %s3540_s11  ;;  %s4289_s9 = smov %s3229_s10 }
 0x36b   : > { %s4291_s11 = smov %s3237_s12  ;;  %s4292_s12 = smov %s3241_s13 }
 0x36c   : > { %s4293_s13 = smov %s3503_s25  ;;  %s4295_s15 = smov %s3257_s17 }
 0x36d   : > { %s4290_s10 = smov %s4283_s14  ;;  %s4294_s14 = smov %s3253_s16 }
 0x36e   : > { %s4296_s16 = smov %s4284_s24  ;;  %27 = sbr.rel (!%p4142_p12) target bundleno = 21 (0x15), region = 137 }
 0x36f   : > { %s4297_s17 = smov %s4285_s22 }
 0x373   :  { %2078 = vsyncpa [#allocation4], 1 }
 0x374   :  { %2080 = vsyncpa [#allocation4 + $0x1], 1 }
 0x375   :  { %2081 = vsyncpa [#allocation7], 1 }
 0x376   :  { %2083 = vsyncpa [#allocation7 + $0x1], 1 }
 0x377   :  { %2084 = vsyncpa [#allocation10], 1 }
 0x378   :  { %2085 = vsyncpa [#allocation5], 1 }
 0x379   :  { %2087 = vsyncpa [#allocation5 + $0x1], 1 }

</bundles_post_ra>
